<compile_context>
chip_gen: v7x
topology: tpu7x:2x2x1
jax: 0.10.0
libtpu: 0.0.40
codegen_flags: <defaults>
</compile_context>

<pallas_src>
import functools
import math

import jax
import jax.numpy as jnp
from jax.experimental import pallas as pl
from jax.experimental.pallas import tpu as pltpu

LN_EPS = 1e-5  # PyTorch nn.LayerNorm default


def _round_up(v, m):
    return ((v + m - 1) // m) * m


def _vmem_limit_bytes():
    # Derive the scoped-VMEM budget from the device instead of hard-coding a
    # v5e/v6e-tuned value (v7x only has 64 MiB physical VMEM per core).
    try:
        cap = pltpu.get_tpu_info().vmem_capacity_bytes
    except Exception:
        cap = 128 * 1024 * 1024
    return int(min(max(cap // 2, 16 * 1024 * 1024), 64 * 1024 * 1024))


_VMEM_LIMIT = _vmem_limit_bytes()


def _tile_rows(M, tm):
    # Pick the row tile so that (a) it is 16-row aligned (bf16 sublane packing)
    # and (b) the grid has at least 2 steps whenever M allows it, so the
    # ("parallel",) axis can be sharded across v7x's two TensorCores.
    half = _round_up(max(pl.cdiv(M, 2), 8), 16)
    return max(16, min(tm, half))


# ----------------------------------------------------------------------------
# Pallas kernel 1: plain 2-layer MLP  (Linear -> LayerNorm -> ReLU -> Linear)
# ----------------------------------------------------------------------------
def _mlp_kernel(x_ref, w1_ref, b1_ref, g_ref, be_ref, w2_ref, b2_ref, o_ref):
    x = x_ref[...]                                                  # bf16 [tm, Din]
    h = jnp.dot(x, w1_ref[...], preferred_element_type=jnp.float32) + b1_ref[...]
    mu = jnp.mean(h, axis=-1, keepdims=True)
    var = jnp.maximum(jnp.mean(h * h, axis=-1, keepdims=True) - mu * mu, 0.0)
    a = jnp.maximum((h - mu) * jax.lax.rsqrt(var + LN_EPS) * g_ref[...] + be_ref[...], 0.0)
    out = jnp.dot(a.astype(jnp.bfloat16), w2_ref[...],
                  preferred_element_type=jnp.float32) + b2_ref[...]
    o_ref[...] = out.astype(o_ref.dtype)


def mlp_pallas(x, p, tm=512):
    """x: [M, Din] bf16; p packed by _pack_mlp. Returns [M, Dout] bf16."""
    M, Din = x.shape
    H = p["w1"].shape[1]
    Dout = p["w2"].shape[1]
    tm_eff = _tile_rows(M, tm)
    x = x if x.dtype == jnp.bfloat16 else x.astype(jnp.bfloat16)
    return pl.pallas_call(
        _mlp_kernel,
        out_shape=jax.ShapeDtypeStruct((M, Dout), jnp.bfloat16),
        grid=(pl.cdiv(M, tm_eff),),
        in_specs=[
            pl.BlockSpec((tm_eff, Din), lambda i: (i, 0)),   # activations (row tiles)
            pl.BlockSpec((Din, H), lambda i: (0, 0)),        # W1 (bf16)
            pl.BlockSpec((1, H), lambda i: (0, 0)),          # b1
            pl.BlockSpec((1, H), lambda i: (0, 0)),          # LN gamma
            pl.BlockSpec((1, H), lambda i: (0, 0)),          # LN beta
            pl.BlockSpec((H, Dout), lambda i: (0, 0)),       # W2 (bf16)
            pl.BlockSpec((1, Dout), lambda i: (0, 0)),       # b2
        ],
        out_specs=pl.BlockSpec((tm_eff, Dout), lambda i: (i, 0)),
        compiler_params=pltpu.CompilerParams(
            dimension_semantics=("parallel",),
            vmem_limit_bytes=_VMEM_LIMIT),
    )(x, p["w1"], p["b1"], p["gamma"], p["beta"], p["w2"], p["b2"])


# ----------------------------------------------------------------------------
# Pallas kernel 2: fused (k-MLP | v-MLP) on the shared kv_input.
#   W1 = [W1_k | W1_v | ew_col]  -> first matmul also produces the e_w logit.
#   LayerNorm + ReLU per half (one-pass variance).
#   Two narrow second-layer dots (no zero-padded block-diagonal weight),
#   then a single lane-dense store of [k | v * e_w] in bf16.
# ----------------------------------------------------------------------------
def _fused_kv_kernel(x_ref, w1_ref, b1_ref, g_ref, be_ref,
                     w2k_ref, b2k_ref, w2v_ref, b2v_ref, o_ref, *, h_each):
    x = x_ref[...]                                                  # bf16 [tm, Din]
    h = jnp.dot(x, w1_ref[...], preferred_element_type=jnp.float32) + b1_ref[...]

    hk = h[:, :h_each]
    hv = h[:, h_each:2 * h_each]
    ew = jax.nn.sigmoid(h[:, 2 * h_each:2 * h_each + 1])            # [tm, 1] f32

    def _ln_relu(v, g, b):
        mu = jnp.mean(v, axis=-1, keepdims=True)
        var = jnp.maximum(jnp.mean(v * v, axis=-1, keepdims=True) - mu * mu, 0.0)
        return jnp.maximum((v - mu) * jax.lax.rsqrt(var + LN_EPS) * g + b, 0.0)

    a1 = _ln_relu(hk, g_ref[:, :h_each], be_ref[:, :h_each]).astype(jnp.bfloat16)
    a2 = _ln_relu(hv, g_ref[:, h_each:], be_ref[:, h_each:]).astype(jnp.bfloat16)

    out_k = jnp.dot(a1, w2k_ref[...], preferred_element_type=jnp.float32) + b2k_ref[...]
    out_v = (jnp.dot(a2, w2v_ref[...], preferred_element_type=jnp.float32)
             + b2v_ref[...]) * ew

    o_ref[...] = jnp.concatenate([out_k, out_v], axis=-1).astype(o_ref.dtype)


def fused_kv_mlp(x, p, tm=512):
    """x: [M, Din] bf16; returns [M, dk+dv] bf16 with [:, :dk]=k and [:, dk:]=v*e_w."""
    M, Din = x.shape
    H2p = p["w1"].shape[1]           # 2 * per-MLP hidden + 1 (e_w logit column)
    h_each = (H2p - 1) // 2
    dk = p["w2k"].shape[1]
    dv = p["w2v"].shape[1]
    Dout = dk + dv
    tm_eff = _tile_rows(M, tm)
    x = x if x.dtype == jnp.bfloat16 else x.astype(jnp.bfloat16)
    kernel = functools.partial(_fused_kv_kernel, h_each=h_each)
    return pl.pallas_call(
        kernel,
        out_shape=jax.ShapeDtypeStruct((M, Dout), jnp.bfloat16),
        grid=(pl.cdiv(M, tm_eff),),
        in_specs=[
            pl.BlockSpec((tm_eff, Din), lambda i: (i, 0)),       # kv_input (row tiles)
            pl.BlockSpec((Din, H2p), lambda i: (0, 0)),          # [W1_k|W1_v|ew] (bf16)
            pl.BlockSpec((1, H2p), lambda i: (0, 0)),            # [b1_k|b1_v|ew_b]
            pl.BlockSpec((1, 2 * h_each), lambda i: (0, 0)),     # LN gamma (k|v)
            pl.BlockSpec((1, 2 * h_each), lambda i: (0, 0)),     # LN beta  (k|v)
            pl.BlockSpec((h_each, dk), lambda i: (0, 0)),        # W2_k (bf16)
            pl.BlockSpec((1, dk), lambda i: (0, 0)),             # b2_k
            pl.BlockSpec((h_each, dv), lambda i: (0, 0)),        # W2_v (bf16)
            pl.BlockSpec((1, dv), lambda i: (0, 0)),             # b2_v
        ],
        out_specs=pl.BlockSpec((tm_eff, Dout), lambda i: (i, 0)),
        compiler_params=pltpu.CompilerParams(
            dimension_semantics=("parallel",),
            vmem_limit_bytes=_VMEM_LIMIT),
    )(x, p["w1"], p["b1"], p["gamma"], p["beta"],
      p["w2k"], p["b2k"], p["w2v"], p["b2v"])


# ----------------------------------------------------------------------------
# Parameter construction (deterministic)
# ----------------------------------------------------------------------------
def init_linear(key, din, dout):
    k1, k2 = jax.random.split(key)
    bound = 1.0 / math.sqrt(din)
    w = jax.random.uniform(k1, (din, dout), jnp.float32, -bound, bound)
    b = jax.random.uniform(k2, (dout,), jnp.float32, -bound, bound)
    return w, b


def init_mlp(key, din, dout, hidden):
    k1, k2 = jax.random.split(key)
    w1, b1 = init_linear(k1, din, hidden)
    w2, b2 = init_linear(k2, hidden, dout)
    return {"w1": w1, "b1": b1,
            "gamma": jnp.ones((hidden,), jnp.float32),
            "beta": jnp.zeros((hidden,), jnp.float32),
            "w2": w2, "b2": b2}


def _pack_mlp(p):
    """Cast matmul weights to bf16 and pre-shape the row vectors to [1, D]."""
    return {"w1": p["w1"].astype(jnp.bfloat16), "b1": p["b1"][None, :],
            "gamma": p["gamma"][None, :], "beta": p["beta"][None, :],
            "w2": p["w2"].astype(jnp.bfloat16), "b2": p["b2"][None, :]}


def fuse_kv_params(pk, pv, ew_w, ew_b, din, ew_start):
    """Pack the two MLPs sharing kv_input (plus the e_w linear) for the fused kernel."""
    # e_w logit = last column of the fused first matmul; its weights live only
    # in the r_feat slice of kv_input ([edge_feat | r_feat | hi | hj] order).
    rf = ew_w.shape[0]
    ew_col = jnp.zeros((din, 1), jnp.float32).at[ew_start:ew_start + rf, 0].set(ew_w[:, 0])
    w1 = jnp.concatenate([pk["w1"], pv["w1"], ew_col], axis=1).astype(jnp.bfloat16)
    b1 = jnp.concatenate([pk["b1"], pv["b1"], ew_b])[None, :]
    gamma = jnp.concatenate([pk["gamma"], pv["gamma"]])[None, :]
    beta = jnp.concatenate([pk["beta"], pv["beta"]])[None, :]
    return {"w1": w1, "b1": b1, "gamma": gamma, "beta": beta,
            "w2k": pk["w2"].astype(jnp.bfloat16), "b2k": pk["b2"][None, :],
            "w2v": pv["w2"].astype(jnp.bfloat16), "b2v": pv["b2"][None, :]}


def init_params(key, hidden, n_heads, num_r_gaussian, edge_feat_dim):
    r_feat_dim = num_r_gaussian * 4
    kv_in = hidden * 2 + edge_feat_dim + r_feat_dim
    d = hidden // n_heads
    inv_sqrt_d = 1.0 / math.sqrt(d)
    ks = jax.random.split(key, 10)
    hk = init_mlp(ks[0], kv_in, hidden, hidden)
    hv = init_mlp(ks[1], kv_in, hidden, hidden)
    hq = init_mlp(ks[2], hidden, hidden, hidden)
    x2h_ew_w, x2h_ew_b = init_linear(ks[3], r_feat_dim, 1)
    node_out = init_mlp(ks[4], 2 * hidden, hidden, hidden)
    xk = init_mlp(ks[5], kv_in, hidden, hidden)
    xv = init_mlp(ks[6], kv_in, n_heads, hidden)
    xq = init_mlp(ks[7], hidden, hidden, hidden)
    h2x_ew_w, h2x_ew_b = init_linear(ks[8], r_feat_dim, 1)

    # Fold the attention 1/sqrt(d) scale into the q projections (free).
    for qp in (hq, xq):
        qp["w2"] = qp["w2"] * inv_sqrt_d
        qp["b2"] = qp["b2"] * inv_sqrt_d

    return {
        "hq": _pack_mlp(hq),
        "xq": _pack_mlp(xq),
        "node_out": _pack_mlp(node_out),
        "x2h_kv": fuse_kv_params(hk, hv, x2h_ew_w, x2h_ew_b, kv_in, edge_feat_dim),
        "h2x_kv": fuse_kv_params(xk, xv, h2x_ew_w, h2x_ew_b, kv_in, edge_feat_dim),
    }


# ----------------------------------------------------------------------------
# Plain-JAX glue (smearing, gather, scatter ops)
# ----------------------------------------------------------------------------
def gaussian_smearing(dist, r_min, r_max, num_g):
    offset = jnp.linspace(r_min, r_max, num_g)
    coeff = -0.5 / (offset[1] - offset[0]) ** 2
    d = dist - offset[None, :]                       # [E,1] -> [E,G]
    return jnp.exp(coeff * d * d)


def outer_product(a, b):                             # [E,F] x [E,G] -> [E, F*G]
    return (a[:, :, None] * b[:, None, :]).reshape(a.shape[0], -1)


def scatter_softmax(scores, dst, n):
    # TODO(synk): for very large E, replace with a Pallas pass over dst-grouped
    # edges (scalar-prefetched offsets) fusing exp/sum/normalize in VMEM.
    smax = jax.ops.segment_max(scores, dst, num_segments=n)
    smax = jnp.where(jnp.isneginf(smax), 0.0, smax)
    e = jnp.exp(scores - smax[dst])
    denom = jax.ops.segment_sum(e, dst, num_segments=n)
    return e / denom[dst]


def _kv_input(edge_feat, r_feat, hi, hj):
    # NOTE: concat order [edge_feat, r_feat, hi, hj] must match the e_w weight
    # embedding in fuse_kv_params (ew_start = edge_feat_dim).
    parts = ([edge_feat] if edge_feat is not None else []) + [r_feat, hi, hj]
    return jnp.concatenate(parts, axis=-1)


# ----------------------------------------------------------------------------
# Attention layers
# ----------------------------------------------------------------------------
def x2h_layer(params, h, r_feat_bf, edge_feat_bf, src, dst, n_heads, tm):
    N, hidden = h.shape
    d = hidden // n_heads
    h_bf = h.astype(jnp.bfloat16)
    # TODO(synk): fuse the h[dst]/h[src] gather + concat into the Pallas kernel
    # via a VMEM-resident h and scalar-prefetched per-tile indices to avoid
    # materializing kv_input in HBM.
    kv_input = _kv_input(edge_feat_bf, r_feat_bf, h_bf[dst], h_bf[src])

    kv = fused_kv_mlp(kv_input, params["x2h_kv"], tm=tm)             # bf16 [E, 2*hidden]
    k = kv[:, :hidden].reshape(-1, n_heads, d)
    v = kv[:, hidden:].astype(jnp.float32).reshape(-1, n_heads, d)   # already * e_w
    q = mlp_pallas(h_bf, params["hq"], tm).reshape(-1, n_heads, d)   # already / sqrt(d)

    scores = (q[dst].astype(jnp.float32) * k.astype(jnp.float32)).sum(-1)  # [E, heads]
    alpha = scatter_softmax(scores, dst, N)
    m = alpha[..., None] * v
    out = jax.ops.segment_sum(m, dst, num_segments=N).reshape(N, hidden)
    out = mlp_pallas(jnp.concatenate([out.astype(jnp.bfloat16), h_bf], axis=-1),
                     params["node_out"], tm)
    return out.astype(jnp.float32) + h


def h2x_layer(params, h, rel_x, r_feat_bf, edge_feat_bf, src, dst, n_heads, tm):
    N, hidden = h.shape
    d = hidden // n_heads
    h_bf = h.astype(jnp.bfloat16)
    kv_input = _kv_input(edge_feat_bf, r_feat_bf, h_bf[dst], h_bf[src])

    kv = fused_kv_mlp(kv_input, params["h2x_kv"], tm=tm)             # bf16 [E, hidden+heads]
    k = kv[:, :hidden].reshape(-1, n_heads, d)
    v = kv[:, hidden:].astype(jnp.float32)                           # [E, heads], * e_w
    q = mlp_pallas(h_bf, params["xq"], tm).reshape(-1, n_heads, d)   # already / sqrt(d)

    scores = (q[dst].astype(jnp.float32) * k.astype(jnp.float32)).sum(-1)  # [E, heads]
    alpha = scatter_softmax(scores, dst, N)
    # mean over heads commutes with both the rel_x outer product and the
    # segment sum, so keep the coordinate path lane-dense: one scalar weight
    # per edge times rel_x (instead of an [E, heads, 3] tensor).
    w_e = (alpha * v).mean(axis=1, keepdims=True)                    # [E, 1]
    out = jax.ops.segment_sum(w_e * rel_x, dst, num_segments=N)      # [N, 3]
    return out


def attention_layer_forward(params, h, x, edge_attr, edge_index, mask_ligand,
                            *, n_heads, num_r_gaussian, edge_feat_dim,
                            r_min=0.0, r_max=10.0, num_x2h=1, num_h2x=1,
                            sync_twoup=False, fix_x=False, tm=512):
    src, dst = edge_index[0], edge_index[1]
    edge_feat_bf = edge_attr.astype(jnp.bfloat16) if edge_feat_dim > 0 else None

    rel_x = x[dst] - x[src]
    dist = jnp.linalg.norm(rel_x, axis=-1, keepdims=True)

    # dist (hence dist_feat) is loop-invariant over the x2h loop -> hoist.
    dist_feat = outer_product(edge_attr,
                              gaussian_smearing(dist, r_min, r_max, num_r_gaussian))
    r_feat_bf = dist_feat.astype(jnp.bfloat16)

    h_in = h
    for _ in range(num_x2h):
        h_in = x2h_layer(params, h_in, r_feat_bf, edge_feat_bf, src, dst, n_heads, tm)
    x2h_out = h_in

    new_h = h if sync_twoup else x2h_out
    for i in range(num_h2x):
        delta_x = h2x_layer(params, new_h, rel_x, r_feat_bf, edge_feat_bf, src, dst,
                            n_heads, tm)
        if not fix_x:
            x = x + delta_x * mask_ligand[:, None]
        rel_x = x[dst] - x[src]
        dist = jnp.linalg.norm(rel_x, axis=-1, keepdims=True)
        if i + 1 < num_h2x:
            dist_feat = outer_product(
                edge_attr, gaussian_smearing(dist, r_min, r_max, num_r_gaussian))
            r_feat_bf = dist_feat.astype(jnp.bfloat16)

    return x2h_out, x


# ----------------------------------------------------------------------------
if __name__ == "__main__":
    hidden_dim = 32
    n_heads = 4
    num_r_gaussian = 8
    edge_feat_dim = 4     # edge-type one-hot; r_feat_dim = 4 * num_r_gaussian = 32
    N = 16                # nodes
    E = 48                # edges

    key = jax.random.PRNGKey(0)
    kp, kh, kx, ke, ka, km = jax.random.split(key, 6)

    params = init_params(kp, hidden_dim, n_heads, num_r_gaussian, edge_feat_dim)

    h = jax.random.normal(kh, (N, hidden_dim), jnp.float32)
    x = jax.random.normal(kx, (N, 3), jnp.float32) * 3.0
    edge_index = jax.random.randint(ke, (2, E), 0, N, dtype=jnp.int32)
    edge_type = jax.random.randint(ka, (E,), 0, edge_feat_dim, dtype=jnp.int32)
    edge_attr = jax.nn.one_hot(edge_type, edge_feat_dim, dtype=jnp.float32)
    mask_ligand = (jax.random.uniform(km, (N,)) > 0.5).astype(jnp.float32)

    fwd = jax.jit(functools.partial(
        attention_layer_forward,
        n_heads=n_heads,
        num_r_gaussian=num_r_gaussian,
        edge_feat_dim=edge_feat_dim,
    ))

    x2h_out, x_new = fwd(params, h, x, edge_attr, edge_index, mask_ligand)
    jax.block_until_ready((x2h_out, x_new))

    assert x2h_out.shape == (N, hidden_dim) and x_new.shape == (N, 3)
    assert jnp.all(jnp.isfinite(x2h_out)) and jnp.all(jnp.isfinite(x_new))
    print("KERNEL_OK")
</pallas_src>

<mosaic_0001>
module attributes {stable_mosaic.version = 11 : i64} {
  func.func @_fused_kv_kernel(%arg0: i32, %arg1: memref<32x100xbf16, #tpu.memory_space<vmem>>, %arg2: memref<100x65xbf16, #tpu.memory_space<vmem>>, %arg3: memref<1x65xf32, #tpu.memory_space<vmem>>, %arg4: memref<1x64xf32, #tpu.memory_space<vmem>>, %arg5: memref<1x64xf32, #tpu.memory_space<vmem>>, %arg6: memref<32x32xbf16, #tpu.memory_space<vmem>>, %arg7: memref<1x32xf32, #tpu.memory_space<vmem>>, %arg8: memref<32x32xbf16, #tpu.memory_space<vmem>>, %arg9: memref<1x32xf32, #tpu.memory_space<vmem>>, %arg10: memref<32x64xbf16, #tpu.memory_space<vmem>>) attributes {dimension_semantics = [#tpu.dimension_semantics<parallel>], iteration_bounds = array<i64: 2>, scalar_prefetch = 0 : i64, scratch_operands = 0 : i64, tpu.core_type = #tpu.core_type<tc>, window_params = [{transform_indices = @transform_0, window_bounds = array<i64: 32, 100>}, {pipeline_mode = #tpu.pipeline_mode<synchronous>, transform_indices = @transform_1, window_bounds = array<i64: 100, 65>}, {pipeline_mode = #tpu.pipeline_mode<synchronous>, transform_indices = @transform_2, window_bounds = array<i64: 1, 65>}, {pipeline_mode = #tpu.pipeline_mode<synchronous>, transform_indices = @transform_3, window_bounds = array<i64: 1, 64>}, {pipeline_mode = #tpu.pipeline_mode<synchronous>, transform_indices = @transform_4, window_bounds = array<i64: 1, 64>}, {pipeline_mode = #tpu.pipeline_mode<synchronous>, transform_indices = @transform_5, window_bounds = array<i64: 32, 32>}, {pipeline_mode = #tpu.pipeline_mode<synchronous>, transform_indices = @transform_6, window_bounds = array<i64: 1, 32>}, {pipeline_mode = #tpu.pipeline_mode<synchronous>, transform_indices = @transform_7, window_bounds = array<i64: 32, 32>}, {pipeline_mode = #tpu.pipeline_mode<synchronous>, transform_indices = @transform_8, window_bounds = array<i64: 1, 32>}, {transform_indices = @transform_9, window_bounds = array<i64: 32, 64>}]} {
    %c0 = arith.constant 0 : index
    %c0_0 = arith.constant 0 : index
    %0 = vector.load %arg1[%c0, %c0_0] : memref<32x100xbf16, #tpu.memory_space<vmem>>, vector<32x100xbf16>
    %c0_1 = arith.constant 0 : index
    %c0_2 = arith.constant 0 : index
    %1 = vector.load %arg2[%c0_1, %c0_2] : memref<100x65xbf16, #tpu.memory_space<vmem>>, vector<100x65xbf16>
    %cst = arith.constant dense<0.000000e+00> : vector<32x65xf32>
    %2 = tpu.matmul %0, %1, %cst {dimension_numbers = #tpu.dot_dimension_numbers<[1], [0], [0], [1], [0, 0, 1, 1], [], []>} : vector<32x100xbf16>, vector<100x65xbf16>, vector<32x65xf32> -> vector<32x65xf32>
    %c0_3 = arith.constant 0 : index
    %c0_4 = arith.constant 0 : index
    %3 = vector.load %arg3[%c0_3, %c0_4] : memref<1x65xf32, #tpu.memory_space<vmem>>, vector<1x65xf32>
    %4 = vector.broadcast %3 : vector<1x65xf32> to vector<32x65xf32>
    %5 = arith.addf %2, %4 : vector<32x65xf32>
    %6 = vector.extract_strided_slice %5 {offsets = [0, 0], sizes = [32, 32], strides = [1, 1]} : vector<32x65xf32> to vector<32x32xf32>
    %7 = vector.extract_strided_slice %5 {offsets = [0, 32], sizes = [32, 32], strides = [1, 1]} : vector<32x65xf32> to vector<32x32xf32>
    %8 = vector.extract_strided_slice %5 {offsets = [0, 64], sizes = [32, 1], strides = [1, 1]} : vector<32x65xf32> to vector<32x1xf32>
    %9 = arith.negf %8 : vector<32x1xf32>
    %10 = math.exp %9 : vector<32x1xf32>
    %cst_5 = arith.constant 1.000000e+00 : f32
    %11 = vector.broadcast %cst_5 : f32 to vector<32x1xf32>
    %12 = arith.addf %11, %10 : vector<32x1xf32>
    %13 = arith.divf %11, %12 : vector<32x1xf32>
    %c0_6 = arith.constant 0 : index
    %c0_7 = arith.constant 0 : index
    %14 = vector.load %arg4[%c0_6, %c0_7] : memref<1x64xf32, #tpu.memory_space<vmem>>, vector<1x32xf32>
    %c0_8 = arith.constant 0 : index
    %c0_9 = arith.constant 0 : index
    %15 = vector.load %arg5[%c0_8, %c0_9] : memref<1x64xf32, #tpu.memory_space<vmem>>, vector<1x32xf32>
    %cst_10 = arith.constant dense<0.000000e+00> : vector<32xf32>
    %16 = vector.multi_reduction <add>, %6, %cst_10 [1] : vector<32x32xf32> to vector<32xf32>
    %17 = vector.shape_cast %16 : vector<32xf32> to vector<32x1xf32>
    %cst_11 = arith.constant 3.200000e+01 : f32
    %18 = vector.broadcast %cst_11 : f32 to vector<32x1xf32>
    %19 = arith.divf %17, %18 : vector<32x1xf32>
    %20 = arith.mulf %6, %6 : vector<32x32xf32>
    %cst_12 = arith.constant dense<0.000000e+00> : vector<32xf32>
    %21 = vector.multi_reduction <add>, %20, %cst_12 [1] : vector<32x32xf32> to vector<32xf32>
    %22 = vector.shape_cast %21 : vector<32xf32> to vector<32x1xf32>
    %cst_13 = arith.constant 3.200000e+01 : f32
    %23 = vector.broadcast %cst_13 : f32 to vector<32x1xf32>
    %24 = arith.divf %22, %23 : vector<32x1xf32>
    %25 = arith.mulf %19, %19 : vector<32x1xf32>
    %26 = arith.subf %24, %25 : vector<32x1xf32>
    %cst_14 = arith.constant 0.000000e+00 : f32
    %27 = vector.broadcast %cst_14 : f32 to vector<32x1xf32>
    %28 = arith.maximumf %26, %27 : vector<32x1xf32>
    %29 = vector.broadcast %19 : vector<32x1xf32> to vector<32x32xf32>
    %30 = arith.subf %6, %29 : vector<32x32xf32>
    %cst_15 = arith.constant 9.99999974E-6 : f32
    %31 = vector.broadcast %cst_15 : f32 to vector<32x1xf32>
    %32 = arith.addf %28, %31 : vector<32x1xf32>
    %33 = math.rsqrt %32 : vector<32x1xf32>
    %34 = vector.broadcast %33 : vector<32x1xf32> to vector<32x32xf32>
    %35 = arith.mulf %30, %34 : vector<32x32xf32>
    %36 = vector.broadcast %14 : vector<1x32xf32> to vector<32x32xf32>
    %37 = arith.mulf %35, %36 : vector<32x32xf32>
    %38 = vector.broadcast %15 : vector<1x32xf32> to vector<32x32xf32>
    %39 = arith.addf %37, %38 : vector<32x32xf32>
    %cst_16 = arith.constant 0.000000e+00 : f32
    %40 = vector.broadcast %cst_16 : f32 to vector<32x32xf32>
    %41 = arith.maximumf %39, %40 : vector<32x32xf32>
    %42 = arith.truncf %41 : vector<32x32xf32> to vector<32x32xbf16>
    %c0_17 = arith.constant 0 : index
    %c32 = arith.constant 32 : index
    %43 = vector.load %arg4[%c0_17, %c32] : memref<1x64xf32, #tpu.memory_space<vmem>>, vector<1x32xf32>
    %c0_18 = arith.constant 0 : index
    %c32_19 = arith.constant 32 : index
    %44 = vector.load %arg5[%c0_18, %c32_19] : memref<1x64xf32, #tpu.memory_space<vmem>>, vector<1x32xf32>
    %cst_20 = arith.constant dense<0.000000e+00> : vector<32xf32>
    %45 = vector.multi_reduction <add>, %7, %cst_20 [1] : vector<32x32xf32> to vector<32xf32>
    %46 = vector.shape_cast %45 : vector<32xf32> to vector<32x1xf32>
    %cst_21 = arith.constant 3.200000e+01 : f32
    %47 = vector.broadcast %cst_21 : f32 to vector<32x1xf32>
    %48 = arith.divf %46, %47 : vector<32x1xf32>
    %49 = arith.mulf %7, %7 : vector<32x32xf32>
    %cst_22 = arith.constant dense<0.000000e+00> : vector<32xf32>
    %50 = vector.multi_reduction <add>, %49, %cst_22 [1] : vector<32x32xf32> to vector<32xf32>
    %51 = vector.shape_cast %50 : vector<32xf32> to vector<32x1xf32>
    %cst_23 = arith.constant 3.200000e+01 : f32
    %52 = vector.broadcast %cst_23 : f32 to vector<32x1xf32>
    %53 = arith.divf %51, %52 : vector<32x1xf32>
    %54 = arith.mulf %48, %48 : vector<32x1xf32>
    %55 = arith.subf %53, %54 : vector<32x1xf32>
    %cst_24 = arith.constant 0.000000e+00 : f32
    %56 = vector.broadcast %cst_24 : f32 to vector<32x1xf32>
    %57 = arith.maximumf %55, %56 : vector<32x1xf32>
    %58 = vector.broadcast %48 : vector<32x1xf32> to vector<32x32xf32>
    %59 = arith.subf %7, %58 : vector<32x32xf32>
    %cst_25 = arith.constant 9.99999974E-6 : f32
    %60 = vector.broadcast %cst_25 : f32 to vector<32x1xf32>
    %61 = arith.addf %57, %60 : vector<32x1xf32>
    %62 = math.rsqrt %61 : vector<32x1xf32>
    %63 = vector.broadcast %62 : vector<32x1xf32> to vector<32x32xf32>
    %64 = arith.mulf %59, %63 : vector<32x32xf32>
    %65 = vector.broadcast %43 : vector<1x32xf32> to vector<32x32xf32>
    %66 = arith.mulf %64, %65 : vector<32x32xf32>
    %67 = vector.broadcast %44 : vector<1x32xf32> to vector<32x32xf32>
    %68 = arith.addf %66, %67 : vector<32x32xf32>
    %cst_26 = arith.constant 0.000000e+00 : f32
    %69 = vector.broadcast %cst_26 : f32 to vector<32x32xf32>
    %70 = arith.maximumf %68, %69 : vector<32x32xf32>
    %71 = arith.truncf %70 : vector<32x32xf32> to vector<32x32xbf16>
    %c0_27 = arith.constant 0 : index
    %c0_28 = arith.constant 0 : index
    %72 = vector.load %arg6[%c0_27, %c0_28] : memref<32x32xbf16, #tpu.memory_space<vmem>>, vector<32x32xbf16>
    %cst_29 = arith.constant dense<0.000000e+00> : vector<32x32xf32>
    %73 = tpu.matmul %42, %72, %cst_29 {dimension_numbers = #tpu.dot_dimension_numbers<[1], [0], [0], [1], [0, 0, 1, 1], [], []>} : vector<32x32xbf16>, vector<32x32xbf16>, vector<32x32xf32> -> vector<32x32xf32>
    %c0_30 = arith.constant 0 : index
    %c0_31 = arith.constant 0 : index
    %74 = vector.load %arg7[%c0_30, %c0_31] : memref<1x32xf32, #tpu.memory_space<vmem>>, vector<1x32xf32>
    %75 = vector.broadcast %74 : vector<1x32xf32> to vector<32x32xf32>
    %76 = arith.addf %73, %75 : vector<32x32xf32>
    %c0_32 = arith.constant 0 : index
    %c0_33 = arith.constant 0 : index
    %77 = vector.load %arg8[%c0_32, %c0_33] : memref<32x32xbf16, #tpu.memory_space<vmem>>, vector<32x32xbf16>
    %cst_34 = arith.constant dense<0.000000e+00> : vector<32x32xf32>
    %78 = tpu.matmul %71, %77, %cst_34 {dimension_numbers = #tpu.dot_dimension_numbers<[1], [0], [0], [1], [0, 0, 1, 1], [], []>} : vector<32x32xbf16>, vector<32x32xbf16>, vector<32x32xf32> -> vector<32x32xf32>
    %c0_35 = arith.constant 0 : index
    %c0_36 = arith.constant 0 : index
    %79 = vector.load %arg9[%c0_35, %c0_36] : memref<1x32xf32, #tpu.memory_space<vmem>>, vector<1x32xf32>
    %80 = vector.broadcast %79 : vector<1x32xf32> to vector<32x32xf32>
    %81 = arith.addf %78, %80 : vector<32x32xf32>
    %82 = vector.broadcast %13 : vector<32x1xf32> to vector<32x32xf32>
    %83 = arith.mulf %81, %82 : vector<32x32xf32>
    %84 = tpu.concatenate %76, %83 in 1 : vector<32x32xf32>, vector<32x32xf32> -> vector<32x64xf32>
    %85 = arith.truncf %84 : vector<32x64xf32> to vector<32x64xbf16>
    %c0_37 = arith.constant 0 : index
    %c0_38 = arith.constant 0 : index
    %86 = vector.load %arg10[%c0_37, %c0_38] : memref<32x64xbf16, #tpu.memory_space<vmem>>, vector<32x64xbf16>
    tpu.vector_store %arg10[%c0_37, %c0_38], %85 {strides = array<i32>} : memref<32x64xbf16, #tpu.memory_space<vmem>>, vector<32x64xbf16>,
    return
  }
  func.func @transform_0(%arg0: i32) -> (i32, i32) {
    %c0_i32 = arith.constant 0 : i32
    %c0_i32_0 = arith.constant 0 : i32
    return %arg0, %c0_i32 : i32, i32
  }
  func.func @transform_1(%arg0: i32) -> (i32, i32) {
    %c0_i32 = arith.constant 0 : i32
    %c0_i32_0 = arith.constant 0 : i32
    %c0_i32_1 = arith.constant 0 : i32
    return %c0_i32, %c0_i32_0 : i32, i32
  }
  func.func @transform_2(%arg0: i32) -> (i32, i32) {
    %c0_i32 = arith.constant 0 : i32
    %c0_i32_0 = arith.constant 0 : i32
    %c0_i32_1 = arith.constant 0 : i32
    return %c0_i32, %c0_i32_0 : i32, i32
  }
  func.func @transform_3(%arg0: i32) -> (i32, i32) {
    %c0_i32 = arith.constant 0 : i32
    %c0_i32_0 = arith.constant 0 : i32
    %c0_i32_1 = arith.constant 0 : i32
    return %c0_i32, %c0_i32_0 : i32, i32
  }
  func.func @transform_4(%arg0: i32) -> (i32, i32) {
    %c0_i32 = arith.constant 0 : i32
    %c0_i32_0 = arith.constant 0 : i32
    %c0_i32_1 = arith.constant 0 : i32
    return %c0_i32, %c0_i32_0 : i32, i32
  }
  func.func @transform_5(%arg0: i32) -> (i32, i32) {
    %c0_i32 = arith.constant 0 : i32
    %c0_i32_0 = arith.constant 0 : i32
    %c0_i32_1 = arith.constant 0 : i32
    return %c0_i32, %c0_i32_0 : i32, i32
  }
  func.func @transform_6(%arg0: i32) -> (i32, i32) {
    %c0_i32 = arith.constant 0 : i32
    %c0_i32_0 = arith.constant 0 : i32
    %c0_i32_1 = arith.constant 0 : i32
    return %c0_i32, %c0_i32_0 : i32, i32
  }
  func.func @transform_7(%arg0: i32) -> (i32, i32) {
    %c0_i32 = arith.constant 0 : i32
    %c0_i32_0 = arith.constant 0 : i32
    %c0_i32_1 = arith.constant 0 : i32
    return %c0_i32, %c0_i32_0 : i32, i32
  }
  func.func @transform_8(%arg0: i32) -> (i32, i32) {
    %c0_i32 = arith.constant 0 : i32
    %c0_i32_0 = arith.constant 0 : i32
    %c0_i32_1 = arith.constant 0 : i32
    return %c0_i32, %c0_i32_0 : i32, i32
  }
  func.func @transform_9(%arg0: i32) -> (i32, i32) {
    %c0_i32 = arith.constant 0 : i32
    %c0_i32_0 = arith.constant 0 : i32
    return %arg0, %c0_i32 : i32, i32
  }
}

module attributes {stable_mosaic.version = 11 : i64} {
  func.func @_mlp_kernel(%arg0: i32, %arg1: memref<16x32xbf16, #tpu.memory_space<vmem>>, %arg2: memref<32x32xbf16, #tpu.memory_space<vmem>>, %arg3: memref<1x32xf32, #tpu.memory_space<vmem>>, %arg4: memref<1x32xf32, #tpu.memory_space<vmem>>, %arg5: memref<1x32xf32, #tpu.memory_space<vmem>>, %arg6: memref<32x32xbf16, #tpu.memory_space<vmem>>, %arg7: memref<1x32xf32, #tpu.memory_space<vmem>>, %arg8: memref<16x32xbf16, #tpu.memory_space<vmem>>) attributes {dimension_semantics = [#tpu.dimension_semantics<parallel>], iteration_bounds = array<i64: 1>, scalar_prefetch = 0 : i64, scratch_operands = 0 : i64, tpu.core_type = #tpu.core_type<tc>, window_params = [{transform_indices = @transform_0, window_bounds = array<i64: 16, 32>}, {pipeline_mode = #tpu.pipeline_mode<synchronous>, transform_indices = @transform_1, window_bounds = array<i64: 32, 32>}, {pipeline_mode = #tpu.pipeline_mode<synchronous>, transform_indices = @transform_2, window_bounds = array<i64: 1, 32>}, {pipeline_mode = #tpu.pipeline_mode<synchronous>, transform_indices = @transform_3, window_bounds = array<i64: 1, 32>}, {pipeline_mode = #tpu.pipeline_mode<synchronous>, transform_indices = @transform_4, window_bounds = array<i64: 1, 32>}, {pipeline_mode = #tpu.pipeline_mode<synchronous>, transform_indices = @transform_5, window_bounds = array<i64: 32, 32>}, {pipeline_mode = #tpu.pipeline_mode<synchronous>, transform_indices = @transform_6, window_bounds = array<i64: 1, 32>}, {transform_indices = @transform_7, window_bounds = array<i64: 16, 32>}]} {
    %c0 = arith.constant 0 : index
    %c0_0 = arith.constant 0 : index
    %0 = vector.load %arg1[%c0, %c0_0] : memref<16x32xbf16, #tpu.memory_space<vmem>>, vector<16x32xbf16>
    %c0_1 = arith.constant 0 : index
    %c0_2 = arith.constant 0 : index
    %1 = vector.load %arg2[%c0_1, %c0_2] : memref<32x32xbf16, #tpu.memory_space<vmem>>, vector<32x32xbf16>
    %cst = arith.constant dense<0.000000e+00> : vector<16x32xf32>
    %2 = tpu.matmul %0, %1, %cst {dimension_numbers = #tpu.dot_dimension_numbers<[1], [0], [0], [1], [0, 0, 1, 1], [], []>} : vector<16x32xbf16>, vector<32x32xbf16>, vector<16x32xf32> -> vector<16x32xf32>
    %c0_3 = arith.constant 0 : index
    %c0_4 = arith.constant 0 : index
    %3 = vector.load %arg3[%c0_3, %c0_4] : memref<1x32xf32, #tpu.memory_space<vmem>>, vector<1x32xf32>
    %4 = vector.broadcast %3 : vector<1x32xf32> to vector<16x32xf32>
    %5 = arith.addf %2, %4 : vector<16x32xf32>
    %cst_5 = arith.constant dense<0.000000e+00> : vector<16xf32>
    %6 = vector.multi_reduction <add>, %5, %cst_5 [1] : vector<16x32xf32> to vector<16xf32>
    %7 = vector.shape_cast %6 : vector<16xf32> to vector<16x1xf32>
    %cst_6 = arith.constant 3.200000e+01 : f32
    %8 = vector.broadcast %cst_6 : f32 to vector<16x1xf32>
    %9 = arith.divf %7, %8 : vector<16x1xf32>
    %10 = arith.mulf %5, %5 : vector<16x32xf32>
    %cst_7 = arith.constant dense<0.000000e+00> : vector<16xf32>
    %11 = vector.multi_reduction <add>, %10, %cst_7 [1] : vector<16x32xf32> to vector<16xf32>
    %12 = vector.shape_cast %11 : vector<16xf32> to vector<16x1xf32>
    %cst_8 = arith.constant 3.200000e+01 : f32
    %13 = vector.broadcast %cst_8 : f32 to vector<16x1xf32>
    %14 = arith.divf %12, %13 : vector<16x1xf32>
    %15 = arith.mulf %9, %9 : vector<16x1xf32>
    %16 = arith.subf %14, %15 : vector<16x1xf32>
    %cst_9 = arith.constant 0.000000e+00 : f32
    %17 = vector.broadcast %cst_9 : f32 to vector<16x1xf32>
    %18 = arith.maximumf %16, %17 : vector<16x1xf32>
    %19 = vector.broadcast %9 : vector<16x1xf32> to vector<16x32xf32>
    %20 = arith.subf %5, %19 : vector<16x32xf32>
    %cst_10 = arith.constant 9.99999974E-6 : f32
    %21 = vector.broadcast %cst_10 : f32 to vector<16x1xf32>
    %22 = arith.addf %18, %21 : vector<16x1xf32>
    %23 = math.rsqrt %22 : vector<16x1xf32>
    %24 = vector.broadcast %23 : vector<16x1xf32> to vector<16x32xf32>
    %25 = arith.mulf %20, %24 : vector<16x32xf32>
    %c0_11 = arith.constant 0 : index
    %c0_12 = arith.constant 0 : index
    %26 = vector.load %arg4[%c0_11, %c0_12] : memref<1x32xf32, #tpu.memory_space<vmem>>, vector<1x32xf32>
    %27 = vector.broadcast %26 : vector<1x32xf32> to vector<16x32xf32>
    %28 = arith.mulf %25, %27 : vector<16x32xf32>
    %c0_13 = arith.constant 0 : index
    %c0_14 = arith.constant 0 : index
    %29 = vector.load %arg5[%c0_13, %c0_14] : memref<1x32xf32, #tpu.memory_space<vmem>>, vector<1x32xf32>
    %30 = vector.broadcast %29 : vector<1x32xf32> to vector<16x32xf32>
    %31 = arith.addf %28, %30 : vector<16x32xf32>
    %cst_15 = arith.constant 0.000000e+00 : f32
    %32 = vector.broadcast %cst_15 : f32 to vector<16x32xf32>
    %33 = arith.maximumf %31, %32 : vector<16x32xf32>
    %34 = arith.truncf %33 : vector<16x32xf32> to vector<16x32xbf16>
    %c0_16 = arith.constant 0 : index
    %c0_17 = arith.constant 0 : index
    %35 = vector.load %arg6[%c0_16, %c0_17] : memref<32x32xbf16, #tpu.memory_space<vmem>>, vector<32x32xbf16>
    %cst_18 = arith.constant dense<0.000000e+00> : vector<16x32xf32>
    %36 = tpu.matmul %34, %35, %cst_18 {dimension_numbers = #tpu.dot_dimension_numbers<[1], [0], [0], [1], [0, 0, 1, 1], [], []>} : vector<16x32xbf16>, vector<32x32xbf16>, vector<16x32xf32> -> vector<16x32xf32>
    %c0_19 = arith.constant 0 : index
    %c0_20 = arith.constant 0 : index
    %37 = vector.load %arg7[%c0_19, %c0_20] : memref<1x32xf32, #tpu.memory_space<vmem>>, vector<1x32xf32>
    %38 = vector.broadcast %37 : vector<1x32xf32> to vector<16x32xf32>
    %39 = arith.addf %36, %38 : vector<16x32xf32>
    %40 = arith.truncf %39 : vector<16x32xf32> to vector<16x32xbf16>
    %c0_21 = arith.constant 0 : index
    %c0_22 = arith.constant 0 : index
    %41 = vector.load %arg8[%c0_21, %c0_22] : memref<16x32xbf16, #tpu.memory_space<vmem>>, vector<16x32xbf16>
    tpu.vector_store %arg8[%c0_21, %c0_22], %40 {strides = array<i32>} : memref<16x32xbf16, #tpu.memory_space<vmem>>, vector<16x32xbf16>,
    return
  }
  func.func @transform_0(%arg0: i32) -> (i32, i32) {
    %c0_i32 = arith.constant 0 : i32
    %c0_i32_0 = arith.constant 0 : i32
    return %arg0, %c0_i32 : i32, i32
  }
  func.func @transform_1(%arg0: i32) -> (i32, i32) {
    %c0_i32 = arith.constant 0 : i32
    %c0_i32_0 = arith.constant 0 : i32
    %c0_i32_1 = arith.constant 0 : i32
    return %c0_i32, %c0_i32_0 : i32, i32
  }
  func.func @transform_2(%arg0: i32) -> (i32, i32) {
    %c0_i32 = arith.constant 0 : i32
    %c0_i32_0 = arith.constant 0 : i32
    %c0_i32_1 = arith.constant 0 : i32
    return %c0_i32, %c0_i32_0 : i32, i32
  }
  func.func @transform_3(%arg0: i32) -> (i32, i32) {
    %c0_i32 = arith.constant 0 : i32
    %c0_i32_0 = arith.constant 0 : i32
    %c0_i32_1 = arith.constant 0 : i32
    return %c0_i32, %c0_i32_0 : i32, i32
  }
  func.func @transform_4(%arg0: i32) -> (i32, i32) {
    %c0_i32 = arith.constant 0 : i32
    %c0_i32_0 = arith.constant 0 : i32
    %c0_i32_1 = arith.constant 0 : i32
    return %c0_i32, %c0_i32_0 : i32, i32
  }
  func.func @transform_5(%arg0: i32) -> (i32, i32) {
    %c0_i32 = arith.constant 0 : i32
    %c0_i32_0 = arith.constant 0 : i32
    %c0_i32_1 = arith.constant 0 : i32
    return %c0_i32, %c0_i32_0 : i32, i32
  }
  func.func @transform_6(%arg0: i32) -> (i32, i32) {
    %c0_i32 = arith.constant 0 : i32
    %c0_i32_0 = arith.constant 0 : i32
    %c0_i32_1 = arith.constant 0 : i32
    return %c0_i32, %c0_i32_0 : i32, i32
  }
  func.func @transform_7(%arg0: i32) -> (i32, i32) {
    %c0_i32 = arith.constant 0 : i32
    %c0_i32_0 = arith.constant 0 : i32
    return %arg0, %c0_i32 : i32, i32
  }
}

module attributes {stable_mosaic.version = 11 : i64} {
  func.func @_mlp_kernel(%arg0: i32, %arg1: memref<16x64xbf16, #tpu.memory_space<vmem>>, %arg2: memref<64x32xbf16, #tpu.memory_space<vmem>>, %arg3: memref<1x32xf32, #tpu.memory_space<vmem>>, %arg4: memref<1x32xf32, #tpu.memory_space<vmem>>, %arg5: memref<1x32xf32, #tpu.memory_space<vmem>>, %arg6: memref<32x32xbf16, #tpu.memory_space<vmem>>, %arg7: memref<1x32xf32, #tpu.memory_space<vmem>>, %arg8: memref<16x32xbf16, #tpu.memory_space<vmem>>) attributes {dimension_semantics = [#tpu.dimension_semantics<parallel>], iteration_bounds = array<i64: 1>, scalar_prefetch = 0 : i64, scratch_operands = 0 : i64, tpu.core_type = #tpu.core_type<tc>, window_params = [{transform_indices = @transform_0, window_bounds = array<i64: 16, 64>}, {pipeline_mode = #tpu.pipeline_mode<synchronous>, transform_indices = @transform_1, window_bounds = array<i64: 64, 32>}, {pipeline_mode = #tpu.pipeline_mode<synchronous>, transform_indices = @transform_2, window_bounds = array<i64: 1, 32>}, {pipeline_mode = #tpu.pipeline_mode<synchronous>, transform_indices = @transform_3, window_bounds = array<i64: 1, 32>}, {pipeline_mode = #tpu.pipeline_mode<synchronous>, transform_indices = @transform_4, window_bounds = array<i64: 1, 32>}, {pipeline_mode = #tpu.pipeline_mode<synchronous>, transform_indices = @transform_5, window_bounds = array<i64: 32, 32>}, {pipeline_mode = #tpu.pipeline_mode<synchronous>, transform_indices = @transform_6, window_bounds = array<i64: 1, 32>}, {transform_indices = @transform_7, window_bounds = array<i64: 16, 32>}]} {
    %c0 = arith.constant 0 : index
    %c0_0 = arith.constant 0 : index
    %0 = vector.load %arg1[%c0, %c0_0] : memref<16x64xbf16, #tpu.memory_space<vmem>>, vector<16x64xbf16>
    %c0_1 = arith.constant 0 : index
    %c0_2 = arith.constant 0 : index
    %1 = vector.load %arg2[%c0_1, %c0_2] : memref<64x32xbf16, #tpu.memory_space<vmem>>, vector<64x32xbf16>
    %cst = arith.constant dense<0.000000e+00> : vector<16x32xf32>
    %2 = tpu.matmul %0, %1, %cst {dimension_numbers = #tpu.dot_dimension_numbers<[1], [0], [0], [1], [0, 0, 1, 1], [], []>} : vector<16x64xbf16>, vector<64x32xbf16>, vector<16x32xf32> -> vector<16x32xf32>
    %c0_3 = arith.constant 0 : index
    %c0_4 = arith.constant 0 : index
    %3 = vector.load %arg3[%c0_3, %c0_4] : memref<1x32xf32, #tpu.memory_space<vmem>>, vector<1x32xf32>
    %4 = vector.broadcast %3 : vector<1x32xf32> to vector<16x32xf32>
    %5 = arith.addf %2, %4 : vector<16x32xf32>
    %cst_5 = arith.constant dense<0.000000e+00> : vector<16xf32>
    %6 = vector.multi_reduction <add>, %5, %cst_5 [1] : vector<16x32xf32> to vector<16xf32>
    %7 = vector.shape_cast %6 : vector<16xf32> to vector<16x1xf32>
    %cst_6 = arith.constant 3.200000e+01 : f32
    %8 = vector.broadcast %cst_6 : f32 to vector<16x1xf32>
    %9 = arith.divf %7, %8 : vector<16x1xf32>
    %10 = arith.mulf %5, %5 : vector<16x32xf32>
    %cst_7 = arith.constant dense<0.000000e+00> : vector<16xf32>
    %11 = vector.multi_reduction <add>, %10, %cst_7 [1] : vector<16x32xf32> to vector<16xf32>
    %12 = vector.shape_cast %11 : vector<16xf32> to vector<16x1xf32>
    %cst_8 = arith.constant 3.200000e+01 : f32
    %13 = vector.broadcast %cst_8 : f32 to vector<16x1xf32>
    %14 = arith.divf %12, %13 : vector<16x1xf32>
    %15 = arith.mulf %9, %9 : vector<16x1xf32>
    %16 = arith.subf %14, %15 : vector<16x1xf32>
    %cst_9 = arith.constant 0.000000e+00 : f32
    %17 = vector.broadcast %cst_9 : f32 to vector<16x1xf32>
    %18 = arith.maximumf %16, %17 : vector<16x1xf32>
    %19 = vector.broadcast %9 : vector<16x1xf32> to vector<16x32xf32>
    %20 = arith.subf %5, %19 : vector<16x32xf32>
    %cst_10 = arith.constant 9.99999974E-6 : f32
    %21 = vector.broadcast %cst_10 : f32 to vector<16x1xf32>
    %22 = arith.addf %18, %21 : vector<16x1xf32>
    %23 = math.rsqrt %22 : vector<16x1xf32>
    %24 = vector.broadcast %23 : vector<16x1xf32> to vector<16x32xf32>
    %25 = arith.mulf %20, %24 : vector<16x32xf32>
    %c0_11 = arith.constant 0 : index
    %c0_12 = arith.constant 0 : index
    %26 = vector.load %arg4[%c0_11, %c0_12] : memref<1x32xf32, #tpu.memory_space<vmem>>, vector<1x32xf32>
    %27 = vector.broadcast %26 : vector<1x32xf32> to vector<16x32xf32>
    %28 = arith.mulf %25, %27 : vector<16x32xf32>
    %c0_13 = arith.constant 0 : index
    %c0_14 = arith.constant 0 : index
    %29 = vector.load %arg5[%c0_13, %c0_14] : memref<1x32xf32, #tpu.memory_space<vmem>>, vector<1x32xf32>
    %30 = vector.broadcast %29 : vector<1x32xf32> to vector<16x32xf32>
    %31 = arith.addf %28, %30 : vector<16x32xf32>
    %cst_15 = arith.constant 0.000000e+00 : f32
    %32 = vector.broadcast %cst_15 : f32 to vector<16x32xf32>
    %33 = arith.maximumf %31, %32 : vector<16x32xf32>
    %34 = arith.truncf %33 : vector<16x32xf32> to vector<16x32xbf16>
    %c0_16 = arith.constant 0 : index
    %c0_17 = arith.constant 0 : index
    %35 = vector.load %arg6[%c0_16, %c0_17] : memref<32x32xbf16, #tpu.memory_space<vmem>>, vector<32x32xbf16>
    %cst_18 = arith.constant dense<0.000000e+00> : vector<16x32xf32>
    %36 = tpu.matmul %34, %35, %cst_18 {dimension_numbers = #tpu.dot_dimension_numbers<[1], [0], [0], [1], [0, 0, 1, 1], [], []>} : vector<16x32xbf16>, vector<32x32xbf16>, vector<16x32xf32> -> vector<16x32xf32>
    %c0_19 = arith.constant 0 : index
    %c0_20 = arith.constant 0 : index
    %37 = vector.load %arg7[%c0_19, %c0_20] : memref<1x32xf32, #tpu.memory_space<vmem>>, vector<1x32xf32>
    %38 = vector.broadcast %37 : vector<1x32xf32> to vector<16x32xf32>
    %39 = arith.addf %36, %38 : vector<16x32xf32>
    %40 = arith.truncf %39 : vector<16x32xf32> to vector<16x32xbf16>
    %c0_21 = arith.constant 0 : index
    %c0_22 = arith.constant 0 : index
    %41 = vector.load %arg8[%c0_21, %c0_22] : memref<16x32xbf16, #tpu.memory_space<vmem>>, vector<16x32xbf16>
    tpu.vector_store %arg8[%c0_21, %c0_22], %40 {strides = array<i32>} : memref<16x32xbf16, #tpu.memory_space<vmem>>, vector<16x32xbf16>,
    return
  }
  func.func @transform_0(%arg0: i32) -> (i32, i32) {
    %c0_i32 = arith.constant 0 : i32
    %c0_i32_0 = arith.constant 0 : i32
    return %arg0, %c0_i32 : i32, i32
  }
  func.func @transform_1(%arg0: i32) -> (i32, i32) {
    %c0_i32 = arith.constant 0 : i32
    %c0_i32_0 = arith.constant 0 : i32
    %c0_i32_1 = arith.constant 0 : i32
    return %c0_i32, %c0_i32_0 : i32, i32
  }
  func.func @transform_2(%arg0: i32) -> (i32, i32) {
    %c0_i32 = arith.constant 0 : i32
    %c0_i32_0 = arith.constant 0 : i32
    %c0_i32_1 = arith.constant 0 : i32
    return %c0_i32, %c0_i32_0 : i32, i32
  }
  func.func @transform_3(%arg0: i32) -> (i32, i32) {
    %c0_i32 = arith.constant 0 : i32
    %c0_i32_0 = arith.constant 0 : i32
    %c0_i32_1 = arith.constant 0 : i32
    return %c0_i32, %c0_i32_0 : i32, i32
  }
  func.func @transform_4(%arg0: i32) -> (i32, i32) {
    %c0_i32 = arith.constant 0 : i32
    %c0_i32_0 = arith.constant 0 : i32
    %c0_i32_1 = arith.constant 0 : i32
    return %c0_i32, %c0_i32_0 : i32, i32
  }
  func.func @transform_5(%arg0: i32) -> (i32, i32) {
    %c0_i32 = arith.constant 0 : i32
    %c0_i32_0 = arith.constant 0 : i32
    %c0_i32_1 = arith.constant 0 : i32
    return %c0_i32, %c0_i32_0 : i32, i32
  }
  func.func @transform_6(%arg0: i32) -> (i32, i32) {
    %c0_i32 = arith.constant 0 : i32
    %c0_i32_0 = arith.constant 0 : i32
    %c0_i32_1 = arith.constant 0 : i32
    return %c0_i32, %c0_i32_0 : i32, i32
  }
  func.func @transform_7(%arg0: i32) -> (i32, i32) {
    %c0_i32 = arith.constant 0 : i32
    %c0_i32_0 = arith.constant 0 : i32
    return %arg0, %c0_i32 : i32, i32
  }
}

module attributes {stable_mosaic.version = 11 : i64} {
  func.func @_fused_kv_kernel(%arg0: i32, %arg1: memref<32x100xbf16, #tpu.memory_space<vmem>>, %arg2: memref<100x65xbf16, #tpu.memory_space<vmem>>, %arg3: memref<1x65xf32, #tpu.memory_space<vmem>>, %arg4: memref<1x64xf32, #tpu.memory_space<vmem>>, %arg5: memref<1x64xf32, #tpu.memory_space<vmem>>, %arg6: memref<32x32xbf16, #tpu.memory_space<vmem>>, %arg7: memref<1x32xf32, #tpu.memory_space<vmem>>, %arg8: memref<32x4xbf16, #tpu.memory_space<vmem>>, %arg9: memref<1x4xf32, #tpu.memory_space<vmem>>, %arg10: memref<32x36xbf16, #tpu.memory_space<vmem>>) attributes {dimension_semantics = [#tpu.dimension_semantics<parallel>], iteration_bounds = array<i64: 2>, scalar_prefetch = 0 : i64, scratch_operands = 0 : i64, tpu.core_type = #tpu.core_type<tc>, window_params = [{transform_indices = @transform_0, window_bounds = array<i64: 32, 100>}, {pipeline_mode = #tpu.pipeline_mode<synchronous>, transform_indices = @transform_1, window_bounds = array<i64: 100, 65>}, {pipeline_mode = #tpu.pipeline_mode<synchronous>, transform_indices = @transform_2, window_bounds = array<i64: 1, 65>}, {pipeline_mode = #tpu.pipeline_mode<synchronous>, transform_indices = @transform_3, window_bounds = array<i64: 1, 64>}, {pipeline_mode = #tpu.pipeline_mode<synchronous>, transform_indices = @transform_4, window_bounds = array<i64: 1, 64>}, {pipeline_mode = #tpu.pipeline_mode<synchronous>, transform_indices = @transform_5, window_bounds = array<i64: 32, 32>}, {pipeline_mode = #tpu.pipeline_mode<synchronous>, transform_indices = @transform_6, window_bounds = array<i64: 1, 32>}, {pipeline_mode = #tpu.pipeline_mode<synchronous>, transform_indices = @transform_7, window_bounds = array<i64: 32, 4>}, {pipeline_mode = #tpu.pipeline_mode<synchronous>, transform_indices = @transform_8, window_bounds = array<i64: 1, 4>}, {transform_indices = @transform_9, window_bounds = array<i64: 32, 36>}]} {
    %c0 = arith.constant 0 : index
    %c0_0 = arith.constant 0 : index
    %0 = vector.load %arg1[%c0, %c0_0] : memref<32x100xbf16, #tpu.memory_space<vmem>>, vector<32x100xbf16>
    %c0_1 = arith.constant 0 : index
    %c0_2 = arith.constant 0 : index
    %1 = vector.load %arg2[%c0_1, %c0_2] : memref<100x65xbf16, #tpu.memory_space<vmem>>, vector<100x65xbf16>
    %cst = arith.constant dense<0.000000e+00> : vector<32x65xf32>
    %2 = tpu.matmul %0, %1, %cst {dimension_numbers = #tpu.dot_dimension_numbers<[1], [0], [0], [1], [0, 0, 1, 1], [], []>} : vector<32x100xbf16>, vector<100x65xbf16>, vector<32x65xf32> -> vector<32x65xf32>
    %c0_3 = arith.constant 0 : index
    %c0_4 = arith.constant 0 : index
    %3 = vector.load %arg3[%c0_3, %c0_4] : memref<1x65xf32, #tpu.memory_space<vmem>>, vector<1x65xf32>
    %4 = vector.broadcast %3 : vector<1x65xf32> to vector<32x65xf32>
    %5 = arith.addf %2, %4 : vector<32x65xf32>
    %6 = vector.extract_strided_slice %5 {offsets = [0, 0], sizes = [32, 32], strides = [1, 1]} : vector<32x65xf32> to vector<32x32xf32>
    %7 = vector.extract_strided_slice %5 {offsets = [0, 32], sizes = [32, 32], strides = [1, 1]} : vector<32x65xf32> to vector<32x32xf32>
    %8 = vector.extract_strided_slice %5 {offsets = [0, 64], sizes = [32, 1], strides = [1, 1]} : vector<32x65xf32> to vector<32x1xf32>
    %9 = arith.negf %8 : vector<32x1xf32>
    %10 = math.exp %9 : vector<32x1xf32>
    %cst_5 = arith.constant 1.000000e+00 : f32
    %11 = vector.broadcast %cst_5 : f32 to vector<32x1xf32>
    %12 = arith.addf %11, %10 : vector<32x1xf32>
    %13 = arith.divf %11, %12 : vector<32x1xf32>
    %c0_6 = arith.constant 0 : index
    %c0_7 = arith.constant 0 : index
    %14 = vector.load %arg4[%c0_6, %c0_7] : memref<1x64xf32, #tpu.memory_space<vmem>>, vector<1x32xf32>
    %c0_8 = arith.constant 0 : index
    %c0_9 = arith.constant 0 : index
    %15 = vector.load %arg5[%c0_8, %c0_9] : memref<1x64xf32, #tpu.memory_space<vmem>>, vector<1x32xf32>
    %cst_10 = arith.constant dense<0.000000e+00> : vector<32xf32>
    %16 = vector.multi_reduction <add>, %6, %cst_10 [1] : vector<32x32xf32> to vector<32xf32>
    %17 = vector.shape_cast %16 : vector<32xf32> to vector<32x1xf32>
    %cst_11 = arith.constant 3.200000e+01 : f32
    %18 = vector.broadcast %cst_11 : f32 to vector<32x1xf32>
    %19 = arith.divf %17, %18 : vector<32x1xf32>
    %20 = arith.mulf %6, %6 : vector<32x32xf32>
    %cst_12 = arith.constant dense<0.000000e+00> : vector<32xf32>
    %21 = vector.multi_reduction <add>, %20, %cst_12 [1] : vector<32x32xf32> to vector<32xf32>
    %22 = vector.shape_cast %21 : vector<32xf32> to vector<32x1xf32>
    %cst_13 = arith.constant 3.200000e+01 : f32
    %23 = vector.broadcast %cst_13 : f32 to vector<32x1xf32>
    %24 = arith.divf %22, %23 : vector<32x1xf32>
    %25 = arith.mulf %19, %19 : vector<32x1xf32>
    %26 = arith.subf %24, %25 : vector<32x1xf32>
    %cst_14 = arith.constant 0.000000e+00 : f32
    %27 = vector.broadcast %cst_14 : f32 to vector<32x1xf32>
    %28 = arith.maximumf %26, %27 : vector<32x1xf32>
    %29 = vector.broadcast %19 : vector<32x1xf32> to vector<32x32xf32>
    %30 = arith.subf %6, %29 : vector<32x32xf32>
    %cst_15 = arith.constant 9.99999974E-6 : f32
    %31 = vector.broadcast %cst_15 : f32 to vector<32x1xf32>
    %32 = arith.addf %28, %31 : vector<32x1xf32>
    %33 = math.rsqrt %32 : vector<32x1xf32>
    %34 = vector.broadcast %33 : vector<32x1xf32> to vector<32x32xf32>
    %35 = arith.mulf %30, %34 : vector<32x32xf32>
    %36 = vector.broadcast %14 : vector<1x32xf32> to vector<32x32xf32>
    %37 = arith.mulf %35, %36 : vector<32x32xf32>
    %38 = vector.broadcast %15 : vector<1x32xf32> to vector<32x32xf32>
    %39 = arith.addf %37, %38 : vector<32x32xf32>
    %cst_16 = arith.constant 0.000000e+00 : f32
    %40 = vector.broadcast %cst_16 : f32 to vector<32x32xf32>
    %41 = arith.maximumf %39, %40 : vector<32x32xf32>
    %42 = arith.truncf %41 : vector<32x32xf32> to vector<32x32xbf16>
    %c0_17 = arith.constant 0 : index
    %c32 = arith.constant 32 : index
    %43 = vector.load %arg4[%c0_17, %c32] : memref<1x64xf32, #tpu.memory_space<vmem>>, vector<1x32xf32>
    %c0_18 = arith.constant 0 : index
    %c32_19 = arith.constant 32 : index
    %44 = vector.load %arg5[%c0_18, %c32_19] : memref<1x64xf32, #tpu.memory_space<vmem>>, vector<1x32xf32>
    %cst_20 = arith.constant dense<0.000000e+00> : vector<32xf32>
    %45 = vector.multi_reduction <add>, %7, %cst_20 [1] : vector<32x32xf32> to vector<32xf32>
    %46 = vector.shape_cast %45 : vector<32xf32> to vector<32x1xf32>
    %cst_21 = arith.constant 3.200000e+01 : f32
    %47 = vector.broadcast %cst_21 : f32 to vector<32x1xf32>
    %48 = arith.divf %46, %47 : vector<32x1xf32>
    %49 = arith.mulf %7, %7 : vector<32x32xf32>
    %cst_22 = arith.constant dense<0.000000e+00> : vector<32xf32>
    %50 = vector.multi_reduction <add>, %49, %cst_22 [1] : vector<32x32xf32> to vector<32xf32>
    %51 = vector.shape_cast %50 : vector<32xf32> to vector<32x1xf32>
    %cst_23 = arith.constant 3.200000e+01 : f32
    %52 = vector.broadcast %cst_23 : f32 to vector<32x1xf32>
    %53 = arith.divf %51, %52 : vector<32x1xf32>
    %54 = arith.mulf %48, %48 : vector<32x1xf32>
    %55 = arith.subf %53, %54 : vector<32x1xf32>
    %cst_24 = arith.constant 0.000000e+00 : f32
    %56 = vector.broadcast %cst_24 : f32 to vector<32x1xf32>
    %57 = arith.maximumf %55, %56 : vector<32x1xf32>
    %58 = vector.broadcast %48 : vector<32x1xf32> to vector<32x32xf32>
    %59 = arith.subf %7, %58 : vector<32x32xf32>
    %cst_25 = arith.constant 9.99999974E-6 : f32
    %60 = vector.broadcast %cst_25 : f32 to vector<32x1xf32>
    %61 = arith.addf %57, %60 : vector<32x1xf32>
    %62 = math.rsqrt %61 : vector<32x1xf32>
    %63 = vector.broadcast %62 : vector<32x1xf32> to vector<32x32xf32>
    %64 = arith.mulf %59, %63 : vector<32x32xf32>
    %65 = vector.broadcast %43 : vector<1x32xf32> to vector<32x32xf32>
    %66 = arith.mulf %64, %65 : vector<32x32xf32>
    %67 = vector.broadcast %44 : vector<1x32xf32> to vector<32x32xf32>
    %68 = arith.addf %66, %67 : vector<32x32xf32>
    %cst_26 = arith.constant 0.000000e+00 : f32
    %69 = vector.broadcast %cst_26 : f32 to vector<32x32xf32>
    %70 = arith.maximumf %68, %69 : vector<32x32xf32>
    %71 = arith.truncf %70 : vector<32x32xf32> to vector<32x32xbf16>
    %c0_27 = arith.constant 0 : index
    %c0_28 = arith.constant 0 : index
    %72 = vector.load %arg6[%c0_27, %c0_28] : memref<32x32xbf16, #tpu.memory_space<vmem>>, vector<32x32xbf16>
    %cst_29 = arith.constant dense<0.000000e+00> : vector<32x32xf32>
    %73 = tpu.matmul %42, %72, %cst_29 {dimension_numbers = #tpu.dot_dimension_numbers<[1], [0], [0], [1], [0, 0, 1, 1], [], []>} : vector<32x32xbf16>, vector<32x32xbf16>, vector<32x32xf32> -> vector<32x32xf32>
    %c0_30 = arith.constant 0 : index
    %c0_31 = arith.constant 0 : index
    %74 = vector.load %arg7[%c0_30, %c0_31] : memref<1x32xf32, #tpu.memory_space<vmem>>, vector<1x32xf32>
    %75 = vector.broadcast %74 : vector<1x32xf32> to vector<32x32xf32>
    %76 = arith.addf %73, %75 : vector<32x32xf32>
    %c0_32 = arith.constant 0 : index
    %c0_33 = arith.constant 0 : index
    %77 = vector.load %arg8[%c0_32, %c0_33] : memref<32x4xbf16, #tpu.memory_space<vmem>>, vector<32x4xbf16>
    %cst_34 = arith.constant dense<0.000000e+00> : vector<32x4xf32>
    %78 = tpu.matmul %71, %77, %cst_34 {dimension_numbers = #tpu.dot_dimension_numbers<[1], [0], [0], [1], [0, 0, 1, 1], [], []>} : vector<32x32xbf16>, vector<32x4xbf16>, vector<32x4xf32> -> vector<32x4xf32>
    %c0_35 = arith.constant 0 : index
    %c0_36 = arith.constant 0 : index
    %79 = vector.load %arg9[%c0_35, %c0_36] : memref<1x4xf32, #tpu.memory_space<vmem>>, vector<1x4xf32>
    %80 = vector.broadcast %79 : vector<1x4xf32> to vector<32x4xf32>
    %81 = arith.addf %78, %80 : vector<32x4xf32>
    %82 = vector.broadcast %13 : vector<32x1xf32> to vector<32x4xf32>
    %83 = arith.mulf %81, %82 : vector<32x4xf32>
    %84 = tpu.concatenate %76, %83 in 1 : vector<32x32xf32>, vector<32x4xf32> -> vector<32x36xf32>
    %85 = arith.truncf %84 : vector<32x36xf32> to vector<32x36xbf16>
    %c0_37 = arith.constant 0 : index
    %c0_38 = arith.constant 0 : index
    %86 = vector.load %arg10[%c0_37, %c0_38] : memref<32x36xbf16, #tpu.memory_space<vmem>>, vector<32x36xbf16>
    tpu.vector_store %arg10[%c0_37, %c0_38], %85 {strides = array<i32>} : memref<32x36xbf16, #tpu.memory_space<vmem>>, vector<32x36xbf16>,
    return
  }
  func.func @transform_0(%arg0: i32) -> (i32, i32) {
    %c0_i32 = arith.constant 0 : i32
    %c0_i32_0 = arith.constant 0 : i32
    return %arg0, %c0_i32 : i32, i32
  }
  func.func @transform_1(%arg0: i32) -> (i32, i32) {
    %c0_i32 = arith.constant 0 : i32
    %c0_i32_0 = arith.constant 0 : i32
    %c0_i32_1 = arith.constant 0 : i32
    return %c0_i32, %c0_i32_0 : i32, i32
  }
  func.func @transform_2(%arg0: i32) -> (i32, i32) {
    %c0_i32 = arith.constant 0 : i32
    %c0_i32_0 = arith.constant 0 : i32
    %c0_i32_1 = arith.constant 0 : i32
    return %c0_i32, %c0_i32_0 : i32, i32
  }
  func.func @transform_3(%arg0: i32) -> (i32, i32) {
    %c0_i32 = arith.constant 0 : i32
    %c0_i32_0 = arith.constant 0 : i32
    %c0_i32_1 = arith.constant 0 : i32
    return %c0_i32, %c0_i32_0 : i32, i32
  }
  func.func @transform_4(%arg0: i32) -> (i32, i32) {
    %c0_i32 = arith.constant 0 : i32
    %c0_i32_0 = arith.constant 0 : i32
    %c0_i32_1 = arith.constant 0 : i32
    return %c0_i32, %c0_i32_0 : i32, i32
  }
  func.func @transform_5(%arg0: i32) -> (i32, i32) {
    %c0_i32 = arith.constant 0 : i32
    %c0_i32_0 = arith.constant 0 : i32
    %c0_i32_1 = arith.constant 0 : i32
    return %c0_i32, %c0_i32_0 : i32, i32
  }
  func.func @transform_6(%arg0: i32) -> (i32, i32) {
    %c0_i32 = arith.constant 0 : i32
    %c0_i32_0 = arith.constant 0 : i32
    %c0_i32_1 = arith.constant 0 : i32
    return %c0_i32, %c0_i32_0 : i32, i32
  }
  func.func @transform_7(%arg0: i32) -> (i32, i32) {
    %c0_i32 = arith.constant 0 : i32
    %c0_i32_0 = arith.constant 0 : i32
    %c0_i32_1 = arith.constant 0 : i32
    return %c0_i32, %c0_i32_0 : i32, i32
  }
  func.func @transform_8(%arg0: i32) -> (i32, i32) {
    %c0_i32 = arith.constant 0 : i32
    %c0_i32_0 = arith.constant 0 : i32
    %c0_i32_1 = arith.constant 0 : i32
    return %c0_i32, %c0_i32_0 : i32, i32
  }
  func.func @transform_9(%arg0: i32) -> (i32, i32) {
    %c0_i32 = arith.constant 0 : i32
    %c0_i32_0 = arith.constant 0 : i32
    return %arg0, %c0_i32 : i32, i32
  }
}

</mosaic_0001>

<bundles_post_ra>
// kernel: attention_layer_forward.6
= control target key start
LH: loop header
LB: loop body
LE: loop exit
PB: predicated region body
PF: predicated region fallthrough
CT: control target
= control target key end

     0   :  { %12 = vsyncpa [#allocation3], 0  ;;  %s767_s0 = inlined_call_operand.hbm [shape: bf16[16,32], index: 0, kind: input, shape index: {}]   ;;  %s768_s1 = inlined_call_operand.hbm [shape: bf16[32,32], index: 1, kind: input, shape index: {}]   ;;  %s769_s2 = inlined_call_operand.hbm [shape: f32[1,32], index: 2, kind: input, shape index: {}]   ;;  %s770_s3 = inlined_call_operand.hbm [shape: f32[1,32], index: 3, kind: input, shape index: {}]   ;;  %s771_s4 = inlined_call_operand.hbm [shape: f32[1,32], index: 4, kind: input, shape index: {}]   ;;  %s772_s5 = inlined_call_operand.hbm [shape: bf16[32,32], index: 5, kind: input, shape index: {}]   ;;  %s773_s6 = inlined_call_operand.hbm [shape: f32[1,32], index: 6, kind: input, shape index: {}]   ;;  %s774_s7 = inlined_call_operand.hbm [shape: bf16[16,32], index: 7, kind: output, shape index: {}]  }
   0x1   :  { %13 = vsyncpa [#allocation6], 0 }
   0x2   :  { %14 = vsyncpa [#allocation9], 0 }
   0x3   :  { %15 = vsyncpa [#allocation12], 0 }
   0x4   :  { %16 = vsyncpa [#allocation4], 0  ;;  %s586_s24 = smov [#allocation5]   ;;  %s587_s26 = smov [#allocation8]  }
   0x5   :  { %s34_s25 = sshll.u32 %s586_s24, 4  ;;  %s57_s27 = sshll.u32 %s587_s26, 4  ;;  %s35_s25 = int_to_ptr.vmem [resolvable:$true] %s34_s25  ;;  %s638_s27 = int_to_ptr.vmem [resolvable:$true] %s57_s27 }
   0x6   :  { %s400_s30 = scalar_lea.hbm %s768_s1, 256 }
   0x7   :  { %p401_p0 = scmp.ne.s32.totalorder %s768_s1, %s400_s30  ;;  %p404_p1 = scmp.lt.u32.totalorder %s400_s30, %s768_s1 }
   0x9   :  { %p406_p2 = pnand %p404_p1, %p401_p0 }
   0xb   :  { %409 = shalt.err (!%p406_p2)
}
   0xc   :  { %s410_s12 = scalar_lea.vmem %s35_s25, 256  ;;  %p415_p4 = scmp.lt.s32.totalorder %s35_s25, %s35_s25 }
   0xd   :  { %p411_p3 = scmp.ne.s32.totalorder %s35_s25, %s410_s12  ;;  %p416_p5 = scmp.lt.s32.totalorder %s410_s12, %s410_s12 }
   0xf   :  { %p417_p6 = por %p416_p5, %p415_p4 }
  0x11   :  { %p418_p7 = pnand %p417_p6, %p411_p3 }
  0x13   :  { %421 = shalt.err (!%p418_p7)
}
  0x14   :  { %s588_s13 = smov 64   ;;  %s589_s14 = smov 4  }
  0x15   :  { %40 = dma.hbm_to_vmem [thread:$0]  %s768_s1, 256, %s35_s25, [#allocation6], %s588_s13, %s588_s13, %s589_s14  }
  0x16   :  { %s422_s19 = scalar_lea.hbm %s770_s3, 16 }
  0x17   :  { %p423_p8 = scmp.ne.s32.totalorder %s770_s3, %s422_s19  ;;  %p426_p9 = scmp.lt.u32.totalorder %s422_s19, %s770_s3 }
  0x19   :  { %p428_p10 = pnand %p426_p9, %p423_p8 }
  0x1b   :  { %431 = shalt.err (!%p428_p10)
}
  0x1c   :  { %s432_s24 = scalar_lea.vmem %s638_s27, 16  ;;  %s436_s1 = scalar_lea.vmem %s638_s27, 32 }
  0x1d   :  { %p433_p11 = scmp.ne.s32.totalorder %s638_s27, %s432_s24  ;;  %p437_p12 = scmp.lt.s32.totalorder %s638_s27, %s638_s27 }
  0x1e   :  { %p438_p13 = scmp.lt.s32.totalorder %s436_s1, %s432_s24 }
  0x20   :  { %p439_p0 = por %p438_p13, %p437_p12 }
  0x22   :  { %p440_p1 = pnand %p439_p0, %p433_p11 }
  0x24   :  { %443 = shalt.err (!%p440_p1)
}
  0x25   :  { %60 = dma.hbm_to_vmem [thread:$0]  %s770_s3, 16, %s638_s27, [#allocation9]  }
  0x26   :  { %s590_s28 = smov [#allocation11]   ;;  %s591_s30 = smov [#allocation2]  }
  0x27   :  { %s76_s29 = sshll.u32 %s590_s28, 4  ;;  %s22_s8 = sshll.u32 %s591_s30, 4  ;;  %s77_s29 = int_to_ptr.vmem [resolvable:$true] %s76_s29  ;;  %s673_s8 = int_to_ptr.vmem [resolvable:$true] %s22_s8 }
  0x28   :  { %s444_s11 = scalar_lea.hbm %s772_s5, 256 }
  0x29   :  { %p445_p2 = scmp.ne.s32.totalorder %s772_s5, %s444_s11  ;;  %p448_p3 = scmp.lt.u32.totalorder %s444_s11, %s772_s5 }
  0x2b   :  { %p450_p4 = pnand %p448_p3, %p445_p2 }
  0x2d   :  { %453 = shalt.err (!%p450_p4)
}
  0x2e   :  { %s454_s3 = scalar_lea.vmem %s77_s29, 256  ;;  %p459_p6 = scmp.lt.s32.totalorder %s77_s29, %s77_s29 }
  0x2f   :  { %p455_p5 = scmp.ne.s32.totalorder %s77_s29, %s454_s3  ;;  %p460_p7 = scmp.lt.s32.totalorder %s454_s3, %s454_s3 }
  0x31   :  { %p461_p8 = por %p460_p7, %p459_p6 }
  0x33   :  { %p462_p9 = pnand %p461_p8, %p455_p5 }
  0x35   :  { %465 = shalt.err (!%p462_p9)
}
  0x36   :  { %82 = dma.hbm_to_vmem [thread:$0]  %s772_s5, 256, %s77_s29, [#allocation12], %s588_s13, %s588_s13, %s589_s14  }
  0x37   :  { %s466_s21 = scalar_lea.hbm %s767_s0, 128 }
  0x38   :  { %p467_p10 = scmp.ne.s32.totalorder %s767_s0, %s466_s21  ;;  %p470_p11 = scmp.lt.u32.totalorder %s466_s21, %s767_s0 }
  0x3a   :  { %p472_p12 = pnand %p470_p11, %p467_p10 }
  0x3c   :  { %475 = shalt.err (!%p472_p12)
}
  0x3d   :  { %s476_s25 = scalar_lea.vmem %s673_s8, 128  ;;  %p481_p0 = scmp.lt.s32.totalorder %s673_s8, %s673_s8 }
  0x3e   :  { %p477_p13 = scmp.ne.s32.totalorder %s673_s8, %s476_s25  ;;  %p482_p1 = scmp.lt.s32.totalorder %s476_s25, %s476_s25 }
  0x40   :  { %p483_p2 = por %p482_p1, %p481_p0 }
  0x42   :  { %p484_p3 = pnand %p483_p2, %p477_p13 }
  0x44   :  { %487 = shalt.err (!%p484_p3)
}
  0x45   :  { %28 = dma.hbm_to_vmem [thread:$0]  %s767_s0, 128, %s673_s8, [#allocation3], %s588_s13, %s588_s13, %s589_s14  }
  0x46   :  { %s592_s28 = smov [#allocation7]   ;;  %s593_s30 = smov [#allocation10]  }
  0x47   :  { %s47_s29 = sshll.u32 %s592_s28, 4  ;;  %s67_s9 = sshll.u32 %s593_s30, 4  ;;  %s48_s29 = int_to_ptr.vmem [resolvable:$true] %s47_s29  ;;  %s68_s9 = int_to_ptr.vmem [resolvable:$true] %s67_s9 }
  0x48   :  { %s488_s12 = scalar_lea.hbm %s769_s2, 16 }
  0x49   :  { %p489_p4 = scmp.ne.s32.totalorder %s769_s2, %s488_s12  ;;  %p492_p5 = scmp.lt.u32.totalorder %s488_s12, %s769_s2 }
  0x4b   :  { %p494_p6 = pnand %p492_p5, %p489_p4 }
  0x4d   :  { %497 = shalt.err (!%p494_p6)
}
  0x4e   :  { %s498_s0 = scalar_lea.vmem %s48_s29, 16  ;;  %s502_s8 = scalar_lea.vmem %s48_s29, 32 }
  0x4f   :  { %p499_p7 = scmp.ne.s32.totalorder %s48_s29, %s498_s0  ;;  %p503_p8 = scmp.lt.s32.totalorder %s48_s29, %s48_s29 }
  0x50   :  { %p504_p9 = scmp.lt.s32.totalorder %s502_s8, %s498_s0 }
  0x52   :  { %p505_p10 = por %p504_p9, %p503_p8 }
  0x54   :  { %p506_p11 = pnand %p505_p10, %p499_p7 }
  0x56   :  { %509 = shalt.err (!%p506_p11)
}
  0x57   :  { %50 = dma.hbm_to_vmem [thread:$0]  %s769_s2, 16, %s48_s29, [#allocation6]  }
  0x58   :  { %s510_s21 = scalar_lea.hbm %s771_s4, 16 }
  0x59   :  { %p511_p12 = scmp.ne.s32.totalorder %s771_s4, %s510_s21  ;;  %p514_p13 = scmp.lt.u32.totalorder %s510_s21, %s771_s4 }
  0x5b   :  { %p516_p0 = pnand %p514_p13, %p511_p12 }
  0x5d   :  { %519 = shalt.err (!%p516_p0)
}
  0x5e   :  { %s520_s25 = scalar_lea.vmem %s68_s9, 16  ;;  %s524_s5 = scalar_lea.vmem %s68_s9, 32 }
  0x5f   :  { %p521_p1 = scmp.ne.s32.totalorder %s68_s9, %s520_s25  ;;  %p525_p2 = scmp.lt.s32.totalorder %s68_s9, %s68_s9 }
  0x60   :  { %p526_p3 = scmp.lt.s32.totalorder %s524_s5, %s520_s25 }
  0x62   :  { %p527_p4 = por %p526_p3, %p525_p2 }
  0x64   :  { %p528_p5 = pnand %p527_p4, %p521_p1 }
  0x66   :  { %531 = shalt.err (!%p528_p5)
}
  0x67   :  { %70 = dma.hbm_to_vmem [thread:$0]  %s771_s4, 16, %s68_s9, [#allocation9]  }
  0x68   :  { %s594_s28 = smov [#allocation13]   ;;  %s532_s11 = scalar_lea.hbm %s773_s6, 16 }
  0x69   :  { %s89_s29 = sshll.u32 %s594_s28, 4  ;;  %p533_p6 = scmp.ne.s32.totalorder %s773_s6, %s532_s11  ;;  %s90_s29 = int_to_ptr.vmem [resolvable:$true] %s89_s29 }
  0x6a   :  { %p536_p7 = scmp.lt.u32.totalorder %s532_s11, %s773_s6 }
  0x6c   :  { %p538_p8 = pnand %p536_p7, %p533_p6 }
  0x6e   :  { %541 = shalt.err (!%p538_p8)
}
  0x6f   :  { %s542_s3 = scalar_lea.vmem %s90_s29, 16  ;;  %s546_s4 = scalar_lea.vmem %s90_s29, 32 }
  0x70   :  { %p543_p9 = scmp.ne.s32.totalorder %s90_s29, %s542_s3  ;;  %p547_p10 = scmp.lt.s32.totalorder %s90_s29, %s90_s29 }
  0x71   :  { %p548_p11 = scmp.lt.s32.totalorder %s546_s4, %s542_s3 }
  0x73   :  { %p549_p12 = por %p548_p11, %p547_p10 }
  0x75   :  { %p550_p13 = pnand %p549_p12, %p543_p9 }
  0x77   :  { %553 = shalt.err (!%p550_p13)
}
  0x78   :  { %92 = dma.hbm_to_vmem [thread:$0]  %s773_s6, 16, %s90_s29, [#allocation12]  }
  0x79   :  { %576 = dma.done.wait [#allocation3], 128  }
  0x7a   :  { %577 = vsyncadd [#allocation3], 4294967168 }
  0x7b   :  { %578 = dma.done.wait [#allocation6], 272  }
  0x7c   :  { %579 = vsyncadd [#allocation6], 4294967024 }
  0x7d   :  { %580 = dma.done.wait [#allocation9], 32  }
  0x7e   :  { %581 = vsyncadd [#allocation9], 4294967264 }
  0x7f   :  { %582 = dma.done.wait [#allocation12], 272  }
  0x80   :  { %583 = vsyncadd [#allocation12], 4294967024  ;;  %v595_v0 = vmov 0.0   ;;  %vm596_vm0 = vmmov 0   ;;  %v391_v1 = vld [vmem:[#allocation5] sm:$0xff]   ;;  %v392_v2 = vld [vmem:[#allocation5 + $0x8] sm:$0xff]  }
  0x81   :  { %363 = vmatprep.subr.bf16.mxu0 %v595_v0  ;;  %367 = vmatprep.mubr.msk.bf16.mxu0 %vm596_vm0, %v595_v0  ;;  %v393_v3 = vld [vmem:[#allocation2] sm:$0xff]   ;;  %vm145_vm1 = vcmask 261120   ;;  %v342_v4 = vld [vmem:[#allocation7] ss:$0 sm:$0xff]  ;;  %v347_v37 = vld [vmem:[#allocation8] ss:$0 sm:$0xff] }
  0x82   :  { %371 = vmatprep.subr.bf16.mxu1 %v595_v0  ;;  %375 = vmatprep.mubr.msk.bf16.mxu1 %vm596_vm0, %v595_v0  ;;  %v394_v17 = vld [vmem:[#allocation11] sm:$0xff]   ;;  %v395_v18 = vld [vmem:[#allocation11 + $0x8] sm:$0xff]   ;;  %v348_v42 = vld [vmem:[#allocation10] ss:$0 sm:$0xff]  ;;  %vm319_vm2 = vcmask 257024   ;;  %s597_s6 = smov [#allocation14]  }
  0x83   :  { %364 = vmatpush3.bf16.msra.mxu0 %v391_v1  ;;  %372 = vmatpush3.bf16.msra.mxu1 %v394_v17  ;;  %v349_v50 = vld [vmem:[#allocation13] ss:$0 sm:$0xff]  ;;  %s327_s8 = sshll.u32 %s597_s6, 4  ;;  %s328_s8 = int_to_ptr.vmem [resolvable:$true] %s327_s8 }
  0x84   :  { %365 = vmatprep.subr.bf16.mxu0 %v595_v0  ;;  %373 = vmatprep.subr.bf16.mxu1 %v595_v0  ;;  %s554_s27 = scalar_lea.vmem %s328_s8, 128  ;;  %p559_p1 = scmp.lt.s32.totalorder %s328_s8, %s328_s8 }
  0x85   :  { %p555_p0 = scmp.ne.s32.totalorder %s328_s8, %s554_s27  ;;  %p560_p2 = scmp.lt.s32.totalorder %s554_s27, %s554_s27 }
  0x87   :  { %366 = vmatpush3.bf16.msra.mxu0 %v392_v2  ;;  %374 = vmatpush3.bf16.msra.mxu1 %v395_v18  ;;  %p561_p3 = por %p560_p2, %p559_p1 }
  0x89   :  { %p562_p4 = pnand %p561_p3, %p555_p0 }
  0x8a   :  { %368 = vmatmul.mubr.msk.bf16.vlgmr.msra.gmra.mrb[0].mxu0 %vm145_vm1, %v393_v3 }
 0x15d   :  { %v183_v5 = vpop.f32.mrb[0].mxu0 }
 0x15e   :  { %v184_v6 = vadd.f32 %v342_v4, %v183_v5  ;;  %v369_v7 = vpop.f32.mrb[1].mxu0 }
 0x15f   :  { %v186_v8 = vpop.f32.mrb[2].mxu0 }
 0x160   :  { %v187_v9 = vadd.f32 %v342_v4, %v186_v8  ;;  %v370_v10 = vpop.f32.mrb[3].mxu0  ;;  %v190_v11 = vsel %vm145_vm1, %v184_v6, 0.0  ;;  %v199_v12 = vmul.f32 %v184_v6, %v184_v6 }
 0x161   :  { %191 = vadd.xlane.f32.xlu0 %v190_v11 }
 0x162   :  { %v201_v13 = vsel %vm145_vm1, %v199_v12, 0.0  ;;  %v200_v14 = vmul.f32 %v187_v9, %v187_v9  ;;  %v193_v15 = vsel %vm145_vm1, %v187_v9, 0.0 }
 0x163   :  { %202 = vadd.xlane.f32.xlu1 %v201_v13 }
 0x164   :  { %v204_v16 = vsel %vm145_vm1, %v200_v14, 0.0 }
 0x165   :  { %194 = vadd.xlane.f32.xlu0 %v193_v15 }
 0x167   :  { %205 = vadd.xlane.f32.xlu1 %v204_v16 }
 0x1ee   :  { %v192_v19 = vpop.xlane.xlu0 %191 }
 0x1ef   :  { %v197_v20 = vmul.f32 0.03125, %v192_v19 }
 0x1f0   :  { %v203_v21 = vpop.xlane.xlu1 %202 }
 0x1f1   :  { %v209_v22 = vmul.f32 %v197_v20, %v197_v20  ;;  %v207_v23 = vmul.f32 0.03125, %v203_v21  ;;  %v215_v35 = vsub.f32 %v184_v6, %v197_v20 }
 0x1f2   :  { %v195_v24 = vpop.xlane.xlu0 %194 }
 0x1f3   :  { %v211_v25 = vsub.f32 %v207_v23, %v209_v22  ;;  %v198_v26 = vmul.f32 0.03125, %v195_v24 }
 0x1f4   :  { %v206_v27 = vpop.xlane.xlu1 %205 }
 0x1f5   :  { %v213_v28 = vmax.f32 %v211_v25, 0.0  ;;  %v210_v29 = vmul.f32 %v198_v26, %v198_v26  ;;  %v208_v30 = vmul.f32 0.03125, %v206_v27  ;;  %v216_v39 = vsub.f32 %v187_v9, %v198_v26 }
 0x1f7   :  { %v217_v31 = vadd.f32 1e-05, %v213_v28  ;;  %v212_v32 = vsub.f32 %v208_v30, %v210_v29 }
 0x1f9   :  { %396 = vrsqrt.f32 %v217_v31  ;;  %v214_v33 = vmax.f32 %v212_v32, 0.0 }
 0x1fb   :  { %v218_v34 = vadd.f32 1e-05, %v214_v33 }
 0x1fd   :  { %398 = vrsqrt.f32 %v218_v34 }
 0x203   :  { %v397_v36 = vpop.eup %396 }
 0x204   :  { %v221_v38 = vmul.f32 %v397_v36, %v215_v35 }
 0x206   :  { %v230_v40 = vmul.f32 %v347_v37, %v221_v38 }
 0x207   :  { %v399_v41 = vpop.eup %398 }
 0x208   :  { %v222_v43 = vmul.f32 %v399_v41, %v216_v39  ;;  %v239_v45 = vadd.f32 %v348_v42, %v230_v40 }
 0x20a   :  { %v231_v44 = vmul.f32 %v347_v37, %v222_v43  ;;  %v241_v47 = vmax.f32 %v239_v45, 0.0 }
 0x20c   :  { %v240_v46 = vadd.f32 %v348_v42, %v231_v44 }
 0x20e   :  { %v242_v48 = vmax.f32 %v240_v46, 0.0 }
 0x210   :  { %v243_v49 = vpack.c.bf16 %v242_v48, %v241_v47 }
 0x212   :  { %376 = vmatmul.mubr.msk.bf16.vlgmr.msra.gmra.mrb[0].mxu1 %vm145_vm1, %v243_v49 }
 0x2e5   :  { %v304_v51 = vpop.f32.mrb[0].mxu1 }
 0x2e6   :  { %v305_v52 = vadd.f32 %v349_v50, %v304_v51  ;;  %v377_v53 = vpop.f32.mrb[1].mxu1 }
 0x2e7   :  { %v307_v54 = vpop.f32.mrb[2].mxu1 }
 0x2e8   :  { %v355_v55 = vpack.c.bf16 %v305_v52, %v305_v52  ;;  %v308_v56 = vadd.f32 %v349_v50, %v307_v54  ;;  %v378_v57 = vpop.f32.mrb[3].mxu1 }
 0x2ea   :  { %v356_v58 = vpack.c.bf16 %v308_v56, %v308_v56  ;;  %320 = vst.msk [vmem:[#allocation14] sm:$0xf] %vm319_vm2, %v355_v55 }
 0x2ec   :  { %321 = vst.msk [vmem:[#allocation14 + $0x4] sm:$0xf] %vm319_vm2, %v356_v58 }
 0x2ed   :  { %565 = shalt.err (!%p562_p4)
}
 0x2ee   :  { %s566_s20 = scalar_lea.hbm %s774_s7, 128 }
 0x2ef   :  { %p567_p5 = scmp.ne.s32.totalorder %s774_s7, %s566_s20  ;;  %p570_p6 = scmp.lt.u32.totalorder %s566_s20, %s774_s7 }
 0x2f1   :  { %p572_p7 = pnand %p570_p6, %p567_p5 }
 0x2f3   :  { %575 = shalt.err (!%p572_p7)
}
 0x2f4   :  { %333 = dma.vmem_to_hbm [thread:$0]  %s328_s8, 128, %s774_s7, [#allocation4], %s588_s13, %s588_s13, %s589_s14  }
 0x2f5   :  { %584 = dma.done.wait [#allocation4], 128  }
 0x2f6   :  { %585 = vsyncadd [#allocation4], 4294967168 }
 0x2f7   :  { %337 = vsyncpa [#allocation3], 1 }
 0x2f8   :  { %338 = vsyncpa [#allocation6], 1 }
 0x2f9   :  { %339 = vsyncpa [#allocation9], 1 }
 0x2fa   :  { %340 = vsyncpa [#allocation12], 1 }
 0x2fb   :  { %341 = vsyncpa [#allocation4], 1 }

// kernel: attention_layer_forward.5
= control target key start
LH: loop header
LB: loop body
LE: loop exit
PB: predicated region body
PF: predicated region fallthrough
CT: control target
= control target key end

     0   :  { %s2465_s0 = inlined_call_operand.hbm [shape: bf16[48,100], index: 0, kind: input, shape index: {}]   ;;  %s2466_s1 = inlined_call_operand.hbm [shape: bf16[100,65], index: 1, kind: input, shape index: {}]   ;;  %s2467_s2 = inlined_call_operand.hbm [shape: f32[1,65], index: 2, kind: input, shape index: {}]   ;;  %s2468_s3 = inlined_call_operand.hbm [shape: f32[1,64], index: 3, kind: input, shape index: {}]   ;;  %s2469_s4 = inlined_call_operand.hbm [shape: f32[1,64], index: 4, kind: input, shape index: {}]   ;;  %s2470_s5 = inlined_call_operand.hbm [shape: bf16[32,32], index: 5, kind: input, shape index: {}]   ;;  %s2471_s6 = inlined_call_operand.hbm [shape: f32[1,32], index: 6, kind: input, shape index: {}]   ;;  %s2472_s7 = inlined_call_operand.hbm [shape: bf16[32,32], index: 7, kind: input, shape index: {}]   ;;  %s2473_s8 = inlined_call_operand.hbm [shape: f32[1,32], index: 8, kind: input, shape index: {}]   ;;  %s2474_s9 = inlined_call_operand.hbm [shape: bf16[48,64], index: 9, kind: output, shape index: {}]  }
   0x1   :  { %2488 = sst [smem:[#allocation29_spill]] %s2466_s1 }
   0x2   :  { %2489 = sst [smem:[#allocation30_spill]] %s2468_s3 }
   0x3   :  { %2490 = sst [smem:[#allocation31_spill]] %s2474_s9 }
   0x4   :  { %14 = vsyncpa [#allocation3], 0 }
   0x5   :  { %16 = vsyncpa [#allocation3 + $0x1], 0 }
   0x6   :  { %17 = vsyncpa [#allocation6], 0 }
   0x7   :  { %18 = vsyncpa [#allocation9], 0 }
   0x8   :  { %19 = vsyncpa [#allocation12], 0 }
   0x9   :  { %20 = vsyncpa [#allocation15], 0 }
   0xa   :  { %21 = vsyncpa [#allocation4], 0 }
   0xb   :  { %23 = vsyncpa [#allocation4 + $0x1], 0  ;;  %s1946_s30 = smov 0   ;;  %s1948_s10 = smov 0  }
   0xc   :  { %s1950_s11 = smov 0   ;;  %s1952_s12 = smov 0  }
   0xd LB: > { %2491 = sst [smem:[#allocation24_spill]] %s1863_s30  ;;  %s1967_s13 = sadd.s32 4294967295, %s1875_s12   ;;  %s1875_s12 = sphi %s1952_s12, %s2524_s12   ;;  %s1871_s11 = sphi %s1950_s11, %s2528_s11   ;;  %s1867_s10 = sphi %s1948_s10, %s2527_s10   ;;  %s1863_s30 = sphi %s1946_s30, %s2526_s30  }
   0xe   : > { %s1227_s14 = sadd.s32 4294967294, %s1875_s12   ;;  %s1971_s15 = sadd.s32 1, %s1875_s12  }
   0xf   : > { %2492 = sst [smem:[#allocation25_spill]] %s1971_s15  ;;  %s36_s16 = sadd.s32 1, %s1871_s11 }
  0x10   : > { %s33_s17 = ssub.s32 %s1875_s12, %s1971_s15  ;;  %p43_p0 = scmp.ne.s32.totalorder %s1871_s11, %s1867_s10 }
  0x11   : > { %p34_p1 = scmp.eq.s32.totalorder %s33_s17, 0  ;;  %p44_p2 = scmp.eq.s32.totalorder %s1875_s12, 0 }
  0x12   : > { %p49_p3 = scmp.ne.s32.totalorder %s1867_s10, %s1863_s30  ;;  %p2477_p4 = scmp.eq.s32.totalorder %s1967_s13, 0 }
  0x13   : > { %s1983_s18 = scalar_select %p34_p1, %s1871_s11, %s36_s16  }
  0x14   : > { %p1985_p5 = por %p44_p2, %p43_p0  ;;  %p1991_p6 = por %p2477_p4, %p49_p3 }
  0x15   : > { %2493 = sst [smem:[#allocation26_spill]] %s1983_s18  ;;  %p241_p7 = scmp.eq.s32.totalorder %s1967_s13, 1 }
  0x16   : > { %s2494_s19 = scalar_select %p1985_p5, 1, 0 }
  0x17   : > { %s2495_s20 = scalar_select %p1991_p6, 1, 0 }
  0x18   : > { %p247_p8 = scmp.eq.s32.totalorder %s1227_s14, 1  ;;  %p1228_p9 = scmp.ge.s32.totalorder %s1875_s12, 1 }
  0x19   : > { %p254_p10 = scmp.lt.s32.totalorder %s1875_s12, 3  ;;  %p1998_p11 = por %p241_p7, %p43_p0 }
  0x1a   : > { %p2002_p12 = por %p247_p8, %p49_p3  ;;  %s1877_s24 = smov [#allocation5]  }
  0x1b   : > { %s2496_s21 = scalar_select %p1998_p11, 1, 0 }
  0x1c   : > { %s2498_s22 = scalar_select %p2002_p12, 1, 0 }
  0x1d   : > { %2497 = sst [smem:[#allocation27_spill]] %s2496_s21  ;;  %p2006_p13 = pnand %p1228_p9, %p254_p10 }
  0x1e   : > { %2499 = sst [smem:[#allocation28_spill]] %s2498_s22  ;;  %s266_s25 = sshll.u32 %s1877_s24, 4  ;;  %s267_s25 = int_to_ptr.vmem [resolvable:$true] %s266_s25 }
  0x1f   : > { %s2500_s23 = scalar_select %p2006_p13, 1, 0 }
  0x20   : > { %p1389_p1 = pneg %p2006_p13  ;;  %s1878_s27 = smov [#allocation8]  }
  0x21   : > { %s291_s28 = sshll.u32 %s1878_s27, 4  ;;  %s2502_s1 = sld [smem:[#allocation29_spill]]  ;;  %s2018_s28 = int_to_ptr.vmem [resolvable:$true] %s291_s28 }
  0x22   : > { %p2014_p2 = pnand %p1389_p1, %p2477_p4 }
  0x24   : > { %p2028_p3 = pneg %p2014_p2 }
  0x27   : > { %s1541_s16 = scalar_lea.hbm %s2502_s1, 832 }
  0x28   : > { %p1542_p0 = scmp.ne.s32.totalorder %s2502_s1, %s1541_s16  ;;  %p1548_p9 = scmp.lt.u32.totalorder %s1541_s16, %s2502_s1 }
  0x2a   : > { %p1544_p7 = pnand %p2028_p3, %p1542_p0 }
  0x2c   : > { %p1545_p8 = pneg %p1544_p7 }
  0x2e   : > { %p1550_p10 = pnand %p1548_p9, %p1545_p8 }
  0x30   : > { %1553 = shalt.err (!%p1550_p10)
}
  0x31   : > { %s1554_s29 = scalar_lea.vmem %s267_s25, 832  ;;  %p1562_p11 = scmp.lt.s32.totalorder %s267_s25, %s267_s25 }
  0x32   : > { %p1555_p1 = scmp.ne.s32.totalorder %s267_s25, %s1554_s29  ;;  %p1563_p6 = scmp.lt.s32.totalorder %s1554_s29, %s1554_s29 }
  0x34   : > { %p1557_p4 = pnand %p1555_p1, %p2028_p3  ;;  %p1564_p13 = por %p1563_p6, %p1562_p11 }
  0x36   : > { %p1558_p12 = pneg %p1557_p4 }
  0x38   : > { %p1565_p5 = pnand %p1564_p13, %p1558_p12 }
  0x3a   : > { %1568 = shalt.err (!%p1565_p5)
}
  0x3b   : > { %s2484_s18 = smov 64   ;;  %s2486_s14 = smov 4  }
  0x3c   : > { %1392 = dma.hbm_to_vmem [thread:$0]  (!%p2014_p2), %s2502_s1, 832, %s267_s25, [#allocation6], %s2484_s18, %s2484_s18, %s2486_s14  }
  0x3d   : > { %s2504_s3 = sld [smem:[#allocation30_spill]] }
  0x43   : > { %s1569_s22 = scalar_lea.hbm %s2504_s3, 16 }
  0x44   : > { %p1570_p4 = scmp.ne.s32.totalorder %s2504_s3, %s1569_s22  ;;  %p1576_p11 = scmp.lt.u32.totalorder %s1569_s22, %s2504_s3 }
  0x46   : > { %p1572_p5 = pnand %p1570_p4, %p2028_p3 }
  0x48   : > { %p1573_p6 = pneg %p1572_p5 }
  0x4a   : > { %p1578_p12 = pnand %p1576_p11, %p1573_p6 }
  0x4c   : > { %1581 = shalt.err (!%p1578_p12)
}
  0x4d   : > { %s1582_s25 = scalar_lea.vmem %s2018_s28, 16  ;;  %s1589_s30 = scalar_lea.vmem %s2018_s28, 32 }
  0x4e   : > { %p1583_p13 = scmp.ne.s32.totalorder %s2018_s28, %s1582_s25  ;;  %p1590_p8 = scmp.lt.s32.totalorder %s2018_s28, %s2018_s28 }
  0x4f   : > { %p1591_p9 = scmp.lt.s32.totalorder %s1589_s30, %s1582_s25 }
  0x50   : > { %p1585_p0 = pnand %p1583_p13, %p2028_p3 }
  0x51   : > { %p1592_p10 = por %p1591_p9, %p1590_p8 }
  0x52   : > { %p1586_p7 = pneg %p1585_p0 }
  0x54   : > { %p1593_p1 = pnand %p1592_p10, %p1586_p7 }
  0x56   : > { %1596 = shalt.err (!%p1593_p1)
}
  0x57   : > { %1398 = dma.hbm_to_vmem [thread:$0]  (!%p2014_p2), %s2504_s3, 16, %s2018_s28, [#allocation9]  }
  0x58   : > { %s1881_s22 = smov [#allocation11]   ;;  %s1882_s16 = smov [#allocation14]  }
  0x59   : > { %s312_s15 = sshll.u32 %s1881_s22, 4  ;;  %s336_s17 = sshll.u32 %s1882_s16, 4  ;;  %s313_s15 = int_to_ptr.vmem [resolvable:$true] %s312_s15  ;;  %s337_s17 = int_to_ptr.vmem [resolvable:$true] %s336_s17 }
  0x5a   : > { %s1597_s25 = scalar_lea.hbm %s2470_s5, 256 }
  0x5b   : > { %p1598_p4 = scmp.ne.s32.totalorder %s2470_s5, %s1597_s25  ;;  %p1604_p11 = scmp.lt.u32.totalorder %s1597_s25, %s2470_s5 }
  0x5d   : > { %p1600_p5 = pnand %p1598_p4, %p2028_p3 }
  0x5f   : > { %p1601_p6 = pneg %p1600_p5 }
  0x61   : > { %p1606_p12 = pnand %p1604_p11, %p1601_p6 }
  0x63   : > { %1609 = shalt.err (!%p1606_p12)
}
  0x64   : > { %s1610_s28 = scalar_lea.vmem %s313_s15, 256  ;;  %p1618_p8 = scmp.lt.s32.totalorder %s313_s15, %s313_s15 }
  0x65   : > { %p1611_p13 = scmp.ne.s32.totalorder %s313_s15, %s1610_s28  ;;  %p1619_p9 = scmp.lt.s32.totalorder %s1610_s28, %s1610_s28 }
  0x67   : > { %p1613_p0 = pnand %p1611_p13, %p2028_p3  ;;  %p1620_p10 = por %p1619_p9, %p1618_p8 }
  0x69   : > { %p1614_p7 = pneg %p1613_p0 }
  0x6b   : > { %p1621_p1 = pnand %p1620_p10, %p1614_p7 }
  0x6d   : > { %1624 = shalt.err (!%p1621_p1)
}
  0x6e   : > { %s2505_s18 = smov 4   ;;  %s2506_s21 = smov 64  }
  0x6f   : > { %1404 = dma.hbm_to_vmem [thread:$0]  (!%p2014_p2), %s2470_s5, 256, %s313_s15, [#allocation12], %s2506_s21, %s2506_s21, %s2505_s18  }
  0x70   : > { %s1625_s29 = scalar_lea.hbm %s2472_s7, 256 }
  0x71   : > { %p1626_p4 = scmp.ne.s32.totalorder %s2472_s7, %s1625_s29  ;;  %p1632_p11 = scmp.lt.u32.totalorder %s1625_s29, %s2472_s7 }
  0x73   : > { %p1628_p5 = pnand %p1626_p4, %p2028_p3 }
  0x75   : > { %p1629_p6 = pneg %p1628_p5 }
  0x77   : > { %p1634_p12 = pnand %p1632_p11, %p1629_p6 }
  0x79   : > { %1637 = shalt.err (!%p1634_p12)
}
  0x7a   : > { %s1638_s14 = scalar_lea.vmem %s337_s17, 256  ;;  %p1646_p8 = scmp.lt.s32.totalorder %s337_s17, %s337_s17 }
  0x7b   : > { %p1639_p13 = scmp.ne.s32.totalorder %s337_s17, %s1638_s14  ;;  %p1647_p9 = scmp.lt.s32.totalorder %s1638_s14, %s1638_s14 }
  0x7d   : > { %p1641_p0 = pnand %p1639_p13, %p2028_p3  ;;  %p1648_p10 = por %p1647_p9, %p1646_p8 }
  0x7f   : > { %p1642_p7 = pneg %p1641_p0 }
  0x81   : > { %p1649_p1 = pnand %p1648_p10, %p1642_p7 }
  0x83   : > { %1652 = shalt.err (!%p1649_p1)
}
  0x84   : > { %1410 = dma.hbm_to_vmem [thread:$0]  (!%p2014_p2), %s2472_s7, 256, %s337_s17, [#allocation15], %s2506_s21, %s2506_s21, %s2505_s18  }
  0x85   : > { %s1883_s16 = smov [#allocation7]   ;;  %s1884_s29 = smov [#allocation10]  }
  0x86   : > { %s280_s27 = sshll.u32 %s1883_s16, 4  ;;  %s302_s25 = sshll.u32 %s1884_s29, 4  ;;  %s281_s27 = int_to_ptr.vmem [resolvable:$true] %s280_s27  ;;  %s303_s25 = int_to_ptr.vmem [resolvable:$true] %s302_s25 }
  0x87   : > { %s1653_s28 = scalar_lea.hbm %s2467_s2, 16 }
  0x88   : > { %p1654_p4 = scmp.ne.s32.totalorder %s2467_s2, %s1653_s28  ;;  %p1660_p11 = scmp.lt.u32.totalorder %s1653_s28, %s2467_s2 }
  0x8a   : > { %p1656_p5 = pnand %p1654_p4, %p2028_p3 }
  0x8c   : > { %p1657_p6 = pneg %p1656_p5 }
  0x8e   : > { %p1662_p12 = pnand %p1660_p11, %p1657_p6 }
  0x90   : > { %1665 = shalt.err (!%p1662_p12)
}
  0x91   : > { %s1666_s17 = scalar_lea.vmem %s281_s27, 16  ;;  %s1673_s18 = scalar_lea.vmem %s281_s27, 32 }
  0x92   : > { %p1667_p13 = scmp.ne.s32.totalorder %s281_s27, %s1666_s17  ;;  %p1674_p8 = scmp.lt.s32.totalorder %s281_s27, %s281_s27 }
  0x93   : > { %p1675_p9 = scmp.lt.s32.totalorder %s1673_s18, %s1666_s17 }
  0x94   : > { %p1669_p0 = pnand %p1667_p13, %p2028_p3 }
  0x95   : > { %p1676_p10 = por %p1675_p9, %p1674_p8 }
  0x96   : > { %p1670_p7 = pneg %p1669_p0 }
  0x98   : > { %p1677_p1 = pnand %p1676_p10, %p1670_p7 }
  0x9a   : > { %1680 = shalt.err (!%p1677_p1)
}
  0x9b   : > { %1395 = dma.hbm_to_vmem [thread:$0]  (!%p2014_p2), %s2467_s2, 16, %s281_s27, [#allocation6]  }
  0x9c   : > { %s1681_s16 = scalar_lea.hbm %s2469_s4, 16 }
  0x9d   : > { %p1682_p4 = scmp.ne.s32.totalorder %s2469_s4, %s1681_s16  ;;  %p1688_p11 = scmp.lt.u32.totalorder %s1681_s16, %s2469_s4 }
  0x9f   : > { %p1684_p5 = pnand %p1682_p4, %p2028_p3 }
  0xa1   : > { %p1685_p6 = pneg %p1684_p5 }
  0xa3   : > { %p1690_p12 = pnand %p1688_p11, %p1685_p6 }
  0xa5   : > { %1693 = shalt.err (!%p1690_p12)
}
  0xa6   : > { %s1694_s14 = scalar_lea.vmem %s303_s25, 16  ;;  %s1701_s27 = scalar_lea.vmem %s303_s25, 32 }
  0xa7   : > { %p1695_p13 = scmp.ne.s32.totalorder %s303_s25, %s1694_s14  ;;  %p1702_p8 = scmp.lt.s32.totalorder %s303_s25, %s303_s25 }
  0xa8   : > { %p1703_p9 = scmp.lt.s32.totalorder %s1701_s27, %s1694_s14 }
  0xa9   : > { %p1697_p0 = pnand %p1695_p13, %p2028_p3 }
  0xaa   : > { %p1704_p10 = por %p1703_p9, %p1702_p8 }
  0xab   : > { %p1698_p7 = pneg %p1697_p0 }
  0xad   : > { %p1705_p1 = pnand %p1704_p10, %p1698_p7 }
  0xaf   : > { %1708 = shalt.err (!%p1705_p1)
}
  0xb0   : > { %1401 = dma.hbm_to_vmem [thread:$0]  (!%p2014_p2), %s2469_s4, 16, %s303_s25, [#allocation9]  }
  0xb1   : > { %s1885_s18 = smov [#allocation13]   ;;  %s1886_s21 = smov [#allocation16]  }
  0xb2   : > { %s326_s1 = sshll.u32 %s1885_s18, 4  ;;  %s350_s3 = sshll.u32 %s1886_s21, 4  ;;  %s327_s1 = int_to_ptr.vmem [resolvable:$true] %s326_s1  ;;  %s351_s3 = int_to_ptr.vmem [resolvable:$true] %s350_s3 }
  0xb3   : > { %s1709_s29 = scalar_lea.hbm %s2471_s6, 16 }
  0xb4   : > { %p1710_p4 = scmp.ne.s32.totalorder %s2471_s6, %s1709_s29  ;;  %p1716_p11 = scmp.lt.u32.totalorder %s1709_s29, %s2471_s6 }
  0xb6   : > { %p1712_p5 = pnand %p1710_p4, %p2028_p3 }
  0xb8   : > { %p1713_p6 = pneg %p1712_p5 }
  0xba   : > { %p1718_p12 = pnand %p1716_p11, %p1713_p6 }
  0xbc   : > { %1721 = shalt.err (!%p1718_p12)
}
  0xbd   : > { %s1722_s25 = scalar_lea.vmem %s327_s1, 16  ;;  %s1729_s27 = scalar_lea.vmem %s327_s1, 32 }
  0xbe   : > { %p1723_p13 = scmp.ne.s32.totalorder %s327_s1, %s1722_s25  ;;  %p1730_p8 = scmp.lt.s32.totalorder %s327_s1, %s327_s1 }
  0xbf   : > { %p1731_p9 = scmp.lt.s32.totalorder %s1729_s27, %s1722_s25 }
  0xc0   : > { %p1725_p0 = pnand %p1723_p13, %p2028_p3 }
  0xc1   : > { %p1732_p10 = por %p1731_p9, %p1730_p8 }
  0xc2   : > { %p1726_p7 = pneg %p1725_p0 }
  0xc4   : > { %p1733_p1 = pnand %p1732_p10, %p1726_p7 }
  0xc6   : > { %1736 = shalt.err (!%p1733_p1)
}
  0xc7   : > { %1407 = dma.hbm_to_vmem [thread:$0]  (!%p2014_p2), %s2471_s6, 16, %s327_s1, [#allocation12]  }
  0xc8   : > { %s1737_s22 = scalar_lea.hbm %s2473_s8, 16 }
  0xc9   : > { %p1738_p4 = scmp.ne.s32.totalorder %s2473_s8, %s1737_s22  ;;  %p1744_p11 = scmp.lt.u32.totalorder %s1737_s22, %s2473_s8 }
  0xcb   : > { %p1740_p5 = pnand %p1738_p4, %p2028_p3 }
  0xcd   : > { %p1741_p6 = pneg %p1740_p5 }
  0xcf   : > { %p1746_p12 = pnand %p1744_p11, %p1741_p6 }
  0xd1   : > { %1749 = shalt.err (!%p1746_p12)
}
  0xd2   : > { %s1750_s28 = scalar_lea.vmem %s351_s3, 16  ;;  %s1757_s1 = scalar_lea.vmem %s351_s3, 32 }
  0xd3   : > { %p1751_p13 = scmp.ne.s32.totalorder %s351_s3, %s1750_s28  ;;  %p1758_p8 = scmp.lt.s32.totalorder %s351_s3, %s351_s3 }
  0xd4   : > { %p1759_p9 = scmp.lt.s32.totalorder %s1757_s1, %s1750_s28 }
  0xd5   : > { %p1753_p0 = pnand %p1751_p13, %p2028_p3 }
  0xd6   : > { %p1760_p10 = por %p1759_p9, %p1758_p8 }
  0xd7   : > { %p1754_p7 = pneg %p1753_p0 }
  0xd9   : > { %p1761_p1 = pnand %p1760_p10, %p1754_p7 }
  0xdb   : > { %1764 = shalt.err (!%p1761_p1)
}
  0xdc   : > { %1413 = dma.hbm_to_vmem [thread:$0]  (!%p2014_p2), %s2473_s8, 16, %s351_s3, [#allocation15]  }
  0xdd   : > { %p1237_p4 = scmp.ge.s32.totalorder %s1875_s12, 2 }
  0xde   : > { %p2507_p3 = scmp.ne.s32.totalorder (!%p1237_p4), %s2494_s19, 0 }
  0xdf   : > { %357 = sbr.rel (%p1237_p4) target bundleno = 265 (0x109), region = 48 }
  0xe6   : > { %360 = sbr.rel (!%p2507_p3) target bundleno = 265 (0x109), region = 52  ;;  %s361_s24 = sand.u32 (%p2507_p3), 1, %s1871_s11  }
  0xe7   : > { %s1239_s27 = sshll.u32 (%p2507_p3), %s1875_s12, 2  ;;  %s1238_s15 = sshll.u32 (%p2507_p3), %s361_s24, 4 }
  0xe8   : > { %s367_s17 = ssub.s32 (%p2507_p3), 6, %s1239_s27  ;;  %s2195_s18 = scalar_lea.sflag (%p2507_p3), [#allocation3], %s361_s24 }
  0xe9   : > { %p368_p5 = scmp.lt.s32.totalorder (%p2507_p3), %s367_s17, 4  ;;  %s365_s21 = scalar_lea.vmem (%p2507_p3), [#allocation2], %s1238_s15 }
  0xed   : > { %s2530_s17 = smov (!%p368_p5, %s367_s17), 4 }
  0xee   : > { %s2192_s26 = sshll.u32 %s2530_s17, 6 }
  0xef   : > { %s372_s3 = ssub.s32 256, %s2192_s26 }
  0xf0   : > { %373 = vsyncadd %s2195_s18, %s372_s3  ;;  %p1241_p2 = scmp.ne.s32.totalorder %s2192_s26, 0  ;;  %s1297_s19 = sshll.u32 %s1875_s12, 8 }
  0xf1   : > { %s2203_s29 = scalar_lea.hbm %s2465_s0, %s1297_s19  ;;  %s378_s30 = sshll.u32 %s365_s21, 4  ;;  %s2205_s30 = int_to_ptr.vmem [resolvable:$true] %s378_s30 }
  0xf2   : > { %s1765_s9 = scalar_lea.hbm %s2203_s29, %s2192_s26  ;;  %s1769_s14 = scalar_lea.hbm %s2465_s0, 384 }
  0xf3   : > { %p1766_p6 = scmp.ne.s32.totalorder %s2203_s29, %s1765_s9  ;;  %p1770_p13 = scmp.lt.u32.totalorder %s2203_s29, %s2465_s0 }
  0xf4   : > { %p1771_p0 = scmp.lt.u32.totalorder %s1769_s14, %s1765_s9  ;;  %p1773_p8 = scmp.lt.u32.totalorder %s1765_s9, %s2203_s29 }
  0xf5   : > { %p1767_p11 = pnand %p1766_p6, %p1241_p2 }
  0xf6   : > { %p1772_p7 = por %p1771_p0, %p1770_p13 }
  0xf7   : > { %p1768_p12 = pneg %p1767_p11 }
  0xf8   : > { %p1774_p9 = por %p1773_p8, %p1772_p7 }
  0xfa   : > { %p1775_p10 = pnand %p1774_p9, %p1768_p12 }
  0xfc   : > { %1778 = shalt.err (!%p1775_p10)
}
  0xfd   : > { %s1779_s27 = scalar_lea.vmem %s2205_s30, %s2192_s26  ;;  %s1887_s15 = smov [#allocation2]  }
  0xfe   : > { %p1780_p1 = scmp.ne.s32.totalorder %s2205_s30, %s1779_s27  ;;  %s1783_s17 = sshll.u32 %s1887_s15, 4  ;;  %s1784_s17 = int_to_ptr.vmem [resolvable:$false] %s1783_s17 }
  0xff   : > { %s1785_s3 = scalar_lea.vmem %s1784_s17, 512  ;;  %p1786_p6 = scmp.lt.s32.totalorder %s2205_s30, %s1784_s17 }
 0x100   : > { %p1781_p3 = pnand %p1780_p1, %p1241_p2  ;;  %p1787_p11 = scmp.lt.s32.totalorder %s1785_s3, %s1779_s27 }
 0x102   : > { %p1782_p5 = pneg %p1781_p3  ;;  %p1788_p13 = por %p1787_p11, %p1786_p6 }
 0x104   : > { %p1789_p0 = pnand %p1788_p13, %p1782_p5 }
 0x106   : > { %1792 = shalt.err (!%p1789_p0)
}
 0x107   : > { %s1888_s21 = smov 64   ;;  %s1889_s19 = smov 4  }
 0x108   : > { %384 = dma.hbm_to_vmem [thread:$0]  (%p1241_p2), %s2203_s29, %s2192_s26, %s2205_s30, %s2195_s18, %s1888_s21, %s1888_s21, %s1889_s19  }
 0x109 PF: > { %p2508_p12 = scmp.ne.s32.totalorder %s2500_s23, 0 }
 0x10a   : > { %s2235_s22 = sand.u32 (!%p2508_p12), 1, %s1867_s10   ;;  %p2509_p7 = scmp.ne.s32.totalorder (!%p2508_p12), %s2495_s20, 0 }
 0x10b   : > { %390 = sbr.rel (%p2508_p12) target bundleno = 1319 (0x527), region = 56  ;;  %s1246_s16 = sshll.u32 (!%p2508_p12), %s2235_s22, 4 }
 0x10c   : > { %s393_s9 = scalar_lea.sflag (!%p2508_p12), [#allocation3], %s2235_s22  ;;  %s2241_s28 = scalar_lea.vmem (!%p2508_p12), [#allocation2], %s1246_s16 }
 0x112   : > { %1838 = dma.done.wait (%p2509_p7), %s393_s9, 256  }
 0x113   : > { %1840 = vsyncadd (%p2509_p7), %s393_s9, 4294967040  ;;  %p2510_p2 = scmp.eq.s32.totalorder %s1967_s13, 0 }
 0x115   : > { %1842 = dma.done.wait (%p2510_p2), [#allocation6], 848   ;;  %p2511_p8 = pmov %p2510_p2 }
 0x116   : > { %p2512_p9 = pmov %p2510_p2 }
 0x117   : > { %1844 = vsyncadd (%p2511_p8), [#allocation6], 4294966448 }
 0x118   : > { %1846 = dma.done.wait (%p2512_p9), [#allocation9], 32   ;;  %p2513_p10 = pmov %p2510_p2 }
 0x119   : > { %p2514_p1 = pmov %p2510_p2 }
 0x11a   : > { %1848 = vsyncadd (%p2513_p10), [#allocation9], 4294967264 }
 0x11b   : > { %1850 = dma.done.wait (%p2514_p1), [#allocation12], 272   ;;  %p2515_p3 = pmov %p2514_p1 }
 0x11c   : > { %p2516_p5 = pmov %p2514_p1 }
 0x11d   : > { %1852 = vsyncadd (%p2515_p3), [#allocation12], 4294967024 }
 0x11e   : > { %1854 = dma.done.wait (%p2516_p5), [#allocation15], 272   ;;  %p2517_p6 = pmov %p2514_p1 }
 0x11f   : > { %v1496_v0 = vld [vmem:[#allocation5] sm:$0xff]   ;;  %v1497_v1 = vld [vmem:[#allocation5 + $0x8] sm:$0xff]   ;;  %v1498_v2 = vld [vmem:[#allocation5 + $0x10] sm:$0xff]   ;;  %vm547_vm0 = vcmask 818176   ;;  %vm554_vm1 = vcmask 1041408   ;;  %s1890_s20 = smov 96  }
 0x120   : > { %1856 = vsyncadd (%p2517_p6), [#allocation15], 4294967024  ;;  %1320 = vmatprep.subr.bf16.mxu0 %v1496_v0  ;;  %v1503_v3 = vld [vmem:[%s2241_s28] sm:$0xff]   ;;  %v1499_v4 = vld [vmem:[#allocation5 + $0x18] sm:$0xff]   ;;  %vm633_vm2 = vcmask 261120   ;;  %v1891_v47 = vmov 64  }
 0x121   : > { %1321 = vmatpush3.bf16.msra.mxu0 %v1496_v0  ;;  %1334 = vmatprep.mubr.msk.bf16.mxu0 %vm547_vm0, %v1503_v3  ;;  %v1500_v5 = vld [vmem:[#allocation5 + $0x20] sm:$0xff]   ;;  %v1501_v6 = vld [vmem:[#allocation5 + $0x28] sm:$0xff]   ;;  %v1502_v7 = vld [vmem:[#allocation5 + $0x30] ss:$0 sps:$4 sm:$0x33]   ;;  %s1892_s23 = smov 32  }
 0x122   : > { %1322 = vmatprep.subr.bf16.mxu0 %v1497_v1  ;;  %v556_v8 = vsel %vm554_vm1, %v1502_v7, 0  ;;  %v1504_v9 = vld [vmem:[%s2241_s28 + $0x8] sm:$0xff]   ;;  %v1256_v10 = vld [vmem:[#allocation7] ss:$0 sm:$0xff]  ;;  %1484 = vset.pattern.permute.xlu1 %v1891_v47  ;;  %vm1053_vm3 = vcmask 519168   ;;  %s462_s26 = scalar_lea.vmem [#allocation17], %s1246_s16 }
 0x123   : > { %1485 = vset.pattern.permute.xlu0 %v1891_v47  ;;  %v1505_v48 = vld [vmem:[#allocation11] sm:$0xff]   ;;  %v1506_v49 = vld [vmem:[#allocation11 + $0x8] sm:$0xff]   ;;  %v2315_v50 = vld [vmem:[#allocation14] sm:$0xff]   ;;  %s1059_s18 = scalar_lea.sflag [#allocation4], %s2235_s22  ;;  %s2518_s29 = sld [smem:[#allocation27_spill]] }
 0x124   : > { %1338 = vmatprep.subr.bf16.mxu1 %v1505_v48 }
 0x125   : > { %1323 = vmatpush3.bf16.msra.mxu0 %v1497_v1  ;;  %1339 = vmatpush3.bf16.msra.mxu1 %v1505_v48 }
 0x126   : > { %1324 = vmatprep.subr.bf16.mxu0 %v1498_v2  ;;  %1340 = vmatprep.subr.bf16.mxu1 %v1506_v49 }
 0x129   : > { %1325 = vmatpush3.bf16.msra.mxu0 %v1498_v2  ;;  %1341 = vmatpush3.bf16.msra.mxu1 %v1506_v49  ;;  %p2519_p11 = scmp.ne.s32.totalorder %s2518_s29, 0 }
 0x12a   : > { %1326 = vmatprep.subr.bf16.mxu0 %v1499_v4  ;;  %1346 = vmatprep.subr.bf16.mxu1 %v2315_v50  ;;  %s1289_s30 = sshll.u32 (%p2519_p11), %s1967_s13, 2 }
 0x12b   : > { %s1067_s1 = ssub.s32 (%p2519_p11), 6, %s1289_s30 }
 0x12c   : > { %p1068_p13 = scmp.lt.s32.totalorder (%p2519_p11), %s1067_s1, 4 }
 0x12d   : > { %1327 = vmatpush3.bf16.msra.mxu0 %v1499_v4 }
 0x12e   : > { %1328 = vmatprep.subr.bf16.mxu0 %v1500_v5 }
 0x131   : > { %1329 = vmatpush3.bf16.msra.mxu0 %v1500_v5 }
 0x132   : > { %1330 = vmatprep.subr.bf16.mxu0 %v1501_v6 }
 0x135   : > { %1331 = vmatpush3.bf16.msra.mxu0 %v1501_v6 }
 0x136   : > { %1354 = vmatprep.subr.msk.bf16.mxu0 %vm554_vm1, %v1502_v7 }
 0x139   : > { %1333 = vmatpush3.bf16.msra.mxu0 %v556_v8 }
 0x13c   : > { %1335 = vmatmul.mubr.msk.bf16.vlgmr.msra.gmra.mrb[0].mxu0 %vm547_vm0, %v1504_v9 }
 0x20f   : > { %v1336_v11 = vpop.f32.mrb[0].mxu0 }
 0x210   : > { %v2267_v12 = vadd.f32 %v1336_v11, %v1256_v10  ;;  %v592_v13 = vpop.f32.mrb[1].mxu0 }
 0x211   : > { %v2269_v14 = vadd.f32 %v1256_v10, %v592_v13  ;;  %v1337_v15 = vpop.f32.mrb[2].mxu0 }
 0x212   : > { %733 = vrot.lane.b32.xlu1 %v2267_v12, %s1890_s20  ;;  %v595_v16 = vpop.f32.mrb[3].mxu0  ;;  %v2275_v17 = vadd.f32 %v1337_v15, %v1256_v10  ;;  %v653_v22 = vmul.f32 %v2267_v12, %v2267_v12  ;;  %v640_v41 = vsel %vm633_vm2, %v2267_v12, 0.0  ;;  %v1270_v62 = vmul.f32 -1.442695, %v2267_v12 }
 0x213   : > { %729 = vrot.lane.b32.xlu0 %v2269_v14, %s1890_s20  ;;  %v2277_v18 = vadd.f32 %v1256_v10, %v595_v16  ;;  %v651_v20 = vmul.f32 %v2269_v14, %v2269_v14  ;;  %v634_v39 = vsel %vm633_vm2, %v2269_v14, 0.0  ;;  %v1268_v58 = vmul.f32 -1.442695, %v2269_v14 }
 0x214   : > { %v654_v21 = vmul.f32 %v2275_v17, %v2275_v17  ;;  %v643_v42 = vsel %vm633_vm2, %v2275_v17, 0.0  ;;  %v661_v45 = vsel %vm633_vm2, %v653_v22, 0.0 }
 0x215   : > { %v652_v19 = vmul.f32 %v2277_v18, %v2277_v18  ;;  %v637_v40 = vsel %vm633_vm2, %v2277_v18, 0.0  ;;  %v655_v43 = vsel %vm633_vm2, %v651_v20, 0.0  ;;  %1509 = vpow2.f32 %v1268_v58  ;;  %v2358_v58 = vld [vmem:[#allocation10] ss:$0 sm:$0xff] }
 0x216   : > { %735 = vrot.lane.b32.xlu1 %v2275_v17, %s1890_s20  ;;  %v664_v46 = vsel %vm633_vm2, %v654_v21, 0.0  ;;  %1511 = vpow2.f32 %v1270_v62  ;;  %v1269_v9 = vmul.f32 -1.442695, %v2277_v18 }
 0x217   : > { %731 = vrot.lane.b32.xlu0 %v2277_v18, %s1890_s20  ;;  %v658_v44 = vsel %vm633_vm2, %v652_v19, 0.0 }
 0x21a   : > { %763 = vrot.lane.b32.xlu1 %v652_v19, %s1890_s20 }
 0x21b   : > { %761 = vrot.lane.b32.xlu0 %v651_v20, %s1890_s20 }
 0x21e   : > { %767 = vrot.lane.b32.xlu1 %v654_v21, %s1890_s20 }
 0x21f   : > { %765 = vrot.lane.b32.xlu0 %v653_v22, %s1890_s20 }
 0x284   : > { %v734_v23 = vpop.permute.xlu1 %733 }
 0x285   : > { %v730_v24 = vpop.permute.xlu0 %729  ;;  %v747_v25 = vsel %vm633_vm2, %v734_v23, 0.0 }
 0x286   : > { %748 = vadd.xlane.f32.xlu0 %v747_v25  ;;  %v741_v28 = vsel %vm633_vm2, %v730_v24, 0.0 }
 0x288   : > { %v736_v26 = vpop.permute.xlu1 %735 }
 0x289   : > { %v732_v27 = vpop.permute.xlu0 %731  ;;  %v750_v32 = vsel %vm633_vm2, %v736_v26, 0.0 }
 0x28a   : > { %742 = vadd.xlane.f32.xlu0 %v741_v28  ;;  %v744_v29 = vsel %vm633_vm2, %v732_v27, 0.0  ;;  %v1271_v28 = vmul.f32 -1.442695, %v2275_v17 }
 0x28b   : > { %745 = vadd.xlane.f32.xlu1 %v744_v29 }
 0x28c   : > { %v764_v30 = vpop.permute.xlu1 %763 }
 0x28d   : > { %v762_v31 = vpop.permute.xlu0 %761  ;;  %v776_v35 = vsel %vm633_vm2, %v764_v30, 0.0 }
 0x28e   : > { %751 = vadd.xlane.f32.xlu0 %v750_v32  ;;  %v773_v33 = vsel %vm633_vm2, %v762_v31, 0.0  ;;  %v1510_v31 = vpop.eup %1509 }
 0x28f   : > { %774 = vadd.xlane.f32.xlu1 %v773_v33 }
 0x290   : > { %v768_v36 = vpop.permute.xlu1 %767 }
 0x291   : > { %v766_v34 = vpop.permute.xlu0 %765  ;;  %v782_v38 = vsel %vm633_vm2, %v768_v36, 0.0 }
 0x292   : > { %777 = vadd.xlane.f32.xlu0 %v776_v35  ;;  %v779_v37 = vsel %vm633_vm2, %v766_v34, 0.0  ;;  %v1512_v35 = vpop.eup %1511 }
 0x293   : > { %780 = vadd.xlane.f32.xlu1 %v779_v37 }
 0x296   : > { %783 = vadd.xlane.f32.xlu0 %v782_v38 }
 0x297   : > { %635 = vadd.xlane.f32.xlu1 %v634_v39  ;;  %v619_v39 = vadd.f32 1.0, %v1510_v31 }
 0x29a   : > { %638 = vadd.xlane.f32.xlu0 %v637_v40 }
 0x29b   : > { %641 = vadd.xlane.f32.xlu1 %v640_v41 }
 0x29e   : > { %644 = vadd.xlane.f32.xlu0 %v643_v42 }
 0x29f   : > { %656 = vadd.xlane.f32.xlu1 %v655_v43 }
 0x2a2   : > { %659 = vadd.xlane.f32.xlu0 %v658_v44 }
 0x2a3   : > { %662 = vadd.xlane.f32.xlu1 %v661_v45  ;;  %v2350_v45 = vld [vmem:[#allocation8] ss:$0 sm:$0xff] }
 0x2a6   : > { %665 = vadd.xlane.f32.xlu0 %v664_v46  ;;  %v621_v46 = vadd.f32 1.0, %v1512_v35 }
 0x313   : > { %v749_v51 = vpop.xlane.xlu0 %748 }
 0x314   : > { %v2323_v59 = vmul.f32 0.03125, %v749_v51 }
 0x316   : > { %v791_v5 = vmul.f32 %v2323_v59, %v2323_v59 }
 0x317   : > { %v743_v52 = vpop.xlane.xlu0 %742 }
 0x318   : > { %v746_v53 = vpop.xlane.xlu1 %745  ;;  %v2318_v54 = vmul.f32 0.03125, %v743_v52 }
 0x319   : > { %v2320_v56 = vmul.f32 0.03125, %v746_v53 }
 0x31a   : > { %v789_v60 = vmul.f32 %v2318_v54, %v2318_v54  ;;  %v801_v40 = vsub.f32 %v2269_v14, %v2318_v54 }
 0x31b   : > { %v752_v55 = vpop.xlane.xlu0 %751  ;;  %v790_v1 = vmul.f32 %v2320_v56, %v2320_v56  ;;  %v802_v53 = vsub.f32 %v2277_v18, %v2320_v56 }
 0x31c   : > { %v775_v57 = vpop.xlane.xlu1 %774  ;;  %v2330_v2 = vmul.f32 0.03125, %v752_v55 }
 0x31d   : > { %v785_v61 = vmul.f32 0.03125, %v775_v57 }
 0x31e   : > { %v792_v15 = vmul.f32 %v2330_v2, %v2330_v2 }
 0x31f   : > { %v793_v63 = vsub.f32 %v785_v61, %v789_v60  ;;  %v778_v0 = vpop.xlane.xlu0 %777  ;;  %v803_v61 = vsub.f32 %v2267_v12, %v2323_v59 }
 0x320   : > { %v786_v3 = vmul.f32 0.03125, %v778_v0  ;;  %v781_v4 = vpop.xlane.xlu1 %780 }
 0x321   : > { %v797_v6 = vmax.f32 %v793_v63, 0.0  ;;  %v787_v7 = vmul.f32 0.03125, %v781_v4 }
 0x322   : > { %v794_v8 = vsub.f32 %v786_v3, %v790_v1 }
 0x323   : > { %v805_v10 = vadd.f32 1e-05, %v797_v6  ;;  %v795_v11 = vsub.f32 %v787_v7, %v791_v5  ;;  %v784_v13 = vpop.xlane.xlu0 %783 }
 0x324   : > { %v798_v16 = vmax.f32 %v794_v8, 0.0  ;;  %v788_v19 = vmul.f32 0.03125, %v784_v13  ;;  %v636_v20 = vpop.xlane.xlu1 %635 }
 0x325   : > { %1513 = vrsqrt.f32 %v805_v10  ;;  %v799_v21 = vmax.f32 %v795_v11, 0.0  ;;  %v2338_v29 = vmul.f32 0.03125, %v636_v20  ;;  %v804_v10 = vsub.f32 %v2275_v17, %v2330_v2 }
 0x326   : > { %v806_v22 = vadd.f32 1e-05, %v798_v16  ;;  %v796_v23 = vsub.f32 %v788_v19, %v792_v15  ;;  %1515 = vpow2.f32 %v1269_v9 }
 0x327   : > { %v807_v24 = vadd.f32 1e-05, %v799_v21  ;;  %v639_v25 = vpop.xlane.xlu0 %638  ;;  %v671_v36 = vmul.f32 %v2338_v29, %v2338_v29 }
 0x328   : > { %1517 = vrsqrt.f32 %v806_v22  ;;  %v800_v26 = vmax.f32 %v796_v23, 0.0  ;;  %v642_v27 = vpop.xlane.xlu1 %641  ;;  %v2340_v33 = vmul.f32 0.03125, %v639_v25 }
 0x329   : > { %1519 = vrsqrt.f32 %v807_v24  ;;  %v2344_v37 = vmul.f32 0.03125, %v642_v27 }
 0x32a   : > { %v808_v30 = vadd.f32 1e-05, %v800_v26  ;;  %v672_v47 = vmul.f32 %v2340_v33, %v2340_v33 }
 0x32b   : > { %v645_v32 = vpop.xlane.xlu0 %644  ;;  %v673_v54 = vmul.f32 %v2344_v37, %v2344_v37 }
 0x32c   : > { %1521 = vrsqrt.f32 %v808_v30  ;;  %v657_v34 = vpop.xlane.xlu1 %656  ;;  %v2348_v42 = vmul.f32 0.03125, %v645_v32 }
 0x32d   : > { %1523 = vpow2.f32 %v1271_v28  ;;  %v667_v38 = vmul.f32 0.03125, %v657_v34 }
 0x32e   : > { %1525 = vrcp.f32 %v619_v39  ;;  %v674_v1 = vmul.f32 %v2348_v42, %v2348_v42  ;;  %v683_v39 = vsub.f32 %v2269_v14, %v2338_v29  ;;  %v686_v29 = vsub.f32 %v2275_v17, %v2348_v42 }
 0x32f   : > { %v1514_v41 = vpop.eup %1513  ;;  %v675_v43 = vsub.f32 %v667_v38, %v671_v36  ;;  %v660_v44 = vpop.xlane.xlu0 %659 }
 0x330   : > { %v668_v48 = vmul.f32 0.03125, %v660_v44  ;;  %v663_v49 = vpop.xlane.xlu1 %662  ;;  %v813_v51 = vmul.f32 %v1514_v41, %v801_v40  ;;  %v1516_v52 = vpop.eup %1515 }
 0x331   : > { %v679_v55 = vmax.f32 %v675_v43, 0.0  ;;  %v669_v57 = vmul.f32 0.03125, %v663_v49  ;;  %v620_v15 = vadd.f32 1.0, %v1516_v52 }
 0x332   : > { %v1518_v60 = vpop.eup %1517  ;;  %v676_v62 = vsub.f32 %v668_v48, %v672_v47  ;;  %v817_v63 = vmul.f32 %v2350_v45, %v813_v51  ;;  %v685_v48 = vsub.f32 %v2267_v12, %v2344_v37 }
 0x333   : > { %v1520_v0 = vpop.eup %1519  ;;  %v687_v56 = vadd.f32 1e-05, %v679_v55  ;;  %v677_v3 = vsub.f32 %v669_v57, %v673_v54  ;;  %v666_v4 = vpop.xlane.xlu0 %665  ;;  %v814_v5 = vmul.f32 %v1518_v60, %v802_v53 }
 0x334   : > { %v680_v6 = vmax.f32 %v676_v62, 0.0  ;;  %v670_v7 = vmul.f32 0.03125, %v666_v4  ;;  %v821_v8 = vadd.f32 %v2358_v58, %v817_v63  ;;  %v815_v9 = vmul.f32 %v1520_v0, %v803_v61 }
 0x335   : > { %1527 = vrsqrt.f32 %v687_v56  ;;  %v681_v59 = vmax.f32 %v677_v3, 0.0  ;;  %v818_v11 = vmul.f32 %v2350_v45, %v814_v5  ;;  %v1508_v3 = vld [vmem:[#allocation14 + $0x8] sm:$0xff]  }
 0x336   : > { %v1522_v13 = vpop.eup %1521  ;;  %v688_v16 = vadd.f32 1e-05, %v680_v6  ;;  %v678_v19 = vsub.f32 %v670_v7, %v674_v1  ;;  %v819_v20 = vmul.f32 %v2350_v45, %v815_v9  ;;  %1529 = vrcp.f32 %v621_v46 }
 0x337   : > { %v1524_v21 = vpop.eup %1523  ;;  %v689_v22 = vadd.f32 1e-05, %v681_v59  ;;  %v822_v23 = vadd.f32 %v2358_v58, %v818_v11  ;;  %v816_v24 = vmul.f32 %v1522_v13, %v804_v10  ;;  %v825_v26 = vmax.f32 %v821_v8, 0.0  ;;  %v1279_v10 = vld [vmem:[#allocation16] ss:$0 sm:$0xff] }
 0x338   : > { %1531 = vrsqrt.f32 %v688_v16  ;;  %v682_v25 = vmax.f32 %v678_v19, 0.0  ;;  %v823_v28 = vadd.f32 %v2358_v58, %v819_v20  ;;  %v622_v30 = vadd.f32 1.0, %v1524_v21  ;;  %v1526_v35 = vpop.eup %1525 }
 0x339   : > { %1533 = vrsqrt.f32 %v689_v22  ;;  %v826_v2 = vmax.f32 %v822_v23, 0.0  ;;  %v820_v27 = vmul.f32 %v2350_v45, %v816_v24  ;;  %v684_v46 = vsub.f32 %v2277_v18, %v2340_v33 }
 0x33a   : > { %1535 = vrcp.f32 %v620_v15  ;;  %v690_v31 = vadd.f32 1e-05, %v682_v25  ;;  %v827_v36 = vmax.f32 %v823_v28, 0.0  ;;  %v1274_v28 = vld [vmem:[#allocation13] ss:$0 sm:$0xff] }
 0x33b   : > { %v829_v32 = vpack.c.bf16 %v826_v2, %v825_v26  ;;  %v824_v34 = vadd.f32 %v2358_v58, %v820_v27 }
 0x33c   : > { %1537 = vrsqrt.f32 %v690_v31 }
 0x33d   : > { %922 = vrot.lane.b32.xlu1 %v829_v32, %s1890_s20  ;;  %v828_v38 = vmax.f32 %v824_v34, 0.0  ;;  %1539 = vrcp.f32 %v622_v30 }
 0x33f   : > { %v1528_v40 = vpop.eup %1527  ;;  %v830_v41 = vpack.c.bf16 %v828_v38, %v827_v36 }
 0x340   : > { %v695_v43 = vmul.f32 %v1528_v40, %v683_v39  ;;  %v1530_v44 = vpop.eup %1529 }
 0x341   : > { %924 = vrot.lane.b32.xlu0 %v830_v41, %s1890_s20  ;;  %995 = vperm.xlu1 %1484, %v1526_v35  }
 0x342   : > { %v1532_v47 = vpop.eup %1531  ;;  %v705_v49 = vmul.f32 %v2350_v45, %v695_v43 }
 0x343   : > { %v1534_v51 = vpop.eup %1533  ;;  %v696_v52 = vmul.f32 %v1532_v47, %v684_v46 }
 0x344   : > { %v1536_v53 = vpop.eup %1535  ;;  %v697_v14 = vmul.f32 %v1534_v51, %v685_v48  ;;  %v715_v33 = vadd.f32 %v2358_v58, %v705_v49 }
 0x345   : > { %1005 = vperm.xlu0 %1485, %v1530_v44   ;;  %1000 = vperm.xlu1 %1484, %v1536_v53   ;;  %v706_v18 = vmul.f32 %v2350_v45, %v696_v52 }
 0x346   : > { %v1538_v54 = vpop.eup %1537  ;;  %v707_v55 = vmul.f32 %v2350_v45, %v697_v14  ;;  %v719_v60 = vmax.f32 %v715_v33, 0.0 }
 0x347   : > { %v716_v12 = vadd.f32 %v2358_v58, %v706_v18  ;;  %v698_v37 = vmul.f32 %v1538_v54, %v686_v29  ;;  %v1540_v57 = vpop.eup %1539 }
 0x348   : > { %v717_v17 = vadd.f32 %v2358_v58, %v707_v55 }
 0x349   : > { %1010 = vperm.xlu1 %1484, %v1540_v57   ;;  %v720_v61 = vmax.f32 %v716_v12, 0.0  ;;  %v708_v62 = vmul.f32 %v2350_v45, %v698_v37 }
 0x34a   : > { %v721_v0 = vmax.f32 %v717_v17, 0.0 }
 0x34b   : > { %v723_v42 = vpack.c.bf16 %v720_v61, %v719_v60  ;;  %v718_v63 = vadd.f32 %v2358_v58, %v708_v62 }
 0x34d   : > { %1342 = vmatprep.mubr.msk.bf16.mxu1 %vm633_vm2, %v723_v42  ;;  %v722_v1 = vmax.f32 %v718_v63, 0.0 }
 0x34f   : > { %v724_v56 = vpack.c.bf16 %v722_v1, %v721_v0 }
 0x351   : > { %1343 = vmatmul.mubr.msk.bf16.vlgmr.msra.gmra.mrb[0].mxu1 %vm633_vm2, %v724_v56 }
 0x352   : > { %1347 = vmatpush3.bf16.msra.mxu1 %v2315_v50 }
 0x353   : > { %1348 = vmatprep.subr.bf16.mxu1 %v1508_v3 }
 0x356   : > { %1349 = vmatpush3.bf16.msra.mxu1 %v1508_v3 }
 0x3af   : > { %v923_v4 = vpop.permute.xlu1 %922 }
 0x3b0   : > { %1350 = vmatprep.mubr.msk.bf16.mxu1 %vm633_vm2, %v923_v4 }
 0x3b3   : > { %v925_v45 = vpop.permute.xlu0 %924 }
 0x3b4   : > { %1351 = vmatmul.mubr.msk.bf16.vlgmr.msra.gmra.mrb[4].mxu1 %vm633_vm2, %v925_v45 }
 0x3c0   : > { %v996_v8 = vpop.permute.xlu1 %995 }
 0x3c4   : > { %v1001_v9 = vpop.permute.xlu1 %1000  ;;  %v1006_v20 = vpop.permute.xlu0 %1005 }
 0x3c8   : > { %v1011_v21 = vpop.permute.xlu1 %1010 }
 0x424   : > { %v1344_v5 = vpop.f32.mrb[0].mxu1 }
 0x425   : > { %v894_v58 = vpop.f32.mrb[1].mxu1  ;;  %v903_v31 = vadd.f32 %v1344_v5, %v1274_v28 }
 0x426   : > { %v1345_v6 = vpop.f32.mrb[2].mxu1  ;;  %v895_v38 = vadd.f32 %v1274_v28, %v894_v58 }
 0x427   : > { %v897_v7 = vpop.f32.mrb[3].mxu1  ;;  %v906_v32 = vadd.f32 %v1345_v6, %v1274_v28 }
 0x428   : > { %v898_v39 = vadd.f32 %v1274_v28, %v897_v7 }
 0x487   : > { %v1352_v59 = vpop.f32.mrb[4].mxu1 }
 0x488   : > { %v987_v11 = vadd.f32 %v1352_v59, %v1279_v10  ;;  %v978_v13 = vpop.f32.mrb[5].mxu1 }
 0x489   : > { %v979_v15 = vadd.f32 %v1279_v10, %v978_v13  ;;  %v1353_v50 = vpop.f32.mrb[6].mxu1 }
 0x48a   : > { %v990_v16 = vadd.f32 %v1353_v50, %v1279_v10  ;;  %v981_v19 = vpop.f32.mrb[7].mxu1  ;;  %v1015_v23 = vmul.f32 %v1006_v20, %v987_v11 }
 0x48b   : > { %v982_v22 = vadd.f32 %v1279_v10, %v981_v19  ;;  %v1013_v25 = vmul.f32 %v996_v8, %v979_v15 }
 0x48c   : > { %v1016_v24 = vmul.f32 %v1011_v21, %v990_v16 }
 0x48d   : > { %v1014_v26 = vmul.f32 %v1001_v9, %v982_v22 }
 0x48e   : > { %v1491_v2 = vpack.i.bf16 %v1016_v24, %v1015_v23 }
 0x48f   : > { %v1486_v27 = vpack.i.bf16 %v1014_v26, %v1013_v25 }
 0x490   : > { %1492 = vrot.lane.b32.xlu0 %v1491_v2, %s1892_s23 }
 0x491   : > { %1487 = vrot.lane.b32.xlu1 %v1486_v27, %s1892_s23 }
 0x502   : > { %v1493_v30 = vpop.permute.xlu0 %1492 }
 0x503   : > { %v1495_v34 = vunpack.i.h.bf16 %v1493_v30  ;;  %v1494_v35 = vunpack.i.l.bf16 %v1493_v30  ;;  %v1488_v36 = vpop.permute.xlu1 %1487  ;;  %1065 = sbr.rel (!%p2519_p11) target bundleno = 1319 (0x527), region = 96 }
 0x504   : > { %v1490_v40 = vunpack.i.h.bf16 %v1488_v36  ;;  %v1489_v41 = vunpack.i.l.bf16 %v1488_v36 }
 0x505   : > { %v1036_v43 = vsel %vm633_vm2, %v906_v32, %v1495_v34  ;;  %v1035_v44 = vsel %vm633_vm2, %v903_v31, %v1494_v35 }
 0x506   : > { %v1301_v46 = vpack.c.bf16 %v1036_v43, %v1036_v43  ;;  %v1300_v47 = vpack.c.bf16 %v1035_v44, %v1035_v44  ;;  %v1034_v48 = vsel %vm633_vm2, %v898_v39, %v1490_v40  ;;  %v1033_v49 = vsel %vm633_vm2, %v895_v38, %v1489_v41 }
 0x507   : > { %v1299_v51 = vpack.c.bf16 %v1034_v48, %v1034_v48  ;;  %v1298_v52 = vpack.c.bf16 %v1033_v49, %v1033_v49 }
 0x508   : > { %1057 = vst.msk [vmem:[%s462_s26 + $0xc] sm:$0xf] %vm1053_vm3, %v1301_v46  ;;  %1056 = vst.msk [vmem:[%s462_s26 + $0x8] sm:$0xf] %vm1053_vm3, %v1300_v47 }
 0x509   : > { %1055 = vst.msk [vmem:[%s462_s26 + $0x4] sm:$0xf] %vm1053_vm3, %v1299_v51  ;;  %1054 = vst.msk [vmem:[%s462_s26] sm:$0xf] %vm1053_vm3, %v1298_v52 }
 0x50a   : > { %s2532_s1 = smov (!%p1068_p13, %s1067_s1), 4 }
 0x50b   : > { %s2407_s14 = sshll.u32 %s2532_s1, 6 }
 0x50c   : > { %s1072_s25 = ssub.s32 256, %s2407_s14 }
 0x50d   : > { %1073 = vsyncadd %s1059_s18, %s1072_s25  ;;  %p1291_p0 = scmp.ne.s32.totalorder %s2407_s14, 0  ;;  %s1302_s24 = sshll.u32 %s1967_s13, 8 }
 0x50e   : > { %s2520_s17 = sld [smem:[#allocation31_spill]]  ;;  %s1078_s21 = sshll.u32 %s462_s26, 4  ;;  %s2419_s21 = int_to_ptr.vmem [resolvable:$true] %s1078_s21 }
 0x50f   : > { %s1793_s19 = scalar_lea.vmem %s2419_s21, %s2407_s14  ;;  %s1893_s16 = smov [#allocation17]  }
 0x510   : > { %p1794_p12 = scmp.ne.s32.totalorder %s2419_s21, %s1793_s19  ;;  %s1797_s9 = sshll.u32 %s1893_s16, 4  ;;  %s1798_s9 = int_to_ptr.vmem [resolvable:$false] %s1797_s9 }
 0x511   : > { %s1799_s13 = scalar_lea.vmem %s1798_s9, 512  ;;  %p1800_p8 = scmp.lt.s32.totalorder %s2419_s21, %s1798_s9 }
 0x512   : > { %p1795_p7 = pnand %p1794_p12, %p1291_p0  ;;  %p1801_p9 = scmp.lt.s32.totalorder %s1799_s13, %s1793_s19 }
 0x514   : > { %s2417_s3 = scalar_lea.hbm %s2520_s17, %s1302_s24  ;;  %p1796_p2 = pneg %p1795_p7 }
 0x515   : > { %p1802_p10 = por %p1801_p9, %p1800_p8 }
 0x517   : > { %p1803_p1 = pnand %p1802_p10, %p1796_p2 }
 0x519   : > { %1806 = shalt.err (!%p1803_p1)
}
 0x51a   : > { %s1807_s28 = scalar_lea.hbm %s2417_s3, %s2407_s14  ;;  %s1811_s26 = scalar_lea.hbm %s2520_s17, 384 }
 0x51b   : > { %p1808_p3 = scmp.ne.s32.totalorder %s2417_s3, %s1807_s28  ;;  %p1812_p11 = scmp.lt.u32.totalorder %s2417_s3, %s2520_s17 }
 0x51c   : > { %p1813_p13 = scmp.lt.u32.totalorder %s1811_s26, %s1807_s28  ;;  %p1815_p7 = scmp.lt.u32.totalorder %s1807_s28, %s2417_s3 }
 0x51d   : > { %p1809_p5 = pnand %p1808_p3, %p1291_p0 }
 0x51e   : > { %p1814_p12 = por %p1813_p13, %p1812_p11 }
 0x51f   : > { %p1810_p6 = pneg %p1809_p5 }
 0x520   : > { %p1816_p2 = por %p1815_p7, %p1814_p12 }
 0x522   : > { %p1817_p8 = pnand %p1816_p2, %p1810_p6 }
 0x524   : > { %1820 = shalt.err (!%p1817_p8)
}
 0x525   : > { %s1894_s1 = smov 64   ;;  %s1895_s25 = smov 4  }
 0x526   : > { %1084 = dma.vmem_to_hbm [thread:$0]  (%p1291_p0), %s2419_s21, %s2407_s14, %s2417_s3, %s1059_s18, %s1894_s1, %s1894_s1, %s1895_s25  }
 0x527 PF: > { %s2521_s24 = sld [smem:[#allocation24_spill]]  ;;  %s2522_s27 = sld [smem:[#allocation28_spill]] }
 0x52d   : > { %s1093_s15 = sand.u32 1, %s2521_s24   ;;  %p2523_p9 = scmp.ne.s32.totalorder %s2522_s27, 0 }
 0x52e   : > { %s1094_s19 = scalar_lea.sflag [#allocation4], %s1093_s15 }
 0x52f   : > { %p1415_p10 = pnand %p1237_p4, %p2523_p9 }
 0x531   : > { %1858 = dma.done.wait (!%p1415_p10), %s1094_s19, 256  }
 0x532   : > { %1860 = vsyncadd (!%p1415_p10), %s1094_s19, 4294967040  ;;  %s2524_s12 = sld [smem:[#allocation25_spill]]  ;;  %s2525_s16 = sld [smem:[#allocation26_spill]] }
 0x533   : > { %s2526_s30 = smov %s1867_s10  ;;  %s2527_s10 = smov %s1871_s11 }
 0x538   : > { %p26_p1 = scmp.ge.s32.totalorder %s2524_s12, 4   ;;  %s2528_s11 = smov %s2525_s16 }
 0x53a   :  { %28 = sbr.rel (!%p26_p1) target bundleno = 13 (0xd), region = 133 }
 0x541   :  { %1099 = vsyncpa [#allocation3], 1 }
 0x542   :  { %1101 = vsyncpa [#allocation3 + $0x1], 1 }
 0x543   :  { %1102 = vsyncpa [#allocation6], 1 }
 0x544   :  { %1103 = vsyncpa [#allocation9], 1 }
 0x545   :  { %1104 = vsyncpa [#allocation12], 1 }
 0x546   :  { %1105 = vsyncpa [#allocation15], 1 }
 0x547   :  { %1106 = vsyncpa [#allocation4], 1 }
 0x548   :  { %1108 = vsyncpa [#allocation4 + $0x1], 1 }

// kernel: attention_layer_forward.7
= control target key start
LH: loop header
LB: loop body
LE: loop exit
PB: predicated region body
PF: predicated region fallthrough
CT: control target
= control target key end

     0   :  { %12 = vsyncpa [#allocation3], 0  ;;  %s793_s0 = inlined_call_operand.hbm [shape: bf16[16,64], index: 0, kind: input, shape index: {}]   ;;  %s794_s1 = inlined_call_operand.hbm [shape: bf16[64,32], index: 1, kind: input, shape index: {}]   ;;  %s795_s2 = inlined_call_operand.hbm [shape: f32[1,32], index: 2, kind: input, shape index: {}]   ;;  %s796_s3 = inlined_call_operand.hbm [shape: f32[1,32], index: 3, kind: input, shape index: {}]   ;;  %s797_s4 = inlined_call_operand.hbm [shape: f32[1,32], index: 4, kind: input, shape index: {}]   ;;  %s798_s5 = inlined_call_operand.hbm [shape: bf16[32,32], index: 5, kind: input, shape index: {}]   ;;  %s799_s6 = inlined_call_operand.hbm [shape: f32[1,32], index: 6, kind: input, shape index: {}]   ;;  %s800_s7 = inlined_call_operand.hbm [shape: bf16[16,32], index: 7, kind: output, shape index: {}]  }
   0x1   :  { %13 = vsyncpa [#allocation6], 0 }
   0x2   :  { %14 = vsyncpa [#allocation9], 0 }
   0x3   :  { %15 = vsyncpa [#allocation12], 0 }
   0x4   :  { %16 = vsyncpa [#allocation4], 0  ;;  %s613_s24 = smov [#allocation5]   ;;  %s614_s26 = smov [#allocation8]  }
   0x5   :  { %s34_s25 = sshll.u32 %s613_s24, 4  ;;  %s57_s27 = sshll.u32 %s614_s26, 4  ;;  %s35_s25 = int_to_ptr.vmem [resolvable:$true] %s34_s25  ;;  %s665_s27 = int_to_ptr.vmem [resolvable:$true] %s57_s27 }
   0x6   :  { %s427_s30 = scalar_lea.hbm %s794_s1, 512 }
   0x7   :  { %p428_p0 = scmp.ne.s32.totalorder %s794_s1, %s427_s30  ;;  %p431_p1 = scmp.lt.u32.totalorder %s427_s30, %s794_s1 }
   0x9   :  { %p433_p2 = pnand %p431_p1, %p428_p0 }
   0xb   :  { %436 = shalt.err (!%p433_p2)
}
   0xc   :  { %s437_s12 = scalar_lea.vmem %s35_s25, 512  ;;  %p442_p4 = scmp.lt.s32.totalorder %s35_s25, %s35_s25 }
   0xd   :  { %p438_p3 = scmp.ne.s32.totalorder %s35_s25, %s437_s12  ;;  %p443_p5 = scmp.lt.s32.totalorder %s437_s12, %s437_s12 }
   0xf   :  { %p444_p6 = por %p443_p5, %p442_p4 }
  0x11   :  { %p445_p7 = pnand %p444_p6, %p438_p3 }
  0x13   :  { %448 = shalt.err (!%p445_p7)
}
  0x14   :  { %s615_s13 = smov 64   ;;  %s616_s14 = smov 4  }
  0x15   :  { %40 = dma.hbm_to_vmem [thread:$0]  %s794_s1, 512, %s35_s25, [#allocation6], %s615_s13, %s615_s13, %s616_s14  }
  0x16   :  { %s449_s19 = scalar_lea.hbm %s796_s3, 16 }
  0x17   :  { %p450_p8 = scmp.ne.s32.totalorder %s796_s3, %s449_s19  ;;  %p453_p9 = scmp.lt.u32.totalorder %s449_s19, %s796_s3 }
  0x19   :  { %p455_p10 = pnand %p453_p9, %p450_p8 }
  0x1b   :  { %458 = shalt.err (!%p455_p10)
}
  0x1c   :  { %s459_s24 = scalar_lea.vmem %s665_s27, 16  ;;  %s463_s1 = scalar_lea.vmem %s665_s27, 32 }
  0x1d   :  { %p460_p11 = scmp.ne.s32.totalorder %s665_s27, %s459_s24  ;;  %p464_p12 = scmp.lt.s32.totalorder %s665_s27, %s665_s27 }
  0x1e   :  { %p465_p13 = scmp.lt.s32.totalorder %s463_s1, %s459_s24 }
  0x20   :  { %p466_p0 = por %p465_p13, %p464_p12 }
  0x22   :  { %p467_p1 = pnand %p466_p0, %p460_p11 }
  0x24   :  { %470 = shalt.err (!%p467_p1)
}
  0x25   :  { %60 = dma.hbm_to_vmem [thread:$0]  %s796_s3, 16, %s665_s27, [#allocation9]  }
  0x26   :  { %s617_s28 = smov [#allocation11]   ;;  %s618_s30 = smov [#allocation2]  }
  0x27   :  { %s76_s29 = sshll.u32 %s617_s28, 4  ;;  %s22_s8 = sshll.u32 %s618_s30, 4  ;;  %s77_s29 = int_to_ptr.vmem [resolvable:$true] %s76_s29  ;;  %s700_s8 = int_to_ptr.vmem [resolvable:$true] %s22_s8 }
  0x28   :  { %s471_s11 = scalar_lea.hbm %s798_s5, 256 }
  0x29   :  { %p472_p2 = scmp.ne.s32.totalorder %s798_s5, %s471_s11  ;;  %p475_p3 = scmp.lt.u32.totalorder %s471_s11, %s798_s5 }
  0x2b   :  { %p477_p4 = pnand %p475_p3, %p472_p2 }
  0x2d   :  { %480 = shalt.err (!%p477_p4)
}
  0x2e   :  { %s481_s3 = scalar_lea.vmem %s77_s29, 256  ;;  %p486_p6 = scmp.lt.s32.totalorder %s77_s29, %s77_s29 }
  0x2f   :  { %p482_p5 = scmp.ne.s32.totalorder %s77_s29, %s481_s3  ;;  %p487_p7 = scmp.lt.s32.totalorder %s481_s3, %s481_s3 }
  0x31   :  { %p488_p8 = por %p487_p7, %p486_p6 }
  0x33   :  { %p489_p9 = pnand %p488_p8, %p482_p5 }
  0x35   :  { %492 = shalt.err (!%p489_p9)
}
  0x36   :  { %82 = dma.hbm_to_vmem [thread:$0]  %s798_s5, 256, %s77_s29, [#allocation12], %s615_s13, %s615_s13, %s616_s14  }
  0x37   :  { %s493_s21 = scalar_lea.hbm %s793_s0, 128 }
  0x38   :  { %p494_p10 = scmp.ne.s32.totalorder %s793_s0, %s493_s21  ;;  %p497_p11 = scmp.lt.u32.totalorder %s493_s21, %s793_s0 }
  0x3a   :  { %p499_p12 = pnand %p497_p11, %p494_p10 }
  0x3c   :  { %502 = shalt.err (!%p499_p12)
}
  0x3d   :  { %s503_s25 = scalar_lea.vmem %s700_s8, 128  ;;  %p508_p0 = scmp.lt.s32.totalorder %s700_s8, %s700_s8 }
  0x3e   :  { %p504_p13 = scmp.ne.s32.totalorder %s700_s8, %s503_s25  ;;  %p509_p1 = scmp.lt.s32.totalorder %s503_s25, %s503_s25 }
  0x40   :  { %p510_p2 = por %p509_p1, %p508_p0 }
  0x42   :  { %p511_p3 = pnand %p510_p2, %p504_p13 }
  0x44   :  { %514 = shalt.err (!%p511_p3)
}
  0x45   :  { %28 = dma.hbm_to_vmem [thread:$0]  %s793_s0, 128, %s700_s8, [#allocation3], %s615_s13, %s615_s13, %s616_s14  }
  0x46   :  { %s619_s28 = smov [#allocation7]   ;;  %s620_s30 = smov [#allocation10]  }
  0x47   :  { %s47_s29 = sshll.u32 %s619_s28, 4  ;;  %s67_s9 = sshll.u32 %s620_s30, 4  ;;  %s48_s29 = int_to_ptr.vmem [resolvable:$true] %s47_s29  ;;  %s68_s9 = int_to_ptr.vmem [resolvable:$true] %s67_s9 }
  0x48   :  { %s515_s12 = scalar_lea.hbm %s795_s2, 16 }
  0x49   :  { %p516_p4 = scmp.ne.s32.totalorder %s795_s2, %s515_s12  ;;  %p519_p5 = scmp.lt.u32.totalorder %s515_s12, %s795_s2 }
  0x4b   :  { %p521_p6 = pnand %p519_p5, %p516_p4 }
  0x4d   :  { %524 = shalt.err (!%p521_p6)
}
  0x4e   :  { %s525_s0 = scalar_lea.vmem %s48_s29, 16  ;;  %s529_s8 = scalar_lea.vmem %s48_s29, 32 }
  0x4f   :  { %p526_p7 = scmp.ne.s32.totalorder %s48_s29, %s525_s0  ;;  %p530_p8 = scmp.lt.s32.totalorder %s48_s29, %s48_s29 }
  0x50   :  { %p531_p9 = scmp.lt.s32.totalorder %s529_s8, %s525_s0 }
  0x52   :  { %p532_p10 = por %p531_p9, %p530_p8 }
  0x54   :  { %p533_p11 = pnand %p532_p10, %p526_p7 }
  0x56   :  { %536 = shalt.err (!%p533_p11)
}
  0x57   :  { %50 = dma.hbm_to_vmem [thread:$0]  %s795_s2, 16, %s48_s29, [#allocation6]  }
  0x58   :  { %s537_s21 = scalar_lea.hbm %s797_s4, 16 }
  0x59   :  { %p538_p12 = scmp.ne.s32.totalorder %s797_s4, %s537_s21  ;;  %p541_p13 = scmp.lt.u32.totalorder %s537_s21, %s797_s4 }
  0x5b   :  { %p543_p0 = pnand %p541_p13, %p538_p12 }
  0x5d   :  { %546 = shalt.err (!%p543_p0)
}
  0x5e   :  { %s547_s25 = scalar_lea.vmem %s68_s9, 16  ;;  %s551_s5 = scalar_lea.vmem %s68_s9, 32 }
  0x5f   :  { %p548_p1 = scmp.ne.s32.totalorder %s68_s9, %s547_s25  ;;  %p552_p2 = scmp.lt.s32.totalorder %s68_s9, %s68_s9 }
  0x60   :  { %p553_p3 = scmp.lt.s32.totalorder %s551_s5, %s547_s25 }
  0x62   :  { %p554_p4 = por %p553_p3, %p552_p2 }
  0x64   :  { %p555_p5 = pnand %p554_p4, %p548_p1 }
  0x66   :  { %558 = shalt.err (!%p555_p5)
}
  0x67   :  { %70 = dma.hbm_to_vmem [thread:$0]  %s797_s4, 16, %s68_s9, [#allocation9]  }
  0x68   :  { %s621_s28 = smov [#allocation13]   ;;  %s559_s11 = scalar_lea.hbm %s799_s6, 16 }
  0x69   :  { %s89_s29 = sshll.u32 %s621_s28, 4  ;;  %p560_p6 = scmp.ne.s32.totalorder %s799_s6, %s559_s11  ;;  %s90_s29 = int_to_ptr.vmem [resolvable:$true] %s89_s29 }
  0x6a   :  { %p563_p7 = scmp.lt.u32.totalorder %s559_s11, %s799_s6 }
  0x6c   :  { %p565_p8 = pnand %p563_p7, %p560_p6 }
  0x6e   :  { %568 = shalt.err (!%p565_p8)
}
  0x6f   :  { %s569_s3 = scalar_lea.vmem %s90_s29, 16  ;;  %s573_s4 = scalar_lea.vmem %s90_s29, 32 }
  0x70   :  { %p570_p9 = scmp.ne.s32.totalorder %s90_s29, %s569_s3  ;;  %p574_p10 = scmp.lt.s32.totalorder %s90_s29, %s90_s29 }
  0x71   :  { %p575_p11 = scmp.lt.s32.totalorder %s573_s4, %s569_s3 }
  0x73   :  { %p576_p12 = por %p575_p11, %p574_p10 }
  0x75   :  { %p577_p13 = pnand %p576_p12, %p570_p9 }
  0x77   :  { %580 = shalt.err (!%p577_p13)
}
  0x78   :  { %92 = dma.hbm_to_vmem [thread:$0]  %s799_s6, 16, %s90_s29, [#allocation12]  }
  0x79   :  { %603 = dma.done.wait [#allocation3], 128  }
  0x7a   :  { %604 = vsyncadd [#allocation3], 4294967168 }
  0x7b   :  { %605 = dma.done.wait [#allocation6], 528  }
  0x7c   :  { %606 = vsyncadd [#allocation6], 4294966768 }
  0x7d   :  { %607 = dma.done.wait [#allocation9], 32  }
  0x7e   :  { %608 = vsyncadd [#allocation9], 4294967264 }
  0x7f   :  { %609 = dma.done.wait [#allocation12], 272  }
  0x80   :  { %610 = vsyncadd [#allocation12], 4294967024  ;;  %v622_v0 = vmov 0.0   ;;  %vm623_vm0 = vmmov 0   ;;  %v416_v1 = vld [vmem:[#allocation5] sm:$0xff]   ;;  %v417_v2 = vld [vmem:[#allocation5 + $0x8] sm:$0xff]  }
  0x81   :  { %384 = vmatprep.subr.bf16.mxu0 %v622_v0  ;;  %392 = vmatprep.mubr.msk.bf16.mxu0 %vm623_vm0, %v622_v0  ;;  %v418_v3 = vld [vmem:[#allocation5 + $0x10] sm:$0xff]   ;;  %v419_v4 = vld [vmem:[#allocation5 + $0x18] sm:$0xff]   ;;  %vm161_vm1 = vcmask 523264   ;;  %v359_v6 = vld [vmem:[#allocation7] ss:$0 sm:$0xff]  ;;  %vm206_vm2 = vcmask 261120  }
  0x82   :  { %396 = vmatprep.subr.bf16.mxu1 %v622_v0  ;;  %400 = vmatprep.mubr.msk.bf16.mxu1 %vm623_vm0, %v622_v0  ;;  %v420_v5 = vld [vmem:[#allocation2] sm:$0xff]   ;;  %v421_v19 = vld [vmem:[#allocation11] sm:$0xff]   ;;  %v422_v20 = vld [vmem:[#allocation11 + $0x8] sm:$0xff]   ;;  %vm336_vm3 = vcmask 257024   ;;  %s624_s6 = smov [#allocation14]  }
  0x83   :  { %385 = vmatpush3.bf16.msra.mxu0 %v416_v1  ;;  %397 = vmatpush3.bf16.msra.mxu1 %v421_v19  ;;  %v366_v39 = vld [vmem:[#allocation8] ss:$0 sm:$0xff]  ;;  %v367_v44 = vld [vmem:[#allocation10] ss:$0 sm:$0xff]  ;;  %v368_v52 = vld [vmem:[#allocation13] ss:$0 sm:$0xff] }
  0x84   :  { %386 = vmatprep.subr.bf16.mxu0 %v622_v0  ;;  %398 = vmatprep.subr.bf16.mxu1 %v622_v0  ;;  %s344_s8 = sshll.u32 %s624_s6, 4  ;;  %s345_s8 = int_to_ptr.vmem [resolvable:$true] %s344_s8 }
  0x85   :  { %s581_s27 = scalar_lea.vmem %s345_s8, 128  ;;  %p586_p1 = scmp.lt.s32.totalorder %s345_s8, %s345_s8 }
  0x86   :  { %p582_p0 = scmp.ne.s32.totalorder %s345_s8, %s581_s27  ;;  %p587_p2 = scmp.lt.s32.totalorder %s581_s27, %s581_s27 }
  0x87   :  { %387 = vmatpush3.bf16.msra.mxu0 %v417_v2  ;;  %399 = vmatpush3.bf16.msra.mxu1 %v422_v20 }
  0x88   :  { %388 = vmatprep.subr.bf16.mxu0 %v622_v0  ;;  %p588_p3 = por %p587_p2, %p586_p1 }
  0x8a   :  { %p589_p4 = pnand %p588_p3, %p582_p0 }
  0x8b   :  { %389 = vmatpush3.bf16.msra.mxu0 %v418_v3 }
  0x8c   :  { %390 = vmatprep.subr.bf16.mxu0 %v622_v0 }
  0x8f   :  { %391 = vmatpush3.bf16.msra.mxu0 %v419_v4 }
  0x92   :  { %393 = vmatmul.mubr.msk.bf16.vlgmr.msra.gmra.mrb[0].mxu0 %vm161_vm1, %v420_v5 }
 0x165   :  { %v199_v7 = vpop.f32.mrb[0].mxu0 }
 0x166   :  { %v200_v8 = vadd.f32 %v359_v6, %v199_v7  ;;  %v394_v9 = vpop.f32.mrb[1].mxu0 }
 0x167   :  { %v202_v10 = vpop.f32.mrb[2].mxu0 }
 0x168   :  { %v203_v11 = vadd.f32 %v359_v6, %v202_v10  ;;  %v395_v12 = vpop.f32.mrb[3].mxu0  ;;  %v207_v13 = vsel %vm206_vm2, %v200_v8, 0.0  ;;  %v216_v14 = vmul.f32 %v200_v8, %v200_v8 }
 0x169   :  { %208 = vadd.xlane.f32.xlu0 %v207_v13 }
 0x16a   :  { %v218_v15 = vsel %vm206_vm2, %v216_v14, 0.0  ;;  %v217_v16 = vmul.f32 %v203_v11, %v203_v11  ;;  %v210_v17 = vsel %vm206_vm2, %v203_v11, 0.0 }
 0x16b   :  { %219 = vadd.xlane.f32.xlu1 %v218_v15 }
 0x16c   :  { %v221_v18 = vsel %vm206_vm2, %v217_v16, 0.0 }
 0x16d   :  { %211 = vadd.xlane.f32.xlu0 %v210_v17 }
 0x16f   :  { %222 = vadd.xlane.f32.xlu1 %v221_v18 }
 0x1f6   :  { %v209_v21 = vpop.xlane.xlu0 %208 }
 0x1f7   :  { %v214_v22 = vmul.f32 0.03125, %v209_v21 }
 0x1f8   :  { %v220_v23 = vpop.xlane.xlu1 %219 }
 0x1f9   :  { %v226_v24 = vmul.f32 %v214_v22, %v214_v22  ;;  %v224_v25 = vmul.f32 0.03125, %v220_v23  ;;  %v232_v37 = vsub.f32 %v200_v8, %v214_v22 }
 0x1fa   :  { %v212_v26 = vpop.xlane.xlu0 %211 }
 0x1fb   :  { %v228_v27 = vsub.f32 %v224_v25, %v226_v24  ;;  %v215_v28 = vmul.f32 0.03125, %v212_v26 }
 0x1fc   :  { %v223_v29 = vpop.xlane.xlu1 %222 }
 0x1fd   :  { %v230_v30 = vmax.f32 %v228_v27, 0.0  ;;  %v227_v31 = vmul.f32 %v215_v28, %v215_v28  ;;  %v225_v32 = vmul.f32 0.03125, %v223_v29  ;;  %v233_v41 = vsub.f32 %v203_v11, %v215_v28 }
 0x1ff   :  { %v234_v33 = vadd.f32 1e-05, %v230_v30  ;;  %v229_v34 = vsub.f32 %v225_v32, %v227_v31 }
 0x201   :  { %423 = vrsqrt.f32 %v234_v33  ;;  %v231_v35 = vmax.f32 %v229_v34, 0.0 }
 0x203   :  { %v235_v36 = vadd.f32 1e-05, %v231_v35 }
 0x205   :  { %425 = vrsqrt.f32 %v235_v36 }
 0x20b   :  { %v424_v38 = vpop.eup %423 }
 0x20c   :  { %v238_v40 = vmul.f32 %v424_v38, %v232_v37 }
 0x20e   :  { %v247_v42 = vmul.f32 %v366_v39, %v238_v40 }
 0x20f   :  { %v426_v43 = vpop.eup %425 }
 0x210   :  { %v239_v45 = vmul.f32 %v426_v43, %v233_v41  ;;  %v256_v47 = vadd.f32 %v367_v44, %v247_v42 }
 0x212   :  { %v248_v46 = vmul.f32 %v366_v39, %v239_v45  ;;  %v258_v49 = vmax.f32 %v256_v47, 0.0 }
 0x214   :  { %v257_v48 = vadd.f32 %v367_v44, %v248_v46 }
 0x216   :  { %v259_v50 = vmax.f32 %v257_v48, 0.0 }
 0x218   :  { %v260_v51 = vpack.c.bf16 %v259_v50, %v258_v49 }
 0x21a   :  { %401 = vmatmul.mubr.msk.bf16.vlgmr.msra.gmra.mrb[0].mxu1 %vm206_vm2, %v260_v51 }
 0x2ed   :  { %v321_v53 = vpop.f32.mrb[0].mxu1 }
 0x2ee   :  { %v322_v54 = vadd.f32 %v368_v52, %v321_v53  ;;  %v402_v55 = vpop.f32.mrb[1].mxu1 }
 0x2ef   :  { %v324_v56 = vpop.f32.mrb[2].mxu1 }
 0x2f0   :  { %v374_v57 = vpack.c.bf16 %v322_v54, %v322_v54  ;;  %v325_v58 = vadd.f32 %v368_v52, %v324_v56  ;;  %v403_v59 = vpop.f32.mrb[3].mxu1 }
 0x2f2   :  { %v375_v60 = vpack.c.bf16 %v325_v58, %v325_v58  ;;  %337 = vst.msk [vmem:[#allocation14] sm:$0xf] %vm336_vm3, %v374_v57 }
 0x2f4   :  { %338 = vst.msk [vmem:[#allocation14 + $0x4] sm:$0xf] %vm336_vm3, %v375_v60 }
 0x2f5   :  { %592 = shalt.err (!%p589_p4)
}
 0x2f6   :  { %s593_s20 = scalar_lea.hbm %s800_s7, 128 }
 0x2f7   :  { %p594_p5 = scmp.ne.s32.totalorder %s800_s7, %s593_s20  ;;  %p597_p6 = scmp.lt.u32.totalorder %s593_s20, %s800_s7 }
 0x2f9   :  { %p599_p7 = pnand %p597_p6, %p594_p5 }
 0x2fb   :  { %602 = shalt.err (!%p599_p7)
}
 0x2fc   :  { %350 = dma.vmem_to_hbm [thread:$0]  %s345_s8, 128, %s800_s7, [#allocation4], %s615_s13, %s615_s13, %s616_s14  }
 0x2fd   :  { %611 = dma.done.wait [#allocation4], 128  }
 0x2fe   :  { %612 = vsyncadd [#allocation4], 4294967168 }
 0x2ff   :  { %354 = vsyncpa [#allocation3], 1 }
 0x300   :  { %355 = vsyncpa [#allocation6], 1 }
 0x301   :  { %356 = vsyncpa [#allocation9], 1 }
 0x302   :  { %357 = vsyncpa [#allocation12], 1 }
 0x303   :  { %358 = vsyncpa [#allocation4], 1 }

// kernel: attention_layer_forward.8
= control target key start
LH: loop header
LB: loop body
LE: loop exit
PB: predicated region body
PF: predicated region fallthrough
CT: control target
= control target key end

     0   :  { %s2465_s0 = inlined_call_operand.hbm [shape: bf16[48,100], index: 0, kind: input, shape index: {}]   ;;  %s2466_s1 = inlined_call_operand.hbm [shape: bf16[100,65], index: 1, kind: input, shape index: {}]   ;;  %s2467_s2 = inlined_call_operand.hbm [shape: f32[1,65], index: 2, kind: input, shape index: {}]   ;;  %s2468_s3 = inlined_call_operand.hbm [shape: f32[1,64], index: 3, kind: input, shape index: {}]   ;;  %s2469_s4 = inlined_call_operand.hbm [shape: f32[1,64], index: 4, kind: input, shape index: {}]   ;;  %s2470_s5 = inlined_call_operand.hbm [shape: bf16[32,32], index: 5, kind: input, shape index: {}]   ;;  %s2471_s6 = inlined_call_operand.hbm [shape: f32[1,32], index: 6, kind: input, shape index: {}]   ;;  %s2472_s7 = inlined_call_operand.hbm [shape: bf16[32,4], index: 7, kind: input, shape index: {}]   ;;  %s2473_s8 = inlined_call_operand.hbm [shape: f32[1,4], index: 8, kind: input, shape index: {}]   ;;  %s2474_s9 = inlined_call_operand.hbm [shape: bf16[48,36], index: 9, kind: output, shape index: {}]  }
   0x1   :  { %2488 = sst [smem:[#allocation29_spill]] %s2466_s1 }
   0x2   :  { %2489 = sst [smem:[#allocation30_spill]] %s2468_s3 }
   0x3   :  { %2490 = sst [smem:[#allocation31_spill]] %s2474_s9 }
   0x4   :  { %14 = vsyncpa [#allocation3], 0 }
   0x5   :  { %16 = vsyncpa [#allocation3 + $0x1], 0 }
   0x6   :  { %17 = vsyncpa [#allocation6], 0 }
   0x7   :  { %18 = vsyncpa [#allocation9], 0 }
   0x8   :  { %19 = vsyncpa [#allocation12], 0 }
   0x9   :  { %20 = vsyncpa [#allocation15], 0 }
   0xa   :  { %21 = vsyncpa [#allocation4], 0 }
   0xb   :  { %23 = vsyncpa [#allocation4 + $0x1], 0  ;;  %s1946_s30 = smov 0   ;;  %s1948_s10 = smov 0  }
   0xc   :  { %s1950_s11 = smov 0   ;;  %s1952_s12 = smov 0  }
   0xd LB: > { %2491 = sst [smem:[#allocation24_spill]] %s1863_s30  ;;  %s1967_s13 = sadd.s32 4294967295, %s1875_s12   ;;  %s1875_s12 = sphi %s1952_s12, %s2524_s12   ;;  %s1871_s11 = sphi %s1950_s11, %s2528_s11   ;;  %s1867_s10 = sphi %s1948_s10, %s2527_s10   ;;  %s1863_s30 = sphi %s1946_s30, %s2526_s30  }
   0xe   : > { %s1227_s14 = sadd.s32 4294967294, %s1875_s12   ;;  %s1971_s15 = sadd.s32 1, %s1875_s12  }
   0xf   : > { %2492 = sst [smem:[#allocation25_spill]] %s1971_s15  ;;  %s36_s16 = sadd.s32 1, %s1871_s11 }
  0x10   : > { %s33_s17 = ssub.s32 %s1875_s12, %s1971_s15  ;;  %p43_p0 = scmp.ne.s32.totalorder %s1871_s11, %s1867_s10 }
  0x11   : > { %p34_p1 = scmp.eq.s32.totalorder %s33_s17, 0  ;;  %p44_p2 = scmp.eq.s32.totalorder %s1875_s12, 0 }
  0x12   : > { %p49_p3 = scmp.ne.s32.totalorder %s1867_s10, %s1863_s30  ;;  %p2477_p4 = scmp.eq.s32.totalorder %s1967_s13, 0 }
  0x13   : > { %s1983_s18 = scalar_select %p34_p1, %s1871_s11, %s36_s16  }
  0x14   : > { %p1985_p5 = por %p44_p2, %p43_p0  ;;  %p1991_p6 = por %p2477_p4, %p49_p3 }
  0x15   : > { %2493 = sst [smem:[#allocation26_spill]] %s1983_s18  ;;  %p241_p7 = scmp.eq.s32.totalorder %s1967_s13, 1 }
  0x16   : > { %s2494_s19 = scalar_select %p1985_p5, 1, 0 }
  0x17   : > { %s2495_s20 = scalar_select %p1991_p6, 1, 0 }
  0x18   : > { %p247_p8 = scmp.eq.s32.totalorder %s1227_s14, 1  ;;  %p1228_p9 = scmp.ge.s32.totalorder %s1875_s12, 1 }
  0x19   : > { %p254_p10 = scmp.lt.s32.totalorder %s1875_s12, 3  ;;  %p1998_p11 = por %p241_p7, %p43_p0 }
  0x1a   : > { %p2002_p12 = por %p247_p8, %p49_p3  ;;  %s1877_s24 = smov [#allocation5]  }
  0x1b   : > { %s2496_s21 = scalar_select %p1998_p11, 1, 0 }
  0x1c   : > { %s2498_s22 = scalar_select %p2002_p12, 1, 0 }
  0x1d   : > { %2497 = sst [smem:[#allocation27_spill]] %s2496_s21  ;;  %p2006_p13 = pnand %p1228_p9, %p254_p10 }
  0x1e   : > { %2499 = sst [smem:[#allocation28_spill]] %s2498_s22  ;;  %s266_s25 = sshll.u32 %s1877_s24, 4  ;;  %s267_s25 = int_to_ptr.vmem [resolvable:$true] %s266_s25 }
  0x1f   : > { %s2500_s23 = scalar_select %p2006_p13, 1, 0 }
  0x20   : > { %p1389_p1 = pneg %p2006_p13  ;;  %s1878_s27 = smov [#allocation8]  }
  0x21   : > { %s291_s28 = sshll.u32 %s1878_s27, 4  ;;  %s2502_s1 = sld [smem:[#allocation29_spill]]  ;;  %s2018_s28 = int_to_ptr.vmem [resolvable:$true] %s291_s28 }
  0x22   : > { %p2014_p2 = pnand %p1389_p1, %p2477_p4 }
  0x24   : > { %p2028_p3 = pneg %p2014_p2 }
  0x27   : > { %s1541_s16 = scalar_lea.hbm %s2502_s1, 832 }
  0x28   : > { %p1542_p0 = scmp.ne.s32.totalorder %s2502_s1, %s1541_s16  ;;  %p1548_p9 = scmp.lt.u32.totalorder %s1541_s16, %s2502_s1 }
  0x2a   : > { %p1544_p7 = pnand %p2028_p3, %p1542_p0 }
  0x2c   : > { %p1545_p8 = pneg %p1544_p7 }
  0x2e   : > { %p1550_p10 = pnand %p1548_p9, %p1545_p8 }
  0x30   : > { %1553 = shalt.err (!%p1550_p10)
}
  0x31   : > { %s1554_s29 = scalar_lea.vmem %s267_s25, 832  ;;  %p1562_p11 = scmp.lt.s32.totalorder %s267_s25, %s267_s25 }
  0x32   : > { %p1555_p1 = scmp.ne.s32.totalorder %s267_s25, %s1554_s29  ;;  %p1563_p6 = scmp.lt.s32.totalorder %s1554_s29, %s1554_s29 }
  0x34   : > { %p1557_p4 = pnand %p1555_p1, %p2028_p3  ;;  %p1564_p13 = por %p1563_p6, %p1562_p11 }
  0x36   : > { %p1558_p12 = pneg %p1557_p4 }
  0x38   : > { %p1565_p5 = pnand %p1564_p13, %p1558_p12 }
  0x3a   : > { %1568 = shalt.err (!%p1565_p5)
}
  0x3b   : > { %s2484_s18 = smov 64   ;;  %s2486_s14 = smov 4  }
  0x3c   : > { %1392 = dma.hbm_to_vmem [thread:$0]  (!%p2014_p2), %s2502_s1, 832, %s267_s25, [#allocation6], %s2484_s18, %s2484_s18, %s2486_s14  }
  0x3d   : > { %s2504_s3 = sld [smem:[#allocation30_spill]] }
  0x43   : > { %s1569_s22 = scalar_lea.hbm %s2504_s3, 16 }
  0x44   : > { %p1570_p4 = scmp.ne.s32.totalorder %s2504_s3, %s1569_s22  ;;  %p1576_p11 = scmp.lt.u32.totalorder %s1569_s22, %s2504_s3 }
  0x46   : > { %p1572_p5 = pnand %p1570_p4, %p2028_p3 }
  0x48   : > { %p1573_p6 = pneg %p1572_p5 }
  0x4a   : > { %p1578_p12 = pnand %p1576_p11, %p1573_p6 }
  0x4c   : > { %1581 = shalt.err (!%p1578_p12)
}
  0x4d   : > { %s1582_s25 = scalar_lea.vmem %s2018_s28, 16  ;;  %s1589_s30 = scalar_lea.vmem %s2018_s28, 32 }
  0x4e   : > { %p1583_p13 = scmp.ne.s32.totalorder %s2018_s28, %s1582_s25  ;;  %p1590_p8 = scmp.lt.s32.totalorder %s2018_s28, %s2018_s28 }
  0x4f   : > { %p1591_p9 = scmp.lt.s32.totalorder %s1589_s30, %s1582_s25 }
  0x50   : > { %p1585_p0 = pnand %p1583_p13, %p2028_p3 }
  0x51   : > { %p1592_p10 = por %p1591_p9, %p1590_p8 }
  0x52   : > { %p1586_p7 = pneg %p1585_p0 }
  0x54   : > { %p1593_p1 = pnand %p1592_p10, %p1586_p7 }
  0x56   : > { %1596 = shalt.err (!%p1593_p1)
}
  0x57   : > { %1398 = dma.hbm_to_vmem [thread:$0]  (!%p2014_p2), %s2504_s3, 16, %s2018_s28, [#allocation9]  }
  0x58   : > { %s1881_s22 = smov [#allocation11]   ;;  %s1882_s16 = smov [#allocation14]  }
  0x59   : > { %s312_s15 = sshll.u32 %s1881_s22, 4  ;;  %s336_s17 = sshll.u32 %s1882_s16, 4  ;;  %s313_s15 = int_to_ptr.vmem [resolvable:$true] %s312_s15  ;;  %s337_s17 = int_to_ptr.vmem [resolvable:$true] %s336_s17 }
  0x5a   : > { %s1597_s25 = scalar_lea.hbm %s2470_s5, 256 }
  0x5b   : > { %p1598_p4 = scmp.ne.s32.totalorder %s2470_s5, %s1597_s25  ;;  %p1604_p11 = scmp.lt.u32.totalorder %s1597_s25, %s2470_s5 }
  0x5d   : > { %p1600_p5 = pnand %p1598_p4, %p2028_p3 }
  0x5f   : > { %p1601_p6 = pneg %p1600_p5 }
  0x61   : > { %p1606_p12 = pnand %p1604_p11, %p1601_p6 }
  0x63   : > { %1609 = shalt.err (!%p1606_p12)
}
  0x64   : > { %s1610_s28 = scalar_lea.vmem %s313_s15, 256  ;;  %p1618_p8 = scmp.lt.s32.totalorder %s313_s15, %s313_s15 }
  0x65   : > { %p1611_p13 = scmp.ne.s32.totalorder %s313_s15, %s1610_s28  ;;  %p1619_p9 = scmp.lt.s32.totalorder %s1610_s28, %s1610_s28 }
  0x67   : > { %p1613_p0 = pnand %p1611_p13, %p2028_p3  ;;  %p1620_p10 = por %p1619_p9, %p1618_p8 }
  0x69   : > { %p1614_p7 = pneg %p1613_p0 }
  0x6b   : > { %p1621_p1 = pnand %p1620_p10, %p1614_p7 }
  0x6d   : > { %1624 = shalt.err (!%p1621_p1)
}
  0x6e   : > { %s2505_s18 = smov 4   ;;  %s2506_s21 = smov 64  }
  0x6f   : > { %1404 = dma.hbm_to_vmem [thread:$0]  (!%p2014_p2), %s2470_s5, 256, %s313_s15, [#allocation12], %s2506_s21, %s2506_s21, %s2505_s18  }
  0x70   : > { %s1625_s29 = scalar_lea.hbm %s2472_s7, 256 }
  0x71   : > { %p1626_p4 = scmp.ne.s32.totalorder %s2472_s7, %s1625_s29  ;;  %p1632_p11 = scmp.lt.u32.totalorder %s1625_s29, %s2472_s7 }
  0x73   : > { %p1628_p5 = pnand %p1626_p4, %p2028_p3 }
  0x75   : > { %p1629_p6 = pneg %p1628_p5 }
  0x77   : > { %p1634_p12 = pnand %p1632_p11, %p1629_p6 }
  0x79   : > { %1637 = shalt.err (!%p1634_p12)
}
  0x7a   : > { %s1638_s14 = scalar_lea.vmem %s337_s17, 256  ;;  %p1646_p8 = scmp.lt.s32.totalorder %s337_s17, %s337_s17 }
  0x7b   : > { %p1639_p13 = scmp.ne.s32.totalorder %s337_s17, %s1638_s14  ;;  %p1647_p9 = scmp.lt.s32.totalorder %s1638_s14, %s1638_s14 }
  0x7d   : > { %p1641_p0 = pnand %p1639_p13, %p2028_p3  ;;  %p1648_p10 = por %p1647_p9, %p1646_p8 }
  0x7f   : > { %p1642_p7 = pneg %p1641_p0 }
  0x81   : > { %p1649_p1 = pnand %p1648_p10, %p1642_p7 }
  0x83   : > { %1652 = shalt.err (!%p1649_p1)
}
  0x84   : > { %1410 = dma.hbm_to_vmem [thread:$0]  (!%p2014_p2), %s2472_s7, 256, %s337_s17, [#allocation15], %s2506_s21, %s2506_s21, %s2505_s18  }
  0x85   : > { %s1883_s16 = smov [#allocation7]   ;;  %s1884_s29 = smov [#allocation10]  }
  0x86   : > { %s280_s27 = sshll.u32 %s1883_s16, 4  ;;  %s302_s25 = sshll.u32 %s1884_s29, 4  ;;  %s281_s27 = int_to_ptr.vmem [resolvable:$true] %s280_s27  ;;  %s303_s25 = int_to_ptr.vmem [resolvable:$true] %s302_s25 }
  0x87   : > { %s1653_s28 = scalar_lea.hbm %s2467_s2, 16 }
  0x88   : > { %p1654_p4 = scmp.ne.s32.totalorder %s2467_s2, %s1653_s28  ;;  %p1660_p11 = scmp.lt.u32.totalorder %s1653_s28, %s2467_s2 }
  0x8a   : > { %p1656_p5 = pnand %p1654_p4, %p2028_p3 }
  0x8c   : > { %p1657_p6 = pneg %p1656_p5 }
  0x8e   : > { %p1662_p12 = pnand %p1660_p11, %p1657_p6 }
  0x90   : > { %1665 = shalt.err (!%p1662_p12)
}
  0x91   : > { %s1666_s17 = scalar_lea.vmem %s281_s27, 16  ;;  %s1673_s18 = scalar_lea.vmem %s281_s27, 32 }
  0x92   : > { %p1667_p13 = scmp.ne.s32.totalorder %s281_s27, %s1666_s17  ;;  %p1674_p8 = scmp.lt.s32.totalorder %s281_s27, %s281_s27 }
  0x93   : > { %p1675_p9 = scmp.lt.s32.totalorder %s1673_s18, %s1666_s17 }
  0x94   : > { %p1669_p0 = pnand %p1667_p13, %p2028_p3 }
  0x95   : > { %p1676_p10 = por %p1675_p9, %p1674_p8 }
  0x96   : > { %p1670_p7 = pneg %p1669_p0 }
  0x98   : > { %p1677_p1 = pnand %p1676_p10, %p1670_p7 }
  0x9a   : > { %1680 = shalt.err (!%p1677_p1)
}
  0x9b   : > { %1395 = dma.hbm_to_vmem [thread:$0]  (!%p2014_p2), %s2467_s2, 16, %s281_s27, [#allocation6]  }
  0x9c   : > { %s1681_s16 = scalar_lea.hbm %s2469_s4, 16 }
  0x9d   : > { %p1682_p4 = scmp.ne.s32.totalorder %s2469_s4, %s1681_s16  ;;  %p1688_p11 = scmp.lt.u32.totalorder %s1681_s16, %s2469_s4 }
  0x9f   : > { %p1684_p5 = pnand %p1682_p4, %p2028_p3 }
  0xa1   : > { %p1685_p6 = pneg %p1684_p5 }
  0xa3   : > { %p1690_p12 = pnand %p1688_p11, %p1685_p6 }
  0xa5   : > { %1693 = shalt.err (!%p1690_p12)
}
  0xa6   : > { %s1694_s14 = scalar_lea.vmem %s303_s25, 16  ;;  %s1701_s27 = scalar_lea.vmem %s303_s25, 32 }
  0xa7   : > { %p1695_p13 = scmp.ne.s32.totalorder %s303_s25, %s1694_s14  ;;  %p1702_p8 = scmp.lt.s32.totalorder %s303_s25, %s303_s25 }
  0xa8   : > { %p1703_p9 = scmp.lt.s32.totalorder %s1701_s27, %s1694_s14 }
  0xa9   : > { %p1697_p0 = pnand %p1695_p13, %p2028_p3 }
  0xaa   : > { %p1704_p10 = por %p1703_p9, %p1702_p8 }
  0xab   : > { %p1698_p7 = pneg %p1697_p0 }
  0xad   : > { %p1705_p1 = pnand %p1704_p10, %p1698_p7 }
  0xaf   : > { %1708 = shalt.err (!%p1705_p1)
}
  0xb0   : > { %1401 = dma.hbm_to_vmem [thread:$0]  (!%p2014_p2), %s2469_s4, 16, %s303_s25, [#allocation9]  }
  0xb1   : > { %s1885_s18 = smov [#allocation13]   ;;  %s1886_s21 = smov [#allocation16]  }
  0xb2   : > { %s326_s1 = sshll.u32 %s1885_s18, 4  ;;  %s350_s3 = sshll.u32 %s1886_s21, 4  ;;  %s327_s1 = int_to_ptr.vmem [resolvable:$true] %s326_s1  ;;  %s351_s3 = int_to_ptr.vmem [resolvable:$true] %s350_s3 }
  0xb3   : > { %s1709_s29 = scalar_lea.hbm %s2471_s6, 16 }
  0xb4   : > { %p1710_p4 = scmp.ne.s32.totalorder %s2471_s6, %s1709_s29  ;;  %p1716_p11 = scmp.lt.u32.totalorder %s1709_s29, %s2471_s6 }
  0xb6   : > { %p1712_p5 = pnand %p1710_p4, %p2028_p3 }
  0xb8   : > { %p1713_p6 = pneg %p1712_p5 }
  0xba   : > { %p1718_p12 = pnand %p1716_p11, %p1713_p6 }
  0xbc   : > { %1721 = shalt.err (!%p1718_p12)
}
  0xbd   : > { %s1722_s25 = scalar_lea.vmem %s327_s1, 16  ;;  %s1729_s27 = scalar_lea.vmem %s327_s1, 32 }
  0xbe   : > { %p1723_p13 = scmp.ne.s32.totalorder %s327_s1, %s1722_s25  ;;  %p1730_p8 = scmp.lt.s32.totalorder %s327_s1, %s327_s1 }
  0xbf   : > { %p1731_p9 = scmp.lt.s32.totalorder %s1729_s27, %s1722_s25 }
  0xc0   : > { %p1725_p0 = pnand %p1723_p13, %p2028_p3 }
  0xc1   : > { %p1732_p10 = por %p1731_p9, %p1730_p8 }
  0xc2   : > { %p1726_p7 = pneg %p1725_p0 }
  0xc4   : > { %p1733_p1 = pnand %p1732_p10, %p1726_p7 }
  0xc6   : > { %1736 = shalt.err (!%p1733_p1)
}
  0xc7   : > { %1407 = dma.hbm_to_vmem [thread:$0]  (!%p2014_p2), %s2471_s6, 16, %s327_s1, [#allocation12]  }
  0xc8   : > { %s1737_s22 = scalar_lea.hbm %s2473_s8, 16 }
  0xc9   : > { %p1738_p4 = scmp.ne.s32.totalorder %s2473_s8, %s1737_s22  ;;  %p1744_p11 = scmp.lt.u32.totalorder %s1737_s22, %s2473_s8 }
  0xcb   : > { %p1740_p5 = pnand %p1738_p4, %p2028_p3 }
  0xcd   : > { %p1741_p6 = pneg %p1740_p5 }
  0xcf   : > { %p1746_p12 = pnand %p1744_p11, %p1741_p6 }
  0xd1   : > { %1749 = shalt.err (!%p1746_p12)
}
  0xd2   : > { %s1750_s28 = scalar_lea.vmem %s351_s3, 16  ;;  %s1757_s1 = scalar_lea.vmem %s351_s3, 32 }
  0xd3   : > { %p1751_p13 = scmp.ne.s32.totalorder %s351_s3, %s1750_s28  ;;  %p1758_p8 = scmp.lt.s32.totalorder %s351_s3, %s351_s3 }
  0xd4   : > { %p1759_p9 = scmp.lt.s32.totalorder %s1757_s1, %s1750_s28 }
  0xd5   : > { %p1753_p0 = pnand %p1751_p13, %p2028_p3 }
  0xd6   : > { %p1760_p10 = por %p1759_p9, %p1758_p8 }
  0xd7   : > { %p1754_p7 = pneg %p1753_p0 }
  0xd9   : > { %p1761_p1 = pnand %p1760_p10, %p1754_p7 }
  0xdb   : > { %1764 = shalt.err (!%p1761_p1)
}
  0xdc   : > { %1413 = dma.hbm_to_vmem [thread:$0]  (!%p2014_p2), %s2473_s8, 16, %s351_s3, [#allocation15]  }
  0xdd   : > { %p1237_p4 = scmp.ge.s32.totalorder %s1875_s12, 2 }
  0xde   : > { %p2507_p3 = scmp.ne.s32.totalorder (!%p1237_p4), %s2494_s19, 0 }
  0xdf   : > { %357 = sbr.rel (%p1237_p4) target bundleno = 265 (0x109), region = 48 }
  0xe6   : > { %360 = sbr.rel (!%p2507_p3) target bundleno = 265 (0x109), region = 52  ;;  %s361_s24 = sand.u32 (%p2507_p3), 1, %s1871_s11  }
  0xe7   : > { %s1239_s27 = sshll.u32 (%p2507_p3), %s1875_s12, 2  ;;  %s1238_s15 = sshll.u32 (%p2507_p3), %s361_s24, 4 }
  0xe8   : > { %s367_s17 = ssub.s32 (%p2507_p3), 6, %s1239_s27  ;;  %s2195_s18 = scalar_lea.sflag (%p2507_p3), [#allocation3], %s361_s24 }
  0xe9   : > { %p368_p5 = scmp.lt.s32.totalorder (%p2507_p3), %s367_s17, 4  ;;  %s365_s21 = scalar_lea.vmem (%p2507_p3), [#allocation2], %s1238_s15 }
  0xed   : > { %s2530_s17 = smov (!%p368_p5, %s367_s17), 4 }
  0xee   : > { %s2192_s26 = sshll.u32 %s2530_s17, 6 }
  0xef   : > { %s372_s3 = ssub.s32 256, %s2192_s26 }
  0xf0   : > { %373 = vsyncadd %s2195_s18, %s372_s3  ;;  %p1241_p2 = scmp.ne.s32.totalorder %s2192_s26, 0  ;;  %s1297_s19 = sshll.u32 %s1875_s12, 8 }
  0xf1   : > { %s2203_s29 = scalar_lea.hbm %s2465_s0, %s1297_s19  ;;  %s378_s30 = sshll.u32 %s365_s21, 4  ;;  %s2205_s30 = int_to_ptr.vmem [resolvable:$true] %s378_s30 }
  0xf2   : > { %s1765_s9 = scalar_lea.hbm %s2203_s29, %s2192_s26  ;;  %s1769_s14 = scalar_lea.hbm %s2465_s0, 384 }
  0xf3   : > { %p1766_p6 = scmp.ne.s32.totalorder %s2203_s29, %s1765_s9  ;;  %p1770_p13 = scmp.lt.u32.totalorder %s2203_s29, %s2465_s0 }
  0xf4   : > { %p1771_p0 = scmp.lt.u32.totalorder %s1769_s14, %s1765_s9  ;;  %p1773_p8 = scmp.lt.u32.totalorder %s1765_s9, %s2203_s29 }
  0xf5   : > { %p1767_p11 = pnand %p1766_p6, %p1241_p2 }
  0xf6   : > { %p1772_p7 = por %p1771_p0, %p1770_p13 }
  0xf7   : > { %p1768_p12 = pneg %p1767_p11 }
  0xf8   : > { %p1774_p9 = por %p1773_p8, %p1772_p7 }
  0xfa   : > { %p1775_p10 = pnand %p1774_p9, %p1768_p12 }
  0xfc   : > { %1778 = shalt.err (!%p1775_p10)
}
  0xfd   : > { %s1779_s27 = scalar_lea.vmem %s2205_s30, %s2192_s26  ;;  %s1887_s15 = smov [#allocation2]  }
  0xfe   : > { %p1780_p1 = scmp.ne.s32.totalorder %s2205_s30, %s1779_s27  ;;  %s1783_s17 = sshll.u32 %s1887_s15, 4  ;;  %s1784_s17 = int_to_ptr.vmem [resolvable:$false] %s1783_s17 }
  0xff   : > { %s1785_s3 = scalar_lea.vmem %s1784_s17, 512  ;;  %p1786_p6 = scmp.lt.s32.totalorder %s2205_s30, %s1784_s17 }
 0x100   : > { %p1781_p3 = pnand %p1780_p1, %p1241_p2  ;;  %p1787_p11 = scmp.lt.s32.totalorder %s1785_s3, %s1779_s27 }
 0x102   : > { %p1782_p5 = pneg %p1781_p3  ;;  %p1788_p13 = por %p1787_p11, %p1786_p6 }
 0x104   : > { %p1789_p0 = pnand %p1788_p13, %p1782_p5 }
 0x106   : > { %1792 = shalt.err (!%p1789_p0)
}
 0x107   : > { %s1888_s21 = smov 64   ;;  %s1889_s19 = smov 4  }
 0x108   : > { %384 = dma.hbm_to_vmem [thread:$0]  (%p1241_p2), %s2203_s29, %s2192_s26, %s2205_s30, %s2195_s18, %s1888_s21, %s1888_s21, %s1889_s19  }
 0x109 PF: > { %p2508_p12 = scmp.ne.s32.totalorder %s2500_s23, 0 }
 0x10a   : > { %s2235_s22 = sand.u32 (!%p2508_p12), 1, %s1867_s10   ;;  %p2509_p7 = scmp.ne.s32.totalorder (!%p2508_p12), %s2495_s20, 0 }
 0x10b   : > { %390 = sbr.rel (%p2508_p12) target bundleno = 1319 (0x527), region = 56  ;;  %s1246_s16 = sshll.u32 (!%p2508_p12), %s2235_s22, 4 }
 0x10c   : > { %s393_s9 = scalar_lea.sflag (!%p2508_p12), [#allocation3], %s2235_s22  ;;  %s2241_s28 = scalar_lea.vmem (!%p2508_p12), [#allocation2], %s1246_s16 }
 0x112   : > { %1838 = dma.done.wait (%p2509_p7), %s393_s9, 256  }
 0x113   : > { %1840 = vsyncadd (%p2509_p7), %s393_s9, 4294967040  ;;  %p2510_p2 = scmp.eq.s32.totalorder %s1967_s13, 0 }
 0x115   : > { %1842 = dma.done.wait (%p2510_p2), [#allocation6], 848   ;;  %p2511_p8 = pmov %p2510_p2 }
 0x116   : > { %p2512_p9 = pmov %p2510_p2 }
 0x117   : > { %1844 = vsyncadd (%p2511_p8), [#allocation6], 4294966448 }
 0x118   : > { %1846 = dma.done.wait (%p2512_p9), [#allocation9], 32   ;;  %p2513_p10 = pmov %p2510_p2 }
 0x119   : > { %p2514_p1 = pmov %p2510_p2 }
 0x11a   : > { %1848 = vsyncadd (%p2513_p10), [#allocation9], 4294967264 }
 0x11b   : > { %1850 = dma.done.wait (%p2514_p1), [#allocation12], 272   ;;  %p2515_p3 = pmov %p2514_p1 }
 0x11c   : > { %p2516_p5 = pmov %p2514_p1 }
 0x11d   : > { %1852 = vsyncadd (%p2515_p3), [#allocation12], 4294967024 }
 0x11e   : > { %1854 = dma.done.wait (%p2516_p5), [#allocation15], 272   ;;  %p2517_p6 = pmov %p2514_p1 }
 0x11f   : > { %v1496_v0 = vld [vmem:[#allocation5] sm:$0xff]   ;;  %v1497_v1 = vld [vmem:[#allocation5 + $0x8] sm:$0xff]   ;;  %v1498_v2 = vld [vmem:[#allocation5 + $0x10] sm:$0xff]   ;;  %vm547_vm0 = vcmask 818176   ;;  %vm554_vm1 = vcmask 1041408   ;;  %s1890_s20 = smov 96  }
 0x120   : > { %1856 = vsyncadd (%p2517_p6), [#allocation15], 4294967024  ;;  %1320 = vmatprep.subr.bf16.mxu0 %v1496_v0  ;;  %v1503_v3 = vld [vmem:[%s2241_s28] sm:$0xff]   ;;  %v1499_v4 = vld [vmem:[#allocation5 + $0x18] sm:$0xff]   ;;  %vm633_vm2 = vcmask 261120   ;;  %v1891_v47 = vmov 64  }
 0x121   : > { %1321 = vmatpush3.bf16.msra.mxu0 %v1496_v0  ;;  %1334 = vmatprep.mubr.msk.bf16.mxu0 %vm547_vm0, %v1503_v3  ;;  %v1500_v5 = vld [vmem:[#allocation5 + $0x20] sm:$0xff]   ;;  %v1501_v6 = vld [vmem:[#allocation5 + $0x28] sm:$0xff]   ;;  %v1502_v7 = vld [vmem:[#allocation5 + $0x30] ss:$0 sps:$4 sm:$0x33]   ;;  %s1892_s23 = smov 32  }
 0x122   : > { %1322 = vmatprep.subr.bf16.mxu0 %v1497_v1  ;;  %v556_v8 = vsel %vm554_vm1, %v1502_v7, 0  ;;  %v1504_v9 = vld [vmem:[%s2241_s28 + $0x8] sm:$0xff]   ;;  %v1256_v10 = vld [vmem:[#allocation7] ss:$0 sm:$0xff]  ;;  %1484 = vset.pattern.permute.xlu1 %v1891_v47  ;;  %vm1053_vm3 = vcmask 289792   ;;  %s462_s26 = scalar_lea.vmem [#allocation17], %s1246_s16 }
 0x123   : > { %1485 = vset.pattern.permute.xlu0 %v1891_v47  ;;  %v1505_v48 = vld [vmem:[#allocation11] sm:$0xff]   ;;  %v1506_v49 = vld [vmem:[#allocation11 + $0x8] sm:$0xff]   ;;  %v2315_v50 = vld [vmem:[#allocation14] sm:$0xff]   ;;  %s1059_s18 = scalar_lea.sflag [#allocation4], %s2235_s22  ;;  %s2518_s29 = sld [smem:[#allocation27_spill]] }
 0x124   : > { %1338 = vmatprep.subr.bf16.mxu1 %v1505_v48 }
 0x125   : > { %1323 = vmatpush3.bf16.msra.mxu0 %v1497_v1  ;;  %1339 = vmatpush3.bf16.msra.mxu1 %v1505_v48 }
 0x126   : > { %1324 = vmatprep.subr.bf16.mxu0 %v1498_v2  ;;  %1340 = vmatprep.subr.bf16.mxu1 %v1506_v49 }
 0x129   : > { %1325 = vmatpush3.bf16.msra.mxu0 %v1498_v2  ;;  %1341 = vmatpush3.bf16.msra.mxu1 %v1506_v49  ;;  %p2519_p11 = scmp.ne.s32.totalorder %s2518_s29, 0 }
 0x12a   : > { %1326 = vmatprep.subr.bf16.mxu0 %v1499_v4  ;;  %1346 = vmatprep.subr.bf16.mxu1 %v2315_v50  ;;  %s1289_s30 = sshll.u32 (%p2519_p11), %s1967_s13, 2 }
 0x12b   : > { %s1067_s1 = ssub.s32 (%p2519_p11), 6, %s1289_s30 }
 0x12c   : > { %p1068_p13 = scmp.lt.s32.totalorder (%p2519_p11), %s1067_s1, 4 }
 0x12d   : > { %1327 = vmatpush3.bf16.msra.mxu0 %v1499_v4 }
 0x12e   : > { %1328 = vmatprep.subr.bf16.mxu0 %v1500_v5 }
 0x131   : > { %1329 = vmatpush3.bf16.msra.mxu0 %v1500_v5 }
 0x132   : > { %1330 = vmatprep.subr.bf16.mxu0 %v1501_v6 }
 0x135   : > { %1331 = vmatpush3.bf16.msra.mxu0 %v1501_v6 }
 0x136   : > { %1354 = vmatprep.subr.msk.bf16.mxu0 %vm554_vm1, %v1502_v7 }
 0x139   : > { %1333 = vmatpush3.bf16.msra.mxu0 %v556_v8 }
 0x13c   : > { %1335 = vmatmul.mubr.msk.bf16.vlgmr.msra.gmra.mrb[0].mxu0 %vm547_vm0, %v1504_v9 }
 0x20f   : > { %v1336_v11 = vpop.f32.mrb[0].mxu0 }
 0x210   : > { %v2267_v12 = vadd.f32 %v1336_v11, %v1256_v10  ;;  %v592_v13 = vpop.f32.mrb[1].mxu0 }
 0x211   : > { %v2269_v14 = vadd.f32 %v1256_v10, %v592_v13  ;;  %v1337_v15 = vpop.f32.mrb[2].mxu0 }
 0x212   : > { %733 = vrot.lane.b32.xlu1 %v2267_v12, %s1890_s20  ;;  %v595_v16 = vpop.f32.mrb[3].mxu0  ;;  %v2275_v17 = vadd.f32 %v1337_v15, %v1256_v10  ;;  %v653_v22 = vmul.f32 %v2267_v12, %v2267_v12  ;;  %v640_v41 = vsel %vm633_vm2, %v2267_v12, 0.0  ;;  %v1270_v62 = vmul.f32 -1.442695, %v2267_v12 }
 0x213   : > { %729 = vrot.lane.b32.xlu0 %v2269_v14, %s1890_s20  ;;  %v2277_v18 = vadd.f32 %v1256_v10, %v595_v16  ;;  %v651_v20 = vmul.f32 %v2269_v14, %v2269_v14  ;;  %v634_v39 = vsel %vm633_vm2, %v2269_v14, 0.0  ;;  %v1268_v58 = vmul.f32 -1.442695, %v2269_v14 }
 0x214   : > { %v654_v21 = vmul.f32 %v2275_v17, %v2275_v17  ;;  %v643_v42 = vsel %vm633_vm2, %v2275_v17, 0.0  ;;  %v661_v45 = vsel %vm633_vm2, %v653_v22, 0.0 }
 0x215   : > { %v652_v19 = vmul.f32 %v2277_v18, %v2277_v18  ;;  %v637_v40 = vsel %vm633_vm2, %v2277_v18, 0.0  ;;  %v655_v43 = vsel %vm633_vm2, %v651_v20, 0.0  ;;  %1509 = vpow2.f32 %v1268_v58  ;;  %v2358_v58 = vld [vmem:[#allocation10] ss:$0 sm:$0xff] }
 0x216   : > { %735 = vrot.lane.b32.xlu1 %v2275_v17, %s1890_s20  ;;  %v664_v46 = vsel %vm633_vm2, %v654_v21, 0.0  ;;  %1511 = vpow2.f32 %v1270_v62  ;;  %v1269_v9 = vmul.f32 -1.442695, %v2277_v18 }
 0x217   : > { %731 = vrot.lane.b32.xlu0 %v2277_v18, %s1890_s20  ;;  %v658_v44 = vsel %vm633_vm2, %v652_v19, 0.0 }
 0x21a   : > { %763 = vrot.lane.b32.xlu1 %v652_v19, %s1890_s20 }
 0x21b   : > { %761 = vrot.lane.b32.xlu0 %v651_v20, %s1890_s20 }
 0x21e   : > { %767 = vrot.lane.b32.xlu1 %v654_v21, %s1890_s20 }
 0x21f   : > { %765 = vrot.lane.b32.xlu0 %v653_v22, %s1890_s20 }
 0x284   : > { %v734_v23 = vpop.permute.xlu1 %733 }
 0x285   : > { %v730_v24 = vpop.permute.xlu0 %729  ;;  %v747_v25 = vsel %vm633_vm2, %v734_v23, 0.0 }
 0x286   : > { %748 = vadd.xlane.f32.xlu0 %v747_v25  ;;  %v741_v28 = vsel %vm633_vm2, %v730_v24, 0.0 }
 0x288   : > { %v736_v26 = vpop.permute.xlu1 %735 }
 0x289   : > { %v732_v27 = vpop.permute.xlu0 %731  ;;  %v750_v32 = vsel %vm633_vm2, %v736_v26, 0.0 }
 0x28a   : > { %742 = vadd.xlane.f32.xlu0 %v741_v28  ;;  %v744_v29 = vsel %vm633_vm2, %v732_v27, 0.0  ;;  %v1271_v28 = vmul.f32 -1.442695, %v2275_v17 }
 0x28b   : > { %745 = vadd.xlane.f32.xlu1 %v744_v29 }
 0x28c   : > { %v764_v30 = vpop.permute.xlu1 %763 }
 0x28d   : > { %v762_v31 = vpop.permute.xlu0 %761  ;;  %v776_v35 = vsel %vm633_vm2, %v764_v30, 0.0 }
 0x28e   : > { %751 = vadd.xlane.f32.xlu0 %v750_v32  ;;  %v773_v33 = vsel %vm633_vm2, %v762_v31, 0.0  ;;  %v1510_v31 = vpop.eup %1509 }
 0x28f   : > { %774 = vadd.xlane.f32.xlu1 %v773_v33 }
 0x290   : > { %v768_v36 = vpop.permute.xlu1 %767 }
 0x291   : > { %v766_v34 = vpop.permute.xlu0 %765  ;;  %v782_v38 = vsel %vm633_vm2, %v768_v36, 0.0 }
 0x292   : > { %777 = vadd.xlane.f32.xlu0 %v776_v35  ;;  %v779_v37 = vsel %vm633_vm2, %v766_v34, 0.0  ;;  %v1512_v35 = vpop.eup %1511 }
 0x293   : > { %780 = vadd.xlane.f32.xlu1 %v779_v37 }
 0x296   : > { %783 = vadd.xlane.f32.xlu0 %v782_v38 }
 0x297   : > { %635 = vadd.xlane.f32.xlu1 %v634_v39  ;;  %v619_v39 = vadd.f32 1.0, %v1510_v31 }
 0x29a   : > { %638 = vadd.xlane.f32.xlu0 %v637_v40 }
 0x29b   : > { %641 = vadd.xlane.f32.xlu1 %v640_v41 }
 0x29e   : > { %644 = vadd.xlane.f32.xlu0 %v643_v42 }
 0x29f   : > { %656 = vadd.xlane.f32.xlu1 %v655_v43 }
 0x2a2   : > { %659 = vadd.xlane.f32.xlu0 %v658_v44 }
 0x2a3   : > { %662 = vadd.xlane.f32.xlu1 %v661_v45  ;;  %v2350_v45 = vld [vmem:[#allocation8] ss:$0 sm:$0xff] }
 0x2a6   : > { %665 = vadd.xlane.f32.xlu0 %v664_v46  ;;  %v621_v46 = vadd.f32 1.0, %v1512_v35 }
 0x313   : > { %v749_v51 = vpop.xlane.xlu0 %748 }
 0x314   : > { %v2323_v59 = vmul.f32 0.03125, %v749_v51 }
 0x316   : > { %v791_v5 = vmul.f32 %v2323_v59, %v2323_v59 }
 0x317   : > { %v743_v52 = vpop.xlane.xlu0 %742 }
 0x318   : > { %v746_v53 = vpop.xlane.xlu1 %745  ;;  %v2318_v54 = vmul.f32 0.03125, %v743_v52 }
 0x319   : > { %v2320_v56 = vmul.f32 0.03125, %v746_v53 }
 0x31a   : > { %v789_v60 = vmul.f32 %v2318_v54, %v2318_v54  ;;  %v801_v40 = vsub.f32 %v2269_v14, %v2318_v54 }
 0x31b   : > { %v752_v55 = vpop.xlane.xlu0 %751  ;;  %v790_v1 = vmul.f32 %v2320_v56, %v2320_v56  ;;  %v802_v53 = vsub.f32 %v2277_v18, %v2320_v56 }
 0x31c   : > { %v775_v57 = vpop.xlane.xlu1 %774  ;;  %v2330_v2 = vmul.f32 0.03125, %v752_v55 }
 0x31d   : > { %v785_v61 = vmul.f32 0.03125, %v775_v57 }
 0x31e   : > { %v792_v15 = vmul.f32 %v2330_v2, %v2330_v2 }
 0x31f   : > { %v793_v63 = vsub.f32 %v785_v61, %v789_v60  ;;  %v778_v0 = vpop.xlane.xlu0 %777  ;;  %v803_v61 = vsub.f32 %v2267_v12, %v2323_v59 }
 0x320   : > { %v786_v3 = vmul.f32 0.03125, %v778_v0  ;;  %v781_v4 = vpop.xlane.xlu1 %780 }
 0x321   : > { %v797_v6 = vmax.f32 %v793_v63, 0.0  ;;  %v787_v7 = vmul.f32 0.03125, %v781_v4 }
 0x322   : > { %v794_v8 = vsub.f32 %v786_v3, %v790_v1 }
 0x323   : > { %v805_v10 = vadd.f32 1e-05, %v797_v6  ;;  %v795_v11 = vsub.f32 %v787_v7, %v791_v5  ;;  %v784_v13 = vpop.xlane.xlu0 %783 }
 0x324   : > { %v798_v16 = vmax.f32 %v794_v8, 0.0  ;;  %v788_v19 = vmul.f32 0.03125, %v784_v13  ;;  %v636_v20 = vpop.xlane.xlu1 %635 }
 0x325   : > { %1513 = vrsqrt.f32 %v805_v10  ;;  %v799_v21 = vmax.f32 %v795_v11, 0.0  ;;  %v2338_v29 = vmul.f32 0.03125, %v636_v20  ;;  %v804_v10 = vsub.f32 %v2275_v17, %v2330_v2 }
 0x326   : > { %v806_v22 = vadd.f32 1e-05, %v798_v16  ;;  %v796_v23 = vsub.f32 %v788_v19, %v792_v15  ;;  %1515 = vpow2.f32 %v1269_v9 }
 0x327   : > { %v807_v24 = vadd.f32 1e-05, %v799_v21  ;;  %v639_v25 = vpop.xlane.xlu0 %638  ;;  %v671_v36 = vmul.f32 %v2338_v29, %v2338_v29 }
 0x328   : > { %1517 = vrsqrt.f32 %v806_v22  ;;  %v800_v26 = vmax.f32 %v796_v23, 0.0  ;;  %v642_v27 = vpop.xlane.xlu1 %641  ;;  %v2340_v33 = vmul.f32 0.03125, %v639_v25 }
 0x329   : > { %1519 = vrsqrt.f32 %v807_v24  ;;  %v2344_v37 = vmul.f32 0.03125, %v642_v27 }
 0x32a   : > { %v808_v30 = vadd.f32 1e-05, %v800_v26  ;;  %v672_v47 = vmul.f32 %v2340_v33, %v2340_v33 }
 0x32b   : > { %v645_v32 = vpop.xlane.xlu0 %644  ;;  %v673_v54 = vmul.f32 %v2344_v37, %v2344_v37 }
 0x32c   : > { %1521 = vrsqrt.f32 %v808_v30  ;;  %v657_v34 = vpop.xlane.xlu1 %656  ;;  %v2348_v42 = vmul.f32 0.03125, %v645_v32 }
 0x32d   : > { %1523 = vpow2.f32 %v1271_v28  ;;  %v667_v38 = vmul.f32 0.03125, %v657_v34 }
 0x32e   : > { %1525 = vrcp.f32 %v619_v39  ;;  %v674_v1 = vmul.f32 %v2348_v42, %v2348_v42  ;;  %v683_v39 = vsub.f32 %v2269_v14, %v2338_v29  ;;  %v686_v29 = vsub.f32 %v2275_v17, %v2348_v42 }
 0x32f   : > { %v1514_v41 = vpop.eup %1513  ;;  %v675_v43 = vsub.f32 %v667_v38, %v671_v36  ;;  %v660_v44 = vpop.xlane.xlu0 %659 }
 0x330   : > { %v668_v48 = vmul.f32 0.03125, %v660_v44  ;;  %v663_v49 = vpop.xlane.xlu1 %662  ;;  %v813_v51 = vmul.f32 %v1514_v41, %v801_v40  ;;  %v1516_v52 = vpop.eup %1515 }
 0x331   : > { %v679_v55 = vmax.f32 %v675_v43, 0.0  ;;  %v669_v57 = vmul.f32 0.03125, %v663_v49  ;;  %v620_v15 = vadd.f32 1.0, %v1516_v52 }
 0x332   : > { %v1518_v60 = vpop.eup %1517  ;;  %v676_v62 = vsub.f32 %v668_v48, %v672_v47  ;;  %v817_v63 = vmul.f32 %v2350_v45, %v813_v51  ;;  %v685_v48 = vsub.f32 %v2267_v12, %v2344_v37 }
 0x333   : > { %v1520_v0 = vpop.eup %1519  ;;  %v687_v56 = vadd.f32 1e-05, %v679_v55  ;;  %v677_v3 = vsub.f32 %v669_v57, %v673_v54  ;;  %v666_v4 = vpop.xlane.xlu0 %665  ;;  %v814_v5 = vmul.f32 %v1518_v60, %v802_v53 }
 0x334   : > { %v680_v6 = vmax.f32 %v676_v62, 0.0  ;;  %v670_v7 = vmul.f32 0.03125, %v666_v4  ;;  %v821_v8 = vadd.f32 %v2358_v58, %v817_v63  ;;  %v815_v9 = vmul.f32 %v1520_v0, %v803_v61 }
 0x335   : > { %1527 = vrsqrt.f32 %v687_v56  ;;  %v681_v59 = vmax.f32 %v677_v3, 0.0  ;;  %v818_v11 = vmul.f32 %v2350_v45, %v814_v5  ;;  %v1508_v3 = vld [vmem:[#allocation14 + $0x8] sm:$0xff]  }
 0x336   : > { %v1522_v13 = vpop.eup %1521  ;;  %v688_v16 = vadd.f32 1e-05, %v680_v6  ;;  %v678_v19 = vsub.f32 %v670_v7, %v674_v1  ;;  %v819_v20 = vmul.f32 %v2350_v45, %v815_v9  ;;  %1529 = vrcp.f32 %v621_v46 }
 0x337   : > { %v1524_v21 = vpop.eup %1523  ;;  %v689_v22 = vadd.f32 1e-05, %v681_v59  ;;  %v822_v23 = vadd.f32 %v2358_v58, %v818_v11  ;;  %v816_v24 = vmul.f32 %v1522_v13, %v804_v10  ;;  %v825_v26 = vmax.f32 %v821_v8, 0.0  ;;  %v1279_v10 = vld [vmem:[#allocation16] ss:$0 sm:$0xff] }
 0x338   : > { %1531 = vrsqrt.f32 %v688_v16  ;;  %v682_v25 = vmax.f32 %v678_v19, 0.0  ;;  %v823_v28 = vadd.f32 %v2358_v58, %v819_v20  ;;  %v622_v30 = vadd.f32 1.0, %v1524_v21  ;;  %v1526_v35 = vpop.eup %1525 }
 0x339   : > { %1533 = vrsqrt.f32 %v689_v22  ;;  %v826_v2 = vmax.f32 %v822_v23, 0.0  ;;  %v820_v27 = vmul.f32 %v2350_v45, %v816_v24  ;;  %v684_v46 = vsub.f32 %v2277_v18, %v2340_v33 }
 0x33a   : > { %1535 = vrcp.f32 %v620_v15  ;;  %v690_v31 = vadd.f32 1e-05, %v682_v25  ;;  %v827_v36 = vmax.f32 %v823_v28, 0.0  ;;  %v1274_v28 = vld [vmem:[#allocation13] ss:$0 sm:$0xff] }
 0x33b   : > { %v829_v32 = vpack.c.bf16 %v826_v2, %v825_v26  ;;  %v824_v34 = vadd.f32 %v2358_v58, %v820_v27 }
 0x33c   : > { %1537 = vrsqrt.f32 %v690_v31 }
 0x33d   : > { %922 = vrot.lane.b32.xlu1 %v829_v32, %s1890_s20  ;;  %v828_v38 = vmax.f32 %v824_v34, 0.0  ;;  %1539 = vrcp.f32 %v622_v30 }
 0x33f   : > { %v1528_v40 = vpop.eup %1527  ;;  %v830_v41 = vpack.c.bf16 %v828_v38, %v827_v36 }
 0x340   : > { %v695_v43 = vmul.f32 %v1528_v40, %v683_v39  ;;  %v1530_v44 = vpop.eup %1529 }
 0x341   : > { %924 = vrot.lane.b32.xlu0 %v830_v41, %s1890_s20  ;;  %995 = vperm.xlu1 %1484, %v1526_v35  }
 0x342   : > { %v1532_v47 = vpop.eup %1531  ;;  %v705_v49 = vmul.f32 %v2350_v45, %v695_v43 }
 0x343   : > { %v1534_v51 = vpop.eup %1533  ;;  %v696_v52 = vmul.f32 %v1532_v47, %v684_v46 }
 0x344   : > { %v1536_v53 = vpop.eup %1535  ;;  %v697_v14 = vmul.f32 %v1534_v51, %v685_v48  ;;  %v715_v33 = vadd.f32 %v2358_v58, %v705_v49 }
 0x345   : > { %1005 = vperm.xlu0 %1485, %v1530_v44   ;;  %1000 = vperm.xlu1 %1484, %v1536_v53   ;;  %v706_v18 = vmul.f32 %v2350_v45, %v696_v52 }
 0x346   : > { %v1538_v54 = vpop.eup %1537  ;;  %v707_v55 = vmul.f32 %v2350_v45, %v697_v14  ;;  %v719_v60 = vmax.f32 %v715_v33, 0.0 }
 0x347   : > { %v716_v12 = vadd.f32 %v2358_v58, %v706_v18  ;;  %v698_v37 = vmul.f32 %v1538_v54, %v686_v29  ;;  %v1540_v57 = vpop.eup %1539 }
 0x348   : > { %v717_v17 = vadd.f32 %v2358_v58, %v707_v55 }
 0x349   : > { %1010 = vperm.xlu1 %1484, %v1540_v57   ;;  %v720_v61 = vmax.f32 %v716_v12, 0.0  ;;  %v708_v62 = vmul.f32 %v2350_v45, %v698_v37 }
 0x34a   : > { %v721_v0 = vmax.f32 %v717_v17, 0.0 }
 0x34b   : > { %v723_v42 = vpack.c.bf16 %v720_v61, %v719_v60  ;;  %v718_v63 = vadd.f32 %v2358_v58, %v708_v62 }
 0x34d   : > { %1342 = vmatprep.mubr.msk.bf16.mxu1 %vm633_vm2, %v723_v42  ;;  %v722_v1 = vmax.f32 %v718_v63, 0.0 }
 0x34f   : > { %v724_v56 = vpack.c.bf16 %v722_v1, %v721_v0 }
 0x351   : > { %1343 = vmatmul.mubr.msk.bf16.vlgmr.msra.gmra.mrb[0].mxu1 %vm633_vm2, %v724_v56 }
 0x352   : > { %1347 = vmatpush3.bf16.msra.mxu1 %v2315_v50 }
 0x353   : > { %1348 = vmatprep.subr.bf16.mxu1 %v1508_v3 }
 0x356   : > { %1349 = vmatpush3.bf16.msra.mxu1 %v1508_v3 }
 0x3af   : > { %v923_v4 = vpop.permute.xlu1 %922 }
 0x3b0   : > { %1350 = vmatprep.mubr.msk.bf16.mxu1 %vm633_vm2, %v923_v4 }
 0x3b3   : > { %v925_v45 = vpop.permute.xlu0 %924 }
 0x3b4   : > { %1351 = vmatmul.mubr.msk.bf16.vlgmr.msra.gmra.mrb[4].mxu1 %vm633_vm2, %v925_v45 }
 0x3c0   : > { %v996_v8 = vpop.permute.xlu1 %995 }
 0x3c4   : > { %v1001_v9 = vpop.permute.xlu1 %1000  ;;  %v1006_v20 = vpop.permute.xlu0 %1005 }
 0x3c8   : > { %v1011_v21 = vpop.permute.xlu1 %1010 }
 0x424   : > { %v1344_v5 = vpop.f32.mrb[0].mxu1 }
 0x425   : > { %v894_v58 = vpop.f32.mrb[1].mxu1  ;;  %v903_v31 = vadd.f32 %v1344_v5, %v1274_v28 }
 0x426   : > { %v1345_v6 = vpop.f32.mrb[2].mxu1  ;;  %v895_v38 = vadd.f32 %v1274_v28, %v894_v58 }
 0x427   : > { %v897_v7 = vpop.f32.mrb[3].mxu1  ;;  %v906_v32 = vadd.f32 %v1345_v6, %v1274_v28 }
 0x428   : > { %v898_v39 = vadd.f32 %v1274_v28, %v897_v7 }
 0x487   : > { %v1352_v59 = vpop.f32.mrb[4].mxu1 }
 0x488   : > { %v987_v11 = vadd.f32 %v1352_v59, %v1279_v10  ;;  %v978_v13 = vpop.f32.mrb[5].mxu1 }
 0x489   : > { %v979_v15 = vadd.f32 %v1279_v10, %v978_v13  ;;  %v1353_v50 = vpop.f32.mrb[6].mxu1 }
 0x48a   : > { %v990_v16 = vadd.f32 %v1353_v50, %v1279_v10  ;;  %v981_v19 = vpop.f32.mrb[7].mxu1  ;;  %v1015_v23 = vmul.f32 %v1006_v20, %v987_v11 }
 0x48b   : > { %v982_v22 = vadd.f32 %v1279_v10, %v981_v19  ;;  %v1013_v25 = vmul.f32 %v996_v8, %v979_v15 }
 0x48c   : > { %v1016_v24 = vmul.f32 %v1011_v21, %v990_v16 }
 0x48d   : > { %v1014_v26 = vmul.f32 %v1001_v9, %v982_v22 }
 0x48e   : > { %v1491_v2 = vpack.i.bf16 %v1016_v24, %v1015_v23 }
 0x48f   : > { %v1486_v27 = vpack.i.bf16 %v1014_v26, %v1013_v25 }
 0x490   : > { %1492 = vrot.lane.b32.xlu0 %v1491_v2, %s1892_s23 }
 0x491   : > { %1487 = vrot.lane.b32.xlu1 %v1486_v27, %s1892_s23 }
 0x502   : > { %v1493_v30 = vpop.permute.xlu0 %1492 }
 0x503   : > { %v1495_v34 = vunpack.i.h.bf16 %v1493_v30  ;;  %v1494_v35 = vunpack.i.l.bf16 %v1493_v30  ;;  %v1488_v36 = vpop.permute.xlu1 %1487  ;;  %1065 = sbr.rel (!%p2519_p11) target bundleno = 1319 (0x527), region = 96 }
 0x504   : > { %v1490_v40 = vunpack.i.h.bf16 %v1488_v36  ;;  %v1489_v41 = vunpack.i.l.bf16 %v1488_v36 }
 0x505   : > { %v1036_v43 = vsel %vm633_vm2, %v906_v32, %v1495_v34  ;;  %v1035_v44 = vsel %vm633_vm2, %v903_v31, %v1494_v35 }
 0x506   : > { %v1301_v46 = vpack.c.bf16 %v1036_v43, %v1036_v43  ;;  %v1300_v47 = vpack.c.bf16 %v1035_v44, %v1035_v44  ;;  %v1034_v48 = vsel %vm633_vm2, %v898_v39, %v1490_v40  ;;  %v1033_v49 = vsel %vm633_vm2, %v895_v38, %v1489_v41 }
 0x507   : > { %v1299_v51 = vpack.c.bf16 %v1034_v48, %v1034_v48  ;;  %v1298_v52 = vpack.c.bf16 %v1033_v49, %v1033_v49 }
 0x508   : > { %1057 = vst.msk [vmem:[%s462_s26 + $0xc] sm:$0xf] %vm1053_vm3, %v1301_v46  ;;  %1056 = vst.msk [vmem:[%s462_s26 + $0x8] sm:$0xf] %vm1053_vm3, %v1300_v47 }
 0x509   : > { %1055 = vst.msk [vmem:[%s462_s26 + $0x4] sm:$0xf] %vm1053_vm3, %v1299_v51  ;;  %1054 = vst.msk [vmem:[%s462_s26] sm:$0xf] %vm1053_vm3, %v1298_v52 }
 0x50a   : > { %s2532_s1 = smov (!%p1068_p13, %s1067_s1), 4 }
 0x50b   : > { %s2407_s14 = sshll.u32 %s2532_s1, 6 }
 0x50c   : > { %s1072_s25 = ssub.s32 256, %s2407_s14 }
 0x50d   : > { %1073 = vsyncadd %s1059_s18, %s1072_s25  ;;  %p1291_p0 = scmp.ne.s32.totalorder %s2407_s14, 0  ;;  %s1302_s24 = sshll.u32 %s1967_s13, 8 }
 0x50e   : > { %s2520_s17 = sld [smem:[#allocation31_spill]]  ;;  %s1078_s21 = sshll.u32 %s462_s26, 4  ;;  %s2419_s21 = int_to_ptr.vmem [resolvable:$true] %s1078_s21 }
 0x50f   : > { %s1793_s19 = scalar_lea.vmem %s2419_s21, %s2407_s14  ;;  %s1893_s16 = smov [#allocation17]  }
 0x510   : > { %p1794_p12 = scmp.ne.s32.totalorder %s2419_s21, %s1793_s19  ;;  %s1797_s9 = sshll.u32 %s1893_s16, 4  ;;  %s1798_s9 = int_to_ptr.vmem [resolvable:$false] %s1797_s9 }
 0x511   : > { %s1799_s13 = scalar_lea.vmem %s1798_s9, 512  ;;  %p1800_p8 = scmp.lt.s32.totalorder %s2419_s21, %s1798_s9 }
 0x512   : > { %p1795_p7 = pnand %p1794_p12, %p1291_p0  ;;  %p1801_p9 = scmp.lt.s32.totalorder %s1799_s13, %s1793_s19 }
 0x514   : > { %s2417_s3 = scalar_lea.hbm %s2520_s17, %s1302_s24  ;;  %p1796_p2 = pneg %p1795_p7 }
 0x515   : > { %p1802_p10 = por %p1801_p9, %p1800_p8 }
 0x517   : > { %p1803_p1 = pnand %p1802_p10, %p1796_p2 }
 0x519   : > { %1806 = shalt.err (!%p1803_p1)
}
 0x51a   : > { %s1807_s28 = scalar_lea.hbm %s2417_s3, %s2407_s14  ;;  %s1811_s26 = scalar_lea.hbm %s2520_s17, 384 }
 0x51b   : > { %p1808_p3 = scmp.ne.s32.totalorder %s2417_s3, %s1807_s28  ;;  %p1812_p11 = scmp.lt.u32.totalorder %s2417_s3, %s2520_s17 }
 0x51c   : > { %p1813_p13 = scmp.lt.u32.totalorder %s1811_s26, %s1807_s28  ;;  %p1815_p7 = scmp.lt.u32.totalorder %s1807_s28, %s2417_s3 }
 0x51d   : > { %p1809_p5 = pnand %p1808_p3, %p1291_p0 }
 0x51e   : > { %p1814_p12 = por %p1813_p13, %p1812_p11 }
 0x51f   : > { %p1810_p6 = pneg %p1809_p5 }
 0x520   : > { %p1816_p2 = por %p1815_p7, %p1814_p12 }
 0x522   : > { %p1817_p8 = pnand %p1816_p2, %p1810_p6 }
 0x524   : > { %1820 = shalt.err (!%p1817_p8)
}
 0x525   : > { %s1894_s1 = smov 64   ;;  %s1895_s25 = smov 4  }
 0x526   : > { %1084 = dma.vmem_to_hbm [thread:$0]  (%p1291_p0), %s2419_s21, %s2407_s14, %s2417_s3, %s1059_s18, %s1894_s1, %s1894_s1, %s1895_s25  }
 0x527 PF: > { %s2521_s24 = sld [smem:[#allocation24_spill]]  ;;  %s2522_s27 = sld [smem:[#allocation28_spill]] }
 0x52d   : > { %s1093_s15 = sand.u32 1, %s2521_s24   ;;  %p2523_p9 = scmp.ne.s32.totalorder %s2522_s27, 0 }
 0x52e   : > { %s1094_s19 = scalar_lea.sflag [#allocation4], %s1093_s15 }
 0x52f   : > { %p1415_p10 = pnand %p1237_p4, %p2523_p9 }
 0x531   : > { %1858 = dma.done.wait (!%p1415_p10), %s1094_s19, 256  }
 0x532   : > { %1860 = vsyncadd (!%p1415_p10), %s1094_s19, 4294967040  ;;  %s2524_s12 = sld [smem:[#allocation25_spill]]  ;;  %s2525_s16 = sld [smem:[#allocation26_spill]] }
 0x533   : > { %s2526_s30 = smov %s1867_s10  ;;  %s2527_s10 = smov %s1871_s11 }
 0x538   : > { %p26_p1 = scmp.ge.s32.totalorder %s2524_s12, 4   ;;  %s2528_s11 = smov %s2525_s16 }
 0x53a   :  { %28 = sbr.rel (!%p26_p1) target bundleno = 13 (0xd), region = 133 }
 0x541   :  { %1099 = vsyncpa [#allocation3], 1 }
 0x542   :  { %1101 = vsyncpa [#allocation3 + $0x1], 1 }
 0x543   :  { %1102 = vsyncpa [#allocation6], 1 }
 0x544   :  { %1103 = vsyncpa [#allocation9], 1 }
 0x545   :  { %1104 = vsyncpa [#allocation12], 1 }
 0x546   :  { %1105 = vsyncpa [#allocation15], 1 }
 0x547   :  { %1106 = vsyncpa [#allocation4], 1 }
 0x548   :  { %1108 = vsyncpa [#allocation4 + $0x1], 1 }

</bundles_post_ra>
